<compile_context>
chip_gen: v6e
topology: v6e:2x2x1
jax: 0.10.0
libtpu: 0.0.40
codegen_flags: <defaults>
</compile_context>

<pallas_src>
import functools

import jax
import jax.numpy as jnp
import numpy as np
from jax import lax
from jax.experimental import pallas as pl
from jax.experimental.pallas import tpu as pltpu

_BN_EPS = 1e-5


# ---------------------------------------------------------------------------
# In-kernel building blocks
# ---------------------------------------------------------------------------
def _conv1d_same_im2col(x, w2d, k):
    """PyTorch-'same' Conv1d as a single MXU contraction.

    x:   (Nt, L, Cin)   activation tile (bf16), channels on lanes
    w2d: (K*Cin, Cout)  weight laid out to match the im2col columns (bf16)
    Returns f32 (Nt, L, Cout).
    """
    n, l, cin = x.shape
    cout = w2d.shape[1]
    if k == 1:
        cols = x
    else:
        left = (k - 1) // 2                 # PyTorch 'same': extra pad on right
        right = (k - 1) - left
        xp = jnp.concatenate(
            [jnp.zeros((n, left, cin), x.dtype), x,
             jnp.zeros((n, right, cin), x.dtype)], axis=1)
        cols = jnp.concatenate([xp[:, t:t + l, :] for t in range(k)], axis=2)
    y = lax.dot_general(cols.reshape(n * l, k * cin), w2d,
                        dimension_numbers=(((1,), (0,)), ((), ())),
                        preferred_element_type=jnp.float32)
    return y.reshape(n, l, cout)


def _tile_valid_rows(n_valid, nt):
    """Number of non-padded batch rows in the current grid tile."""
    return jnp.minimum(jnp.maximum(n_valid - pl.program_id(0) * nt, 0), nt)


def _partial_stats(y, valid_rows):
    """Per-channel (sum, tile-centered sum-of-squares) over valid rows.

    y: (nt, L, C) f32.  Padded batch rows (row >= valid_rows) are masked out.
    Returns (1, 2, C) f32.
    """
    nt, l, _ = y.shape
    row = lax.broadcasted_iota(jnp.int32, (nt, 1, 1), 0)
    m = (row < valid_rows).astype(jnp.float32)
    cnt = (valid_rows * l).astype(jnp.float32)
    ym = y * m
    s = jnp.sum(ym, axis=(0, 1), keepdims=True)          # (1, 1, C)
    mu = s / cnt
    d = (y - mu) * m
    css = jnp.sum(d * d, axis=(0, 1), keepdims=True)     # centered within tile
    return jnp.concatenate([s, css], axis=1)              # (1, 2, C)


# ---------------------------------------------------------------------------
# Pallas kernels (all gridded over batch tiles, "parallel" grid axis)
# ---------------------------------------------------------------------------
def _conv_in_kernel(x_ref, w_ref, ycr_ref, st_ref, *, k, n_valid, nt):
    """Block-1 entry: combined conv1(k) + conv_res(k=1) as one matmul."""
    y = _conv1d_same_im2col(x_ref[...], w_ref[...], k)
    ycr_ref[...] = y.astype(ycr_ref.dtype)
    st_ref[...] = _partial_stats(y, _tile_valid_rows(n_valid, nt))


def _fuse_conv_in_kernel(y3_ref, yr_ref, sc3_ref, sh3_ref, scr_ref, shr_ref,
                         w_ref, ycr_ref, st_ref, *, k, slab_off, c,
                         n_valid, nt):
    """Previous block's relu(bn3(conv3)+bn3(conv_res)) fused into this block's
    combined conv1+conv_res matmul (no block-output HBM round trip)."""
    yr = yr_ref[...]
    if slab_off is not None:
        yr = yr[:, :, slab_off:slab_off + c]
    h = jnp.maximum(
        y3_ref[...].astype(jnp.float32) * sc3_ref[...] + sh3_ref[...]
        + yr.astype(jnp.float32) * scr_ref[...] + shr_ref[...], 0.0)
    y = _conv1d_same_im2col(h.astype(jnp.bfloat16), w_ref[...], k)
    ycr_ref[...] = y.astype(ycr_ref.dtype)
    st_ref[...] = _partial_stats(y, _tile_valid_rows(n_valid, nt))


def _bn_relu_conv_kernel(y_ref, sc_ref, sh_ref, w_ref, yo_ref, st_ref,
                         *, k, slab_off, c, n_valid, nt):
    """relu(BN_prev(y)) folded to one FMA, then the next conv (+BN partials)."""
    y = y_ref[...]
    if slab_off is not None:
        y = y[:, :, slab_off:slab_off + c]
    a = jnp.maximum(y.astype(jnp.float32) * sc_ref[...] + sh_ref[...], 0.0)
    yo = _conv1d_same_im2col(a.astype(jnp.bfloat16), w_ref[...], k)
    yo_ref[...] = yo.astype(yo_ref.dtype)
    st_ref[...] = _partial_stats(yo, _tile_valid_rows(n_valid, nt))


def _head_kernel(y3_ref, yr_ref, sc3_ref, sh3_ref, scr_ref, shr_ref,
                 w_ref, b_ref, out_ref, *, slab_off, c):
    """Block-3 final bn/add/relu fused with mean(channels) + Linear + softmax."""
    yr = yr_ref[...]
    if slab_off is not None:
        yr = yr[:, :, slab_off:slab_off + c]
    h = jnp.maximum(
        y3_ref[...].astype(jnp.float32) * sc3_ref[...] + sh3_ref[...]
        + yr.astype(jnp.float32) * scr_ref[...] + shr_ref[...], 0.0)
    feat = jnp.mean(h, axis=2)                             # (nt, enc_in)
    logits = jnp.dot(feat, w_ref[...],
                     preferred_element_type=jnp.float32) + b_ref[...]
    m = jnp.max(logits, axis=1, keepdims=True)
    e = jnp.exp(logits - m)
    out_ref[...] = (e / jnp.sum(e, axis=1, keepdims=True))[:, None, :]


# ---------------------------------------------------------------------------
# Wrapper helpers
# ---------------------------------------------------------------------------
def _im2col_weight(w):
    """(Cout, Cin, K) torch Conv1d weight -> (K*Cin, Cout) im2col layout, bf16."""
    co, ci, k = w.shape
    return jnp.transpose(w, (2, 1, 0)).reshape(k * ci, co).astype(jnp.bfloat16)


def _combined_in_weight(w1, wr):
    """conv1 (K) and conv_res (1) combined into one (K*Cin, 2*Cout) weight."""
    co, ci, k = w1.shape
    w1_2d = jnp.transpose(w1, (2, 1, 0)).reshape(k * ci, co)
    center = (k - 1) // 2                    # tap aligned with x[t] (left pad)
    wr_2d = jnp.zeros((k * ci, co), w1.dtype)
    wr_2d = wr_2d.at[center * ci:(center + 1) * ci, :].set(
        jnp.transpose(wr[:, :, 0]))
    return jnp.concatenate([w1_2d, wr_2d], axis=1).astype(jnp.bfloat16)


def _bn_scale_shift(partials, counts, gamma, beta):
    """Combine per-tile (sum, centered sumsq) partials -> folded BN FMA.

    Welford-style parallel combination (avoids E[x^2]-E[x]^2 cancellation).
    partials: (gn, 2, C) f32;  counts: (gn,) valid element count per tile.
    """
    counts = counts.astype(jnp.float32)[:, None]
    s = partials[:, 0, :]
    css = partials[:, 1, :]
    total = jnp.sum(counts)
    mean = jnp.sum(s, axis=0) / total
    mu_t = s / counts
    var = (jnp.sum(css, axis=0)
           + jnp.sum(counts * (mu_t - mean) ** 2, axis=0)) / total
    var = jnp.maximum(var, 0.0)
    scale = gamma.astype(jnp.float32) * lax.rsqrt(var + _BN_EPS)
    shift = beta.astype(jnp.float32) - scale * mean
    return scale.reshape(1, 1, -1), shift.reshape(1, 1, -1)


def _vmem_limit_bytes():
    """Generation-aware scoped-VMEM limit (v5e/v6e 128 MiB, v7x 64 MiB)."""
    cap = 64 * 1024 * 1024
    try:
        info = pltpu.get_tpu_info()
        cap = int(getattr(info, "vmem_capacity_bytes", cap))
    except Exception:
        pass
    return min((cap * 3) // 4, 100 * 1024 * 1024)


def _bytes_per_row(l, c_in, c_out, k):
    """Rough per-batch-row VMEM footprint of the heaviest pass."""
    io = 2 * 2 * (3 * c_in + 3 * c_out)          # double-buffered bf16 tile I/O
    work = 2 * k * c_in + 4 * 2 * c_out          # im2col cols (bf16) + f32 result
    return l * (io + work)


def _pick_batch_tile(n, l, c_in_max, c_out_max, k_max, budget):
    bpr = max(1, _bytes_per_row(l, c_in_max, c_out_max, k_max))
    nt = int(max(1, min(n, budget // bpr)))
    if n >= 2:                                   # keep >=2 grid steps (v7x 2 TCs)
        nt = min(nt, pl.cdiv(n, 2))
    gn = pl.cdiv(n, nt)
    return nt, gn, nt * gn


def _act_spec(nt, l, c):
    return pl.BlockSpec((nt, l, c), lambda i: (i, 0, 0))


def _slab_half_spec(nt, l, c_out, half):
    """Spec reading one Cout-half of a (Npad, L, 2*Cout) slab.

    Returns (spec, in-kernel channel offset or None).  When Cout is a
    multiple of 128 the BlockSpec itself selects the half (lane-aligned);
    otherwise the full slab is loaded and sliced inside the kernel.
    """
    if c_out % 128 == 0:
        return pl.BlockSpec((nt, l, c_out), lambda i: (i, 0, half)), None
    return pl.BlockSpec((nt, l, 2 * c_out), lambda i: (i, 0, 0)), half * c_out


def _stats_spec(c):
    return pl.BlockSpec((1, 2, c), lambda i: (i, 0, 0))


def _bcast_spec(shape):
    zeros = (0,) * len(shape)
    return pl.BlockSpec(shape, lambda i: zeros)


# ---------------------------------------------------------------------------
# Full ResNetClassifier forward
# ---------------------------------------------------------------------------
def resnet_classifier(x_ncl, params):
    """x_ncl: (N, seq_len, enc_in) — PyTorch Conv1d layout (N, C=seq_len, L)."""
    n, seq_len, enc_in = x_ncl.shape
    l = enc_in
    num_class = params["fc_w"].shape[0]

    vmem_limit = _vmem_limit_bytes()
    budget = vmem_limit // 3
    nt, gn, n_pad = _pick_batch_tile(n, l, 128, 128, 8, budget)
    counts = jnp.asarray(np.minimum(nt, n - nt * np.arange(gn)) * l,
                         jnp.float32)
    cparams = pltpu.CompilerParams(dimension_semantics=("parallel",),
                                   vmem_limit_bytes=vmem_limit)

    # Single NCL->NLC transpose at entry; channels-last bf16 everywhere after.
    x = jnp.transpose(x_ncl, (0, 2, 1)).astype(jnp.bfloat16)   # (N, enc_in, seq)
    if n_pad != n:
        x = jnp.pad(x, ((0, n_pad - n), (0, 0), (0, 0)))

    blocks = [("layer1", seq_len, 64), ("layer2", 64, 128), ("layer3", 128, 128)]
    carry = None          # (y3, slab, sc3, sh3, scr, shr, c_prev)

    for name, c_in, c_out in blocks:
        p = params[name]
        k1, k2, k3 = p["w1"].shape[2], p["w2"].shape[2], p["w3"].shape[2]
        w_comb = _combined_in_weight(p["w1"], p["wr"])   # (k1*Cin, 2*Cout) bf16
        w2 = _im2col_weight(p["w2"])
        w3 = _im2col_weight(p["w3"])

        slab_shape = jax.ShapeDtypeStruct((n_pad, l, 2 * c_out), jnp.bfloat16)
        st2c_shape = jax.ShapeDtypeStruct((gn, 2, 2 * c_out), jnp.float32)
        slab_specs = (_act_spec(nt, l, 2 * c_out), _stats_spec(2 * c_out))

        # --- Pass 1: (fused prev bn/add/relu) + combined conv1/conv_res ----
        if carry is None:
            slab, st_cr = pl.pallas_call(
                functools.partial(_conv_in_kernel, k=k1, n_valid=n, nt=nt),
                grid=(gn,),
                in_specs=[_act_spec(nt, l, c_in), _bcast_spec(w_comb.shape)],
                out_specs=slab_specs,
                out_shape=(slab_shape, st2c_shape),
                compiler_params=cparams,
            )(x, w_comb)
        else:
            y3p, slabp, sc3p, sh3p, scrp, shrp, c_prev = carry
            spec_r, off_r = _slab_half_spec(nt, l, c_prev, 1)
            slab, st_cr = pl.pallas_call(
                functools.partial(_fuse_conv_in_kernel, k=k1, slab_off=off_r,
                                  c=c_prev, n_valid=n, nt=nt),
                grid=(gn,),
                in_specs=[_act_spec(nt, l, c_prev), spec_r,
                          _bcast_spec(sc3p.shape), _bcast_spec(sh3p.shape),
                          _bcast_spec(scrp.shape), _bcast_spec(shrp.shape),
                          _bcast_spec(w_comb.shape)],
                out_specs=slab_specs,
                out_shape=(slab_shape, st2c_shape),
                compiler_params=cparams,
            )(y3p, slabp, sc3p, sh3p, scrp, shrp, w_comb)

        sc1, sh1 = _bn_scale_shift(st_cr[:, :, :c_out], counts, p["g1"], p["be1"])
        scr, shr = _bn_scale_shift(st_cr[:, :, c_out:], counts, p["g3"], p["be3"])

        act_c = jax.ShapeDtypeStruct((n_pad, l, c_out), jnp.bfloat16)
        st_c = jax.ShapeDtypeStruct((gn, 2, c_out), jnp.float32)

        # --- Pass 2: bn1+relu folded FMA, conv2 ----------------------------
        spec_y1, off_y1 = _slab_half_spec(nt, l, c_out, 0)
        y2, st2 = pl.pallas_call(
            functools.partial(_bn_relu_conv_kernel, k=k2, slab_off=off_y1,
                              c=c_out, n_valid=n, nt=nt),
            grid=(gn,),
            in_specs=[spec_y1, _bcast_spec(sc1.shape), _bcast_spec(sh1.shape),
                      _bcast_spec(w2.shape)],
            out_specs=(_act_spec(nt, l, c_out), _stats_spec(c_out)),
            out_shape=(act_c, st_c),
            compiler_params=cparams,
        )(slab, sc1, sh1, w2)
        sc2, sh2 = _bn_scale_shift(st2, counts, p["g2"], p["be2"])

        # --- Pass 3: bn2+relu folded FMA, conv3 ----------------------------
        y3, st3 = pl.pallas_call(
            functools.partial(_bn_relu_conv_kernel, k=k3, slab_off=None,
                              c=c_out, n_valid=n, nt=nt),
            grid=(gn,),
            in_specs=[_act_spec(nt, l, c_out), _bcast_spec(sc2.shape),
                      _bcast_spec(sh2.shape), _bcast_spec(w3.shape)],
            out_specs=(_act_spec(nt, l, c_out), _stats_spec(c_out)),
            out_shape=(act_c, st_c),
            compiler_params=cparams,
        )(y2, sc2, sh2, w3)
        sc3, sh3 = _bn_scale_shift(st3, counts, p["g3"], p["be3"])

        carry = (y3, slab, sc3, sh3, scr, shr, c_out)

    # --- Head: block-3 bn/add/relu fused with mean + Linear + softmax ------
    y3, slab, sc3, sh3, scr, shr, c_out = carry
    spec_r, off_r = _slab_half_spec(nt, l, c_out, 1)
    w_fc = jnp.transpose(params["fc_w"]).astype(jnp.float32)   # (enc_in, nclass)
    b_fc = params["fc_b"].reshape(1, -1).astype(jnp.float32)
    out = pl.pallas_call(
        functools.partial(_head_kernel, slab_off=off_r, c=c_out),
        grid=(gn,),
        in_specs=[_act_spec(nt, l, c_out), spec_r,
                  _bcast_spec(sc3.shape), _bcast_spec(sh3.shape),
                  _bcast_spec(scr.shape), _bcast_spec(shr.shape),
                  _bcast_spec(w_fc.shape), _bcast_spec(b_fc.shape)],
        out_specs=pl.BlockSpec((nt, 1, num_class), lambda i: (i, 0, 0)),
        out_shape=jax.ShapeDtypeStruct((n_pad, 1, num_class), jnp.float32),
        compiler_params=cparams,
    )(y3, slab, sc3, sh3, scr, shr, w_fc, b_fc)
    return out[:n, 0, :]


# ---------------------------------------------------------------------------
# Pure-JAX reference (independent: lax.conv in NCL, biases included, f32)
# ---------------------------------------------------------------------------
def _ref_conv(x, w, b):
    k = w.shape[-1]
    left = (k - 1) // 2
    right = (k - 1) - left
    y = lax.conv_general_dilated(x, w, (1,), [(left, right)],
                                 dimension_numbers=("NCW", "OIW", "NCW"))
    return y + b[None, :, None]


def _ref_bn(x, g, b):
    mean = jnp.mean(x, axis=(0, 2), keepdims=True)
    var = jnp.mean((x - mean) ** 2, axis=(0, 2), keepdims=True)
    return g[None, :, None] * (x - mean) * lax.rsqrt(var + _BN_EPS) + b[None, :, None]


def res_block_ref(x, p):
    x1 = jax.nn.relu(_ref_bn(_ref_conv(x, p["w1"], p["b1"]), p["g1"], p["be1"]))
    x2 = jax.nn.relu(_ref_bn(_ref_conv(x1, p["w2"], p["b2"]), p["g2"], p["be2"]))
    x3 = _ref_bn(_ref_conv(x2, p["w3"], p["b3"]), p["g3"], p["be3"])
    xr = _ref_bn(_ref_conv(x, p["wr"], p["br"]), p["g3"], p["be3"])
    return jax.nn.relu(x3 + xr)


def resnet_classifier_ref(x, params):
    x = res_block_ref(x, params["layer1"])
    x = res_block_ref(x, params["layer2"])
    x = res_block_ref(x, params["layer3"])
    feat = jnp.mean(x, axis=1)
    logits = feat @ params["fc_w"].T + params["fc_b"]
    return jax.nn.softmax(logits, axis=1)


# ---------------------------------------------------------------------------
# Demo / correctness check
# ---------------------------------------------------------------------------
def _init_block_params(key, c_in, c_out):
    ks = jax.random.split(key, 14)
    nrm = lambda k, shape, s: s * jax.random.normal(k, shape, jnp.float32)
    return {
        "w1": nrm(ks[0], (c_out, c_in, 8), 0.2),
        "b1": nrm(ks[1], (c_out,), 0.1),
        "g1": 1.0 + nrm(ks[2], (c_out,), 0.1),
        "be1": nrm(ks[3], (c_out,), 0.1),
        "w2": nrm(ks[4], (c_out, c_out, 5), 0.2),
        "b2": nrm(ks[5], (c_out,), 0.1),
        "g2": 1.0 + nrm(ks[6], (c_out,), 0.1),
        "be2": nrm(ks[7], (c_out,), 0.1),
        "w3": nrm(ks[8], (c_out, c_out, 3), 0.2),
        "b3": nrm(ks[9], (c_out,), 0.1),
        "g3": 1.0 + nrm(ks[10], (c_out,), 0.1),
        "be3": nrm(ks[11], (c_out,), 0.1),
        "wr": nrm(ks[12], (c_out, c_in, 1), 0.2),
        "br": nrm(ks[13], (c_out,), 0.1),
    }


if __name__ == "__main__":
    # x is (batch, seq_len, enc_in); ResBlock widths 64/128/128 are fixed by
    # the model architecture.
    N, SEQ_LEN, ENC_IN, NUM_CLASS = 2, 8, 16, 4

    kb1, kb2, kb3, kfc, kfb, kx = jax.random.split(jax.random.PRNGKey(0), 6)
    params = {
        "layer1": _init_block_params(kb1, SEQ_LEN, 64),
        "layer2": _init_block_params(kb2, 64, 128),
        "layer3": _init_block_params(kb3, 128, 128),
        "fc_w": 0.2 * jax.random.normal(kfc, (NUM_CLASS, ENC_IN), jnp.float32),
        "fc_b": 0.1 * jax.random.normal(kfb, (NUM_CLASS,), jnp.float32),
    }
    x = jax.random.normal(kx, (N, SEQ_LEN, ENC_IN), jnp.float32)  # torch NCL

    out = jax.block_until_ready(jax.jit(resnet_classifier)(x, params))
    ref = jax.block_until_ready(resnet_classifier_ref(x, params))

    assert out.shape == (N, NUM_CLASS)
    np.testing.assert_allclose(np.asarray(jnp.sum(out, axis=1)),
                               np.ones(N, np.float32), rtol=1e-5, atol=1e-5)
    # bf16 activation storage through 9 convs -> loose but meaningful tolerance.
    np.testing.assert_allclose(np.asarray(out), np.asarray(ref),
                               rtol=5e-2, atol=3e-2)
    print("KERNEL_OK")
</pallas_src>

<mosaic_0001>
module attributes {stable_mosaic.version = 11 : i64} {
  func.func @_conv_in_kernel(%arg0: i32, %arg1: memref<1x16x8xbf16, #tpu.memory_space<vmem>>, %arg2: memref<64x128xbf16, #tpu.memory_space<vmem>>, %arg3: memref<1x16x128xbf16, #tpu.memory_space<vmem>>, %arg4: memref<1x2x128xf32, #tpu.memory_space<vmem>>) attributes {dimension_semantics = [#tpu.dimension_semantics<parallel>], iteration_bounds = array<i64: 2>, scalar_prefetch = 0 : i64, scratch_operands = 0 : i64, tpu.core_type = #tpu.core_type<tc>, window_params = [{transform_indices = @transform_0, window_bounds = array<i64: 1, 16, 8>}, {pipeline_mode = #tpu.pipeline_mode<synchronous>, transform_indices = @transform_1, window_bounds = array<i64: 64, 128>}, {transform_indices = @transform_2, window_bounds = array<i64: 1, 16, 128>}, {transform_indices = @transform_3, window_bounds = array<i64: 1, 2, 128>}]} {
    %c0 = arith.constant 0 : index
    %c0_0 = arith.constant 0 : index
    %c0_1 = arith.constant 0 : index
    %0 = vector.load %arg1[%c0, %c0_0, %c0_1] : memref<1x16x8xbf16, #tpu.memory_space<vmem>>, vector<1x16x8xbf16>
    %c0_2 = arith.constant 0 : index
    %c0_3 = arith.constant 0 : index
    %1 = vector.load %arg2[%c0_2, %c0_3] : memref<64x128xbf16, #tpu.memory_space<vmem>>, vector<64x128xbf16>
    %cst = arith.constant 0.000000e+00 : bf16
    %2 = vector.broadcast %cst : bf16 to vector<1x3x8xbf16>
    %cst_4 = arith.constant 0.000000e+00 : bf16
    %3 = vector.broadcast %cst_4 : bf16 to vector<1x4x8xbf16>
    %4 = tpu.concatenate %2, %0, %3 in 1 : vector<1x3x8xbf16>, vector<1x16x8xbf16>, vector<1x4x8xbf16> -> vector<1x23x8xbf16>
    %5 = vector.extract_strided_slice %4 {offsets = [0, 0, 0], sizes = [1, 16, 8], strides = [1, 1, 1]} : vector<1x23x8xbf16> to vector<1x16x8xbf16>
    %6 = vector.extract_strided_slice %4 {offsets = [0, 1, 0], sizes = [1, 16, 8], strides = [1, 1, 1]} : vector<1x23x8xbf16> to vector<1x16x8xbf16>
    %7 = vector.extract_strided_slice %4 {offsets = [0, 2, 0], sizes = [1, 16, 8], strides = [1, 1, 1]} : vector<1x23x8xbf16> to vector<1x16x8xbf16>
    %8 = vector.extract_strided_slice %4 {offsets = [0, 3, 0], sizes = [1, 16, 8], strides = [1, 1, 1]} : vector<1x23x8xbf16> to vector<1x16x8xbf16>
    %9 = vector.extract_strided_slice %4 {offsets = [0, 4, 0], sizes = [1, 16, 8], strides = [1, 1, 1]} : vector<1x23x8xbf16> to vector<1x16x8xbf16>
    %10 = vector.extract_strided_slice %4 {offsets = [0, 5, 0], sizes = [1, 16, 8], strides = [1, 1, 1]} : vector<1x23x8xbf16> to vector<1x16x8xbf16>
    %11 = vector.extract_strided_slice %4 {offsets = [0, 6, 0], sizes = [1, 16, 8], strides = [1, 1, 1]} : vector<1x23x8xbf16> to vector<1x16x8xbf16>
    %12 = vector.extract_strided_slice %4 {offsets = [0, 7, 0], sizes = [1, 16, 8], strides = [1, 1, 1]} : vector<1x23x8xbf16> to vector<1x16x8xbf16>
    %13 = tpu.concatenate %5, %6, %7, %8, %9, %10, %11, %12 in 2 : vector<1x16x8xbf16>, vector<1x16x8xbf16>, vector<1x16x8xbf16>, vector<1x16x8xbf16>, vector<1x16x8xbf16>, vector<1x16x8xbf16>, vector<1x16x8xbf16>, vector<1x16x8xbf16> -> vector<1x16x64xbf16>
    %14 = vector.shape_cast %13 : vector<1x16x64xbf16> to vector<16x64xbf16>
    %cst_5 = arith.constant dense<0.000000e+00> : vector<16x128xf32>
    %15 = tpu.matmul %14, %1, %cst_5 {dimension_numbers = #tpu.dot_dimension_numbers<[1], [0], [0], [1], [0, 0, 1, 1], [], []>} : vector<16x64xbf16>, vector<64x128xbf16>, vector<16x128xf32> -> vector<16x128xf32>
    %16 = vector.shape_cast %15 : vector<16x128xf32> to vector<1x16x128xf32>
    %17 = arith.truncf %16 : vector<1x16x128xf32> to vector<1x16x128xbf16>
    %c0_6 = arith.constant 0 : index
    %c0_7 = arith.constant 0 : index
    %c0_8 = arith.constant 0 : index
    %18 = vector.load %arg3[%c0_6, %c0_7, %c0_8] : memref<1x16x128xbf16, #tpu.memory_space<vmem>>, vector<1x16x128xbf16>
    tpu.vector_store %arg3[%c0_6, %c0_7, %c0_8], %17 {strides = array<i32>} : memref<1x16x128xbf16, #tpu.memory_space<vmem>>, vector<1x16x128xbf16>,
    %c1_i32 = arith.constant 1 : i32
    %19 = arith.muli %arg0, %c1_i32 : i32
    %c2_i32 = arith.constant 2 : i32
    %20 = arith.subi %c2_i32, %19 : i32
    %c0_i32 = arith.constant 0 : i32
    %21 = arith.maxsi %20, %c0_i32 : i32
    %c1_i32_9 = arith.constant 1 : i32
    %22 = arith.minsi %21, %c1_i32_9 : i32
    %23 = tpu.iota {dimensions = array<i32: 0>} : vector<1x1x1xi32>
    %24 = vector.broadcast %22 : i32 to vector<1x1x1xi32>
    %25 = arith.cmpi slt, %23, %24 : vector<1x1x1xi32>
    %26 = arith.extui %25 : vector<1x1x1xi1> to vector<1x1x1xi32>
    %27 = arith.sitofp %26 : vector<1x1x1xi32> to vector<1x1x1xf32>
    %c16_i32 = arith.constant 16 : i32
    %28 = arith.muli %22, %c16_i32 : i32
    %29 = arith.sitofp %28 : i32 to f32
    %30 = vector.broadcast %27 : vector<1x1x1xf32> to vector<1x16x128xf32>
    %31 = arith.mulf %16, %30 : vector<1x16x128xf32>
    %cst_10 = arith.constant dense<0.000000e+00> : vector<128xf32>
    %32 = vector.multi_reduction <add>, %31, %cst_10 [0, 1] : vector<1x16x128xf32> to vector<128xf32>
    %33 = vector.shape_cast %32 : vector<128xf32> to vector<1x1x128xf32>
    %34 = vector.broadcast %29 : f32 to vector<1x1x128xf32>
    %35 = arith.divf %33, %34 : vector<1x1x128xf32>
    %36 = vector.broadcast %35 : vector<1x1x128xf32> to vector<1x16x128xf32>
    %37 = arith.subf %16, %36 : vector<1x16x128xf32>
    %38 = vector.broadcast %27 : vector<1x1x1xf32> to vector<1x16x128xf32>
    %39 = arith.mulf %37, %38 : vector<1x16x128xf32>
    %40 = arith.mulf %39, %39 : vector<1x16x128xf32>
    %cst_11 = arith.constant dense<0.000000e+00> : vector<128xf32>
    %41 = vector.multi_reduction <add>, %40, %cst_11 [0, 1] : vector<1x16x128xf32> to vector<128xf32>
    %42 = vector.shape_cast %41 : vector<128xf32> to vector<1x1x128xf32>
    %43 = tpu.concatenate %33, %42 in 1 : vector<1x1x128xf32>, vector<1x1x128xf32> -> vector<1x2x128xf32>
    %c0_12 = arith.constant 0 : index
    %c0_13 = arith.constant 0 : index
    %c0_14 = arith.constant 0 : index
    %44 = vector.load %arg4[%c0_12, %c0_13, %c0_14] : memref<1x2x128xf32, #tpu.memory_space<vmem>>, vector<1x2x128xf32>
    tpu.vector_store %arg4[%c0_12, %c0_13, %c0_14], %43 {strides = array<i32>} : memref<1x2x128xf32, #tpu.memory_space<vmem>>, vector<1x2x128xf32>,
    return
  }
  func.func @transform_0(%arg0: i32) -> (i32, i32, i32) {
    %c0_i32 = arith.constant 0 : i32
    %c0_i32_0 = arith.constant 0 : i32
    %c0_i32_1 = arith.constant 0 : i32
    return %arg0, %c0_i32, %c0_i32_0 : i32, i32, i32
  }
  func.func @transform_1(%arg0: i32) -> (i32, i32) {
    %c0_i32 = arith.constant 0 : i32
    %c0_i32_0 = arith.constant 0 : i32
    %c0_i32_1 = arith.constant 0 : i32
    return %c0_i32, %c0_i32_0 : i32, i32
  }
  func.func @transform_2(%arg0: i32) -> (i32, i32, i32) {
    %c0_i32 = arith.constant 0 : i32
    %c0_i32_0 = arith.constant 0 : i32
    %c0_i32_1 = arith.constant 0 : i32
    return %arg0, %c0_i32, %c0_i32_0 : i32, i32, i32
  }
  func.func @transform_3(%arg0: i32) -> (i32, i32, i32) {
    %c0_i32 = arith.constant 0 : i32
    %c0_i32_0 = arith.constant 0 : i32
    %c0_i32_1 = arith.constant 0 : i32
    return %arg0, %c0_i32, %c0_i32_0 : i32, i32, i32
  }
}

module attributes {stable_mosaic.version = 11 : i64} {
  func.func @_bn_relu_conv_kernel(%arg0: i32, %arg1: memref<1x16x128xbf16, #tpu.memory_space<vmem>>, %arg2: memref<1x1x64xf32, #tpu.memory_space<vmem>>, %arg3: memref<1x1x64xf32, #tpu.memory_space<vmem>>, %arg4: memref<320x64xbf16, #tpu.memory_space<vmem>>, %arg5: memref<1x16x64xbf16, #tpu.memory_space<vmem>>, %arg6: memref<1x2x64xf32, #tpu.memory_space<vmem>>) attributes {dimension_semantics = [#tpu.dimension_semantics<parallel>], iteration_bounds = array<i64: 2>, scalar_prefetch = 0 : i64, scratch_operands = 0 : i64, tpu.core_type = #tpu.core_type<tc>, window_params = [{transform_indices = @transform_0, window_bounds = array<i64: 1, 16, 128>}, {pipeline_mode = #tpu.pipeline_mode<synchronous>, transform_indices = @transform_1, window_bounds = array<i64: 1, 1, 64>}, {pipeline_mode = #tpu.pipeline_mode<synchronous>, transform_indices = @transform_2, window_bounds = array<i64: 1, 1, 64>}, {pipeline_mode = #tpu.pipeline_mode<synchronous>, transform_indices = @transform_3, window_bounds = array<i64: 320, 64>}, {transform_indices = @transform_4, window_bounds = array<i64: 1, 16, 64>}, {transform_indices = @transform_5, window_bounds = array<i64: 1, 2, 64>}]} {
    %c0 = arith.constant 0 : index
    %c0_0 = arith.constant 0 : index
    %c0_1 = arith.constant 0 : index
    %0 = vector.load %arg1[%c0, %c0_0, %c0_1] : memref<1x16x128xbf16, #tpu.memory_space<vmem>>, vector<1x16x128xbf16>
    %1 = vector.extract_strided_slice %0 {offsets = [0, 0, 0], sizes = [1, 16, 64], strides = [1, 1, 1]} : vector<1x16x128xbf16> to vector<1x16x64xbf16>
    %2 = arith.extf %1 : vector<1x16x64xbf16> to vector<1x16x64xf32>
    %c0_2 = arith.constant 0 : index
    %c0_3 = arith.constant 0 : index
    %c0_4 = arith.constant 0 : index
    %3 = vector.load %arg2[%c0_2, %c0_3, %c0_4] : memref<1x1x64xf32, #tpu.memory_space<vmem>>, vector<1x1x64xf32>
    %4 = vector.broadcast %3 : vector<1x1x64xf32> to vector<1x16x64xf32>
    %5 = arith.mulf %2, %4 : vector<1x16x64xf32>
    %c0_5 = arith.constant 0 : index
    %c0_6 = arith.constant 0 : index
    %c0_7 = arith.constant 0 : index
    %6 = vector.load %arg3[%c0_5, %c0_6, %c0_7] : memref<1x1x64xf32, #tpu.memory_space<vmem>>, vector<1x1x64xf32>
    %7 = vector.broadcast %6 : vector<1x1x64xf32> to vector<1x16x64xf32>
    %8 = arith.addf %5, %7 : vector<1x16x64xf32>
    %cst = arith.constant 0.000000e+00 : f32
    %9 = vector.broadcast %cst : f32 to vector<1x16x64xf32>
    %10 = arith.maximumf %8, %9 : vector<1x16x64xf32>
    %11 = arith.truncf %10 : vector<1x16x64xf32> to vector<1x16x64xbf16>
    %c0_8 = arith.constant 0 : index
    %c0_9 = arith.constant 0 : index
    %12 = vector.load %arg4[%c0_8, %c0_9] : memref<320x64xbf16, #tpu.memory_space<vmem>>, vector<320x64xbf16>
    %cst_10 = arith.constant 0.000000e+00 : bf16
    %13 = vector.broadcast %cst_10 : bf16 to vector<1x2x64xbf16>
    %cst_11 = arith.constant 0.000000e+00 : bf16
    %14 = vector.broadcast %cst_11 : bf16 to vector<1x2x64xbf16>
    %15 = tpu.concatenate %13, %11, %14 in 1 : vector<1x2x64xbf16>, vector<1x16x64xbf16>, vector<1x2x64xbf16> -> vector<1x20x64xbf16>
    %16 = vector.extract_strided_slice %15 {offsets = [0, 0, 0], sizes = [1, 16, 64], strides = [1, 1, 1]} : vector<1x20x64xbf16> to vector<1x16x64xbf16>
    %17 = vector.extract_strided_slice %15 {offsets = [0, 1, 0], sizes = [1, 16, 64], strides = [1, 1, 1]} : vector<1x20x64xbf16> to vector<1x16x64xbf16>
    %18 = vector.extract_strided_slice %15 {offsets = [0, 2, 0], sizes = [1, 16, 64], strides = [1, 1, 1]} : vector<1x20x64xbf16> to vector<1x16x64xbf16>
    %19 = vector.extract_strided_slice %15 {offsets = [0, 3, 0], sizes = [1, 16, 64], strides = [1, 1, 1]} : vector<1x20x64xbf16> to vector<1x16x64xbf16>
    %20 = vector.extract_strided_slice %15 {offsets = [0, 4, 0], sizes = [1, 16, 64], strides = [1, 1, 1]} : vector<1x20x64xbf16> to vector<1x16x64xbf16>
    %21 = tpu.concatenate %16, %17, %18, %19, %20 in 2 : vector<1x16x64xbf16>, vector<1x16x64xbf16>, vector<1x16x64xbf16>, vector<1x16x64xbf16>, vector<1x16x64xbf16> -> vector<1x16x320xbf16>
    %22 = vector.shape_cast %21 : vector<1x16x320xbf16> to vector<16x320xbf16>
    %cst_12 = arith.constant dense<0.000000e+00> : vector<16x64xf32>
    %23 = tpu.matmul %22, %12, %cst_12 {dimension_numbers = #tpu.dot_dimension_numbers<[1], [0], [0], [1], [0, 0, 1, 1], [], []>} : vector<16x320xbf16>, vector<320x64xbf16>, vector<16x64xf32> -> vector<16x64xf32>
    %24 = vector.shape_cast %23 : vector<16x64xf32> to vector<1x16x64xf32>
    %25 = arith.truncf %24 : vector<1x16x64xf32> to vector<1x16x64xbf16>
    %c0_13 = arith.constant 0 : index
    %c0_14 = arith.constant 0 : index
    %c0_15 = arith.constant 0 : index
    %26 = vector.load %arg5[%c0_13, %c0_14, %c0_15] : memref<1x16x64xbf16, #tpu.memory_space<vmem>>, vector<1x16x64xbf16>
    tpu.vector_store %arg5[%c0_13, %c0_14, %c0_15], %25 {strides = array<i32>} : memref<1x16x64xbf16, #tpu.memory_space<vmem>>, vector<1x16x64xbf16>,
    %c1_i32 = arith.constant 1 : i32
    %27 = arith.muli %arg0, %c1_i32 : i32
    %c2_i32 = arith.constant 2 : i32
    %28 = arith.subi %c2_i32, %27 : i32
    %c0_i32 = arith.constant 0 : i32
    %29 = arith.maxsi %28, %c0_i32 : i32
    %c1_i32_16 = arith.constant 1 : i32
    %30 = arith.minsi %29, %c1_i32_16 : i32
    %31 = tpu.iota {dimensions = array<i32: 0>} : vector<1x1x1xi32>
    %32 = vector.broadcast %30 : i32 to vector<1x1x1xi32>
    %33 = arith.cmpi slt, %31, %32 : vector<1x1x1xi32>
    %34 = arith.extui %33 : vector<1x1x1xi1> to vector<1x1x1xi32>
    %35 = arith.sitofp %34 : vector<1x1x1xi32> to vector<1x1x1xf32>
    %c16_i32 = arith.constant 16 : i32
    %36 = arith.muli %30, %c16_i32 : i32
    %37 = arith.sitofp %36 : i32 to f32
    %38 = vector.broadcast %35 : vector<1x1x1xf32> to vector<1x16x64xf32>
    %39 = arith.mulf %24, %38 : vector<1x16x64xf32>
    %cst_17 = arith.constant dense<0.000000e+00> : vector<64xf32>
    %40 = vector.multi_reduction <add>, %39, %cst_17 [0, 1] : vector<1x16x64xf32> to vector<64xf32>
    %41 = vector.shape_cast %40 : vector<64xf32> to vector<1x1x64xf32>
    %42 = vector.broadcast %37 : f32 to vector<1x1x64xf32>
    %43 = arith.divf %41, %42 : vector<1x1x64xf32>
    %44 = vector.broadcast %43 : vector<1x1x64xf32> to vector<1x16x64xf32>
    %45 = arith.subf %24, %44 : vector<1x16x64xf32>
    %46 = vector.broadcast %35 : vector<1x1x1xf32> to vector<1x16x64xf32>
    %47 = arith.mulf %45, %46 : vector<1x16x64xf32>
    %48 = arith.mulf %47, %47 : vector<1x16x64xf32>
    %cst_18 = arith.constant dense<0.000000e+00> : vector<64xf32>
    %49 = vector.multi_reduction <add>, %48, %cst_18 [0, 1] : vector<1x16x64xf32> to vector<64xf32>
    %50 = vector.shape_cast %49 : vector<64xf32> to vector<1x1x64xf32>
    %51 = tpu.concatenate %41, %50 in 1 : vector<1x1x64xf32>, vector<1x1x64xf32> -> vector<1x2x64xf32>
    %c0_19 = arith.constant 0 : index
    %c0_20 = arith.constant 0 : index
    %c0_21 = arith.constant 0 : index
    %52 = vector.load %arg6[%c0_19, %c0_20, %c0_21] : memref<1x2x64xf32, #tpu.memory_space<vmem>>, vector<1x2x64xf32>
    tpu.vector_store %arg6[%c0_19, %c0_20, %c0_21], %51 {strides = array<i32>} : memref<1x2x64xf32, #tpu.memory_space<vmem>>, vector<1x2x64xf32>,
    return
  }
  func.func @transform_0(%arg0: i32) -> (i32, i32, i32) {
    %c0_i32 = arith.constant 0 : i32
    %c0_i32_0 = arith.constant 0 : i32
    %c0_i32_1 = arith.constant 0 : i32
    return %arg0, %c0_i32, %c0_i32_0 : i32, i32, i32
  }
  func.func @transform_1(%arg0: i32) -> (i32, i32, i32) {
    %c0_i32 = arith.constant 0 : i32
    %c0_i32_0 = arith.constant 0 : i32
    %c0_i32_1 = arith.constant 0 : i32
    %c0_i32_2 = arith.constant 0 : i32
    return %c0_i32, %c0_i32_0, %c0_i32_1 : i32, i32, i32
  }
  func.func @transform_2(%arg0: i32) -> (i32, i32, i32) {
    %c0_i32 = arith.constant 0 : i32
    %c0_i32_0 = arith.constant 0 : i32
    %c0_i32_1 = arith.constant 0 : i32
    %c0_i32_2 = arith.constant 0 : i32
    return %c0_i32, %c0_i32_0, %c0_i32_1 : i32, i32, i32
  }
  func.func @transform_3(%arg0: i32) -> (i32, i32) {
    %c0_i32 = arith.constant 0 : i32
    %c0_i32_0 = arith.constant 0 : i32
    %c0_i32_1 = arith.constant 0 : i32
    return %c0_i32, %c0_i32_0 : i32, i32
  }
  func.func @transform_4(%arg0: i32) -> (i32, i32, i32) {
    %c0_i32 = arith.constant 0 : i32
    %c0_i32_0 = arith.constant 0 : i32
    %c0_i32_1 = arith.constant 0 : i32
    return %arg0, %c0_i32, %c0_i32_0 : i32, i32, i32
  }
  func.func @transform_5(%arg0: i32) -> (i32, i32, i32) {
    %c0_i32 = arith.constant 0 : i32
    %c0_i32_0 = arith.constant 0 : i32
    %c0_i32_1 = arith.constant 0 : i32
    return %arg0, %c0_i32, %c0_i32_0 : i32, i32, i32
  }
}

module attributes {stable_mosaic.version = 11 : i64} {
  func.func @_bn_relu_conv_kernel(%arg0: i32, %arg1: memref<1x16x64xbf16, #tpu.memory_space<vmem>>, %arg2: memref<1x1x64xf32, #tpu.memory_space<vmem>>, %arg3: memref<1x1x64xf32, #tpu.memory_space<vmem>>, %arg4: memref<192x64xbf16, #tpu.memory_space<vmem>>, %arg5: memref<1x16x64xbf16, #tpu.memory_space<vmem>>, %arg6: memref<1x2x64xf32, #tpu.memory_space<vmem>>) attributes {dimension_semantics = [#tpu.dimension_semantics<parallel>], iteration_bounds = array<i64: 2>, scalar_prefetch = 0 : i64, scratch_operands = 0 : i64, tpu.core_type = #tpu.core_type<tc>, window_params = [{transform_indices = @transform_0, window_bounds = array<i64: 1, 16, 64>}, {pipeline_mode = #tpu.pipeline_mode<synchronous>, transform_indices = @transform_1, window_bounds = array<i64: 1, 1, 64>}, {pipeline_mode = #tpu.pipeline_mode<synchronous>, transform_indices = @transform_2, window_bounds = array<i64: 1, 1, 64>}, {pipeline_mode = #tpu.pipeline_mode<synchronous>, transform_indices = @transform_3, window_bounds = array<i64: 192, 64>}, {transform_indices = @transform_4, window_bounds = array<i64: 1, 16, 64>}, {transform_indices = @transform_5, window_bounds = array<i64: 1, 2, 64>}]} {
    %c0 = arith.constant 0 : index
    %c0_0 = arith.constant 0 : index
    %c0_1 = arith.constant 0 : index
    %0 = vector.load %arg1[%c0, %c0_0, %c0_1] : memref<1x16x64xbf16, #tpu.memory_space<vmem>>, vector<1x16x64xbf16>
    %1 = arith.extf %0 : vector<1x16x64xbf16> to vector<1x16x64xf32>
    %c0_2 = arith.constant 0 : index
    %c0_3 = arith.constant 0 : index
    %c0_4 = arith.constant 0 : index
    %2 = vector.load %arg2[%c0_2, %c0_3, %c0_4] : memref<1x1x64xf32, #tpu.memory_space<vmem>>, vector<1x1x64xf32>
    %3 = vector.broadcast %2 : vector<1x1x64xf32> to vector<1x16x64xf32>
    %4 = arith.mulf %1, %3 : vector<1x16x64xf32>
    %c0_5 = arith.constant 0 : index
    %c0_6 = arith.constant 0 : index
    %c0_7 = arith.constant 0 : index
    %5 = vector.load %arg3[%c0_5, %c0_6, %c0_7] : memref<1x1x64xf32, #tpu.memory_space<vmem>>, vector<1x1x64xf32>
    %6 = vector.broadcast %5 : vector<1x1x64xf32> to vector<1x16x64xf32>
    %7 = arith.addf %4, %6 : vector<1x16x64xf32>
    %cst = arith.constant 0.000000e+00 : f32
    %8 = vector.broadcast %cst : f32 to vector<1x16x64xf32>
    %9 = arith.maximumf %7, %8 : vector<1x16x64xf32>
    %10 = arith.truncf %9 : vector<1x16x64xf32> to vector<1x16x64xbf16>
    %c0_8 = arith.constant 0 : index
    %c0_9 = arith.constant 0 : index
    %11 = vector.load %arg4[%c0_8, %c0_9] : memref<192x64xbf16, #tpu.memory_space<vmem>>, vector<192x64xbf16>
    %cst_10 = arith.constant 0.000000e+00 : bf16
    %12 = vector.broadcast %cst_10 : bf16 to vector<1x1x64xbf16>
    %cst_11 = arith.constant 0.000000e+00 : bf16
    %13 = vector.broadcast %cst_11 : bf16 to vector<1x1x64xbf16>
    %14 = tpu.concatenate %12, %10, %13 in 1 : vector<1x1x64xbf16>, vector<1x16x64xbf16>, vector<1x1x64xbf16> -> vector<1x18x64xbf16>
    %15 = vector.extract_strided_slice %14 {offsets = [0, 0, 0], sizes = [1, 16, 64], strides = [1, 1, 1]} : vector<1x18x64xbf16> to vector<1x16x64xbf16>
    %16 = vector.extract_strided_slice %14 {offsets = [0, 1, 0], sizes = [1, 16, 64], strides = [1, 1, 1]} : vector<1x18x64xbf16> to vector<1x16x64xbf16>
    %17 = vector.extract_strided_slice %14 {offsets = [0, 2, 0], sizes = [1, 16, 64], strides = [1, 1, 1]} : vector<1x18x64xbf16> to vector<1x16x64xbf16>
    %18 = tpu.concatenate %15, %16, %17 in 2 : vector<1x16x64xbf16>, vector<1x16x64xbf16>, vector<1x16x64xbf16> -> vector<1x16x192xbf16>
    %19 = vector.shape_cast %18 : vector<1x16x192xbf16> to vector<16x192xbf16>
    %cst_12 = arith.constant dense<0.000000e+00> : vector<16x64xf32>
    %20 = tpu.matmul %19, %11, %cst_12 {dimension_numbers = #tpu.dot_dimension_numbers<[1], [0], [0], [1], [0, 0, 1, 1], [], []>} : vector<16x192xbf16>, vector<192x64xbf16>, vector<16x64xf32> -> vector<16x64xf32>
    %21 = vector.shape_cast %20 : vector<16x64xf32> to vector<1x16x64xf32>
    %22 = arith.truncf %21 : vector<1x16x64xf32> to vector<1x16x64xbf16>
    %c0_13 = arith.constant 0 : index
    %c0_14 = arith.constant 0 : index
    %c0_15 = arith.constant 0 : index
    %23 = vector.load %arg5[%c0_13, %c0_14, %c0_15] : memref<1x16x64xbf16, #tpu.memory_space<vmem>>, vector<1x16x64xbf16>
    tpu.vector_store %arg5[%c0_13, %c0_14, %c0_15], %22 {strides = array<i32>} : memref<1x16x64xbf16, #tpu.memory_space<vmem>>, vector<1x16x64xbf16>,
    %c1_i32 = arith.constant 1 : i32
    %24 = arith.muli %arg0, %c1_i32 : i32
    %c2_i32 = arith.constant 2 : i32
    %25 = arith.subi %c2_i32, %24 : i32
    %c0_i32 = arith.constant 0 : i32
    %26 = arith.maxsi %25, %c0_i32 : i32
    %c1_i32_16 = arith.constant 1 : i32
    %27 = arith.minsi %26, %c1_i32_16 : i32
    %28 = tpu.iota {dimensions = array<i32: 0>} : vector<1x1x1xi32>
    %29 = vector.broadcast %27 : i32 to vector<1x1x1xi32>
    %30 = arith.cmpi slt, %28, %29 : vector<1x1x1xi32>
    %31 = arith.extui %30 : vector<1x1x1xi1> to vector<1x1x1xi32>
    %32 = arith.sitofp %31 : vector<1x1x1xi32> to vector<1x1x1xf32>
    %c16_i32 = arith.constant 16 : i32
    %33 = arith.muli %27, %c16_i32 : i32
    %34 = arith.sitofp %33 : i32 to f32
    %35 = vector.broadcast %32 : vector<1x1x1xf32> to vector<1x16x64xf32>
    %36 = arith.mulf %21, %35 : vector<1x16x64xf32>
    %cst_17 = arith.constant dense<0.000000e+00> : vector<64xf32>
    %37 = vector.multi_reduction <add>, %36, %cst_17 [0, 1] : vector<1x16x64xf32> to vector<64xf32>
    %38 = vector.shape_cast %37 : vector<64xf32> to vector<1x1x64xf32>
    %39 = vector.broadcast %34 : f32 to vector<1x1x64xf32>
    %40 = arith.divf %38, %39 : vector<1x1x64xf32>
    %41 = vector.broadcast %40 : vector<1x1x64xf32> to vector<1x16x64xf32>
    %42 = arith.subf %21, %41 : vector<1x16x64xf32>
    %43 = vector.broadcast %32 : vector<1x1x1xf32> to vector<1x16x64xf32>
    %44 = arith.mulf %42, %43 : vector<1x16x64xf32>
    %45 = arith.mulf %44, %44 : vector<1x16x64xf32>
    %cst_18 = arith.constant dense<0.000000e+00> : vector<64xf32>
    %46 = vector.multi_reduction <add>, %45, %cst_18 [0, 1] : vector<1x16x64xf32> to vector<64xf32>
    %47 = vector.shape_cast %46 : vector<64xf32> to vector<1x1x64xf32>
    %48 = tpu.concatenate %38, %47 in 1 : vector<1x1x64xf32>, vector<1x1x64xf32> -> vector<1x2x64xf32>
    %c0_19 = arith.constant 0 : index
    %c0_20 = arith.constant 0 : index
    %c0_21 = arith.constant 0 : index
    %49 = vector.load %arg6[%c0_19, %c0_20, %c0_21] : memref<1x2x64xf32, #tpu.memory_space<vmem>>, vector<1x2x64xf32>
    tpu.vector_store %arg6[%c0_19, %c0_20, %c0_21], %48 {strides = array<i32>} : memref<1x2x64xf32, #tpu.memory_space<vmem>>, vector<1x2x64xf32>,
    return
  }
  func.func @transform_0(%arg0: i32) -> (i32, i32, i32) {
    %c0_i32 = arith.constant 0 : i32
    %c0_i32_0 = arith.constant 0 : i32
    %c0_i32_1 = arith.constant 0 : i32
    return %arg0, %c0_i32, %c0_i32_0 : i32, i32, i32
  }
  func.func @transform_1(%arg0: i32) -> (i32, i32, i32) {
    %c0_i32 = arith.constant 0 : i32
    %c0_i32_0 = arith.constant 0 : i32
    %c0_i32_1 = arith.constant 0 : i32
    %c0_i32_2 = arith.constant 0 : i32
    return %c0_i32, %c0_i32_0, %c0_i32_1 : i32, i32, i32
  }
  func.func @transform_2(%arg0: i32) -> (i32, i32, i32) {
    %c0_i32 = arith.constant 0 : i32
    %c0_i32_0 = arith.constant 0 : i32
    %c0_i32_1 = arith.constant 0 : i32
    %c0_i32_2 = arith.constant 0 : i32
    return %c0_i32, %c0_i32_0, %c0_i32_1 : i32, i32, i32
  }
  func.func @transform_3(%arg0: i32) -> (i32, i32) {
    %c0_i32 = arith.constant 0 : i32
    %c0_i32_0 = arith.constant 0 : i32
    %c0_i32_1 = arith.constant 0 : i32
    return %c0_i32, %c0_i32_0 : i32, i32
  }
  func.func @transform_4(%arg0: i32) -> (i32, i32, i32) {
    %c0_i32 = arith.constant 0 : i32
    %c0_i32_0 = arith.constant 0 : i32
    %c0_i32_1 = arith.constant 0 : i32
    return %arg0, %c0_i32, %c0_i32_0 : i32, i32, i32
  }
  func.func @transform_5(%arg0: i32) -> (i32, i32, i32) {
    %c0_i32 = arith.constant 0 : i32
    %c0_i32_0 = arith.constant 0 : i32
    %c0_i32_1 = arith.constant 0 : i32
    return %arg0, %c0_i32, %c0_i32_0 : i32, i32, i32
  }
}

module attributes {stable_mosaic.version = 11 : i64} {
  func.func @_fuse_conv_in_kernel(%arg0: i32, %arg1: memref<1x16x64xbf16, #tpu.memory_space<vmem>>, %arg2: memref<1x16x128xbf16, #tpu.memory_space<vmem>>, %arg3: memref<1x1x64xf32, #tpu.memory_space<vmem>>, %arg4: memref<1x1x64xf32, #tpu.memory_space<vmem>>, %arg5: memref<1x1x64xf32, #tpu.memory_space<vmem>>, %arg6: memref<1x1x64xf32, #tpu.memory_space<vmem>>, %arg7: memref<512x256xbf16, #tpu.memory_space<vmem>>, %arg8: memref<1x16x256xbf16, #tpu.memory_space<vmem>>, %arg9: memref<1x2x256xf32, #tpu.memory_space<vmem>>) attributes {dimension_semantics = [#tpu.dimension_semantics<parallel>], iteration_bounds = array<i64: 2>, scalar_prefetch = 0 : i64, scratch_operands = 0 : i64, tpu.core_type = #tpu.core_type<tc>, window_params = [{transform_indices = @transform_0, window_bounds = array<i64: 1, 16, 64>}, {transform_indices = @transform_1, window_bounds = array<i64: 1, 16, 128>}, {pipeline_mode = #tpu.pipeline_mode<synchronous>, transform_indices = @transform_2, window_bounds = array<i64: 1, 1, 64>}, {pipeline_mode = #tpu.pipeline_mode<synchronous>, transform_indices = @transform_3, window_bounds = array<i64: 1, 1, 64>}, {pipeline_mode = #tpu.pipeline_mode<synchronous>, transform_indices = @transform_4, window_bounds = array<i64: 1, 1, 64>}, {pipeline_mode = #tpu.pipeline_mode<synchronous>, transform_indices = @transform_5, window_bounds = array<i64: 1, 1, 64>}, {pipeline_mode = #tpu.pipeline_mode<synchronous>, transform_indices = @transform_6, window_bounds = array<i64: 512, 256>}, {transform_indices = @transform_7, window_bounds = array<i64: 1, 16, 256>}, {transform_indices = @transform_8, window_bounds = array<i64: 1, 2, 256>}]} {
    %c0 = arith.constant 0 : index
    %c0_0 = arith.constant 0 : index
    %c0_1 = arith.constant 0 : index
    %0 = vector.load %arg2[%c0, %c0_0, %c0_1] : memref<1x16x128xbf16, #tpu.memory_space<vmem>>, vector<1x16x128xbf16>
    %1 = vector.extract_strided_slice %0 {offsets = [0, 0, 64], sizes = [1, 16, 64], strides = [1, 1, 1]} : vector<1x16x128xbf16> to vector<1x16x64xbf16>
    %c0_2 = arith.constant 0 : index
    %c0_3 = arith.constant 0 : index
    %c0_4 = arith.constant 0 : index
    %2 = vector.load %arg1[%c0_2, %c0_3, %c0_4] : memref<1x16x64xbf16, #tpu.memory_space<vmem>>, vector<1x16x64xbf16>
    %3 = arith.extf %2 : vector<1x16x64xbf16> to vector<1x16x64xf32>
    %c0_5 = arith.constant 0 : index
    %c0_6 = arith.constant 0 : index
    %c0_7 = arith.constant 0 : index
    %4 = vector.load %arg3[%c0_5, %c0_6, %c0_7] : memref<1x1x64xf32, #tpu.memory_space<vmem>>, vector<1x1x64xf32>
    %5 = vector.broadcast %4 : vector<1x1x64xf32> to vector<1x16x64xf32>
    %6 = arith.mulf %3, %5 : vector<1x16x64xf32>
    %c0_8 = arith.constant 0 : index
    %c0_9 = arith.constant 0 : index
    %c0_10 = arith.constant 0 : index
    %7 = vector.load %arg4[%c0_8, %c0_9, %c0_10] : memref<1x1x64xf32, #tpu.memory_space<vmem>>, vector<1x1x64xf32>
    %8 = vector.broadcast %7 : vector<1x1x64xf32> to vector<1x16x64xf32>
    %9 = arith.addf %6, %8 : vector<1x16x64xf32>
    %10 = arith.extf %1 : vector<1x16x64xbf16> to vector<1x16x64xf32>
    %c0_11 = arith.constant 0 : index
    %c0_12 = arith.constant 0 : index
    %c0_13 = arith.constant 0 : index
    %11 = vector.load %arg5[%c0_11, %c0_12, %c0_13] : memref<1x1x64xf32, #tpu.memory_space<vmem>>, vector<1x1x64xf32>
    %12 = vector.broadcast %11 : vector<1x1x64xf32> to vector<1x16x64xf32>
    %13 = arith.mulf %10, %12 : vector<1x16x64xf32>
    %14 = arith.addf %9, %13 : vector<1x16x64xf32>
    %c0_14 = arith.constant 0 : index
    %c0_15 = arith.constant 0 : index
    %c0_16 = arith.constant 0 : index
    %15 = vector.load %arg6[%c0_14, %c0_15, %c0_16] : memref<1x1x64xf32, #tpu.memory_space<vmem>>, vector<1x1x64xf32>
    %16 = vector.broadcast %15 : vector<1x1x64xf32> to vector<1x16x64xf32>
    %17 = arith.addf %14, %16 : vector<1x16x64xf32>
    %cst = arith.constant 0.000000e+00 : f32
    %18 = vector.broadcast %cst : f32 to vector<1x16x64xf32>
    %19 = arith.maximumf %17, %18 : vector<1x16x64xf32>
    %20 = arith.truncf %19 : vector<1x16x64xf32> to vector<1x16x64xbf16>
    %c0_17 = arith.constant 0 : index
    %c0_18 = arith.constant 0 : index
    %21 = vector.load %arg7[%c0_17, %c0_18] : memref<512x256xbf16, #tpu.memory_space<vmem>>, vector<512x256xbf16>
    %cst_19 = arith.constant 0.000000e+00 : bf16
    %22 = vector.broadcast %cst_19 : bf16 to vector<1x3x64xbf16>
    %cst_20 = arith.constant 0.000000e+00 : bf16
    %23 = vector.broadcast %cst_20 : bf16 to vector<1x4x64xbf16>
    %24 = tpu.concatenate %22, %20, %23 in 1 : vector<1x3x64xbf16>, vector<1x16x64xbf16>, vector<1x4x64xbf16> -> vector<1x23x64xbf16>
    %25 = vector.extract_strided_slice %24 {offsets = [0, 0, 0], sizes = [1, 16, 64], strides = [1, 1, 1]} : vector<1x23x64xbf16> to vector<1x16x64xbf16>
    %26 = vector.extract_strided_slice %24 {offsets = [0, 1, 0], sizes = [1, 16, 64], strides = [1, 1, 1]} : vector<1x23x64xbf16> to vector<1x16x64xbf16>
    %27 = vector.extract_strided_slice %24 {offsets = [0, 2, 0], sizes = [1, 16, 64], strides = [1, 1, 1]} : vector<1x23x64xbf16> to vector<1x16x64xbf16>
    %28 = vector.extract_strided_slice %24 {offsets = [0, 3, 0], sizes = [1, 16, 64], strides = [1, 1, 1]} : vector<1x23x64xbf16> to vector<1x16x64xbf16>
    %29 = vector.extract_strided_slice %24 {offsets = [0, 4, 0], sizes = [1, 16, 64], strides = [1, 1, 1]} : vector<1x23x64xbf16> to vector<1x16x64xbf16>
    %30 = vector.extract_strided_slice %24 {offsets = [0, 5, 0], sizes = [1, 16, 64], strides = [1, 1, 1]} : vector<1x23x64xbf16> to vector<1x16x64xbf16>
    %31 = vector.extract_strided_slice %24 {offsets = [0, 6, 0], sizes = [1, 16, 64], strides = [1, 1, 1]} : vector<1x23x64xbf16> to vector<1x16x64xbf16>
    %32 = vector.extract_strided_slice %24 {offsets = [0, 7, 0], sizes = [1, 16, 64], strides = [1, 1, 1]} : vector<1x23x64xbf16> to vector<1x16x64xbf16>
    %33 = tpu.concatenate %25, %26, %27, %28, %29, %30, %31, %32 in 2 : vector<1x16x64xbf16>, vector<1x16x64xbf16>, vector<1x16x64xbf16>, vector<1x16x64xbf16>, vector<1x16x64xbf16>, vector<1x16x64xbf16>, vector<1x16x64xbf16>, vector<1x16x64xbf16> -> vector<1x16x512xbf16>
    %34 = vector.shape_cast %33 : vector<1x16x512xbf16> to vector<16x512xbf16>
    %cst_21 = arith.constant dense<0.000000e+00> : vector<16x256xf32>
    %35 = tpu.matmul %34, %21, %cst_21 {dimension_numbers = #tpu.dot_dimension_numbers<[1], [0], [0], [1], [0, 0, 1, 1], [], []>} : vector<16x512xbf16>, vector<512x256xbf16>, vector<16x256xf32> -> vector<16x256xf32>
    %36 = vector.shape_cast %35 : vector<16x256xf32> to vector<1x16x256xf32>
    %37 = arith.truncf %36 : vector<1x16x256xf32> to vector<1x16x256xbf16>
    %c0_22 = arith.constant 0 : index
    %c0_23 = arith.constant 0 : index
    %c0_24 = arith.constant 0 : index
    %38 = vector.load %arg8[%c0_22, %c0_23, %c0_24] : memref<1x16x256xbf16, #tpu.memory_space<vmem>>, vector<1x16x256xbf16>
    tpu.vector_store %arg8[%c0_22, %c0_23, %c0_24], %37 {strides = array<i32>} : memref<1x16x256xbf16, #tpu.memory_space<vmem>>, vector<1x16x256xbf16>,
    %c1_i32 = arith.constant 1 : i32
    %39 = arith.muli %arg0, %c1_i32 : i32
    %c2_i32 = arith.constant 2 : i32
    %40 = arith.subi %c2_i32, %39 : i32
    %c0_i32 = arith.constant 0 : i32
    %41 = arith.maxsi %40, %c0_i32 : i32
    %c1_i32_25 = arith.constant 1 : i32
    %42 = arith.minsi %41, %c1_i32_25 : i32
    %43 = tpu.iota {dimensions = array<i32: 0>} : vector<1x1x1xi32>
    %44 = vector.broadcast %42 : i32 to vector<1x1x1xi32>
    %45 = arith.cmpi slt, %43, %44 : vector<1x1x1xi32>
    %46 = arith.extui %45 : vector<1x1x1xi1> to vector<1x1x1xi32>
    %47 = arith.sitofp %46 : vector<1x1x1xi32> to vector<1x1x1xf32>
    %c16_i32 = arith.constant 16 : i32
    %48 = arith.muli %42, %c16_i32 : i32
    %49 = arith.sitofp %48 : i32 to f32
    %50 = vector.broadcast %47 : vector<1x1x1xf32> to vector<1x16x256xf32>
    %51 = arith.mulf %36, %50 : vector<1x16x256xf32>
    %cst_26 = arith.constant dense<0.000000e+00> : vector<256xf32>
    %52 = vector.multi_reduction <add>, %51, %cst_26 [0, 1] : vector<1x16x256xf32> to vector<256xf32>
    %53 = vector.shape_cast %52 : vector<256xf32> to vector<1x1x256xf32>
    %54 = vector.broadcast %49 : f32 to vector<1x1x256xf32>
    %55 = arith.divf %53, %54 : vector<1x1x256xf32>
    %56 = vector.broadcast %55 : vector<1x1x256xf32> to vector<1x16x256xf32>
    %57 = arith.subf %36, %56 : vector<1x16x256xf32>
    %58 = vector.broadcast %47 : vector<1x1x1xf32> to vector<1x16x256xf32>
    %59 = arith.mulf %57, %58 : vector<1x16x256xf32>
    %60 = arith.mulf %59, %59 : vector<1x16x256xf32>
    %cst_27 = arith.constant dense<0.000000e+00> : vector<256xf32>
    %61 = vector.multi_reduction <add>, %60, %cst_27 [0, 1] : vector<1x16x256xf32> to vector<256xf32>
    %62 = vector.shape_cast %61 : vector<256xf32> to vector<1x1x256xf32>
    %63 = tpu.concatenate %53, %62 in 1 : vector<1x1x256xf32>, vector<1x1x256xf32> -> vector<1x2x256xf32>
    %c0_28 = arith.constant 0 : index
    %c0_29 = arith.constant 0 : index
    %c0_30 = arith.constant 0 : index
    %64 = vector.load %arg9[%c0_28, %c0_29, %c0_30] : memref<1x2x256xf32, #tpu.memory_space<vmem>>, vector<1x2x256xf32>
    tpu.vector_store %arg9[%c0_28, %c0_29, %c0_30], %63 {strides = array<i32>} : memref<1x2x256xf32, #tpu.memory_space<vmem>>, vector<1x2x256xf32>,
    return
  }
  func.func @transform_0(%arg0: i32) -> (i32, i32, i32) {
    %c0_i32 = arith.constant 0 : i32
    %c0_i32_0 = arith.constant 0 : i32
    %c0_i32_1 = arith.constant 0 : i32
    return %arg0, %c0_i32, %c0_i32_0 : i32, i32, i32
  }
  func.func @transform_1(%arg0: i32) -> (i32, i32, i32) {
    %c0_i32 = arith.constant 0 : i32
    %c0_i32_0 = arith.constant 0 : i32
    %c0_i32_1 = arith.constant 0 : i32
    return %arg0, %c0_i32, %c0_i32_0 : i32, i32, i32
  }
  func.func @transform_2(%arg0: i32) -> (i32, i32, i32) {
    %c0_i32 = arith.constant 0 : i32
    %c0_i32_0 = arith.constant 0 : i32
    %c0_i32_1 = arith.constant 0 : i32
    %c0_i32_2 = arith.constant 0 : i32
    return %c0_i32, %c0_i32_0, %c0_i32_1 : i32, i32, i32
  }
  func.func @transform_3(%arg0: i32) -> (i32, i32, i32) {
    %c0_i32 = arith.constant 0 : i32
    %c0_i32_0 = arith.constant 0 : i32
    %c0_i32_1 = arith.constant 0 : i32
    %c0_i32_2 = arith.constant 0 : i32
    return %c0_i32, %c0_i32_0, %c0_i32_1 : i32, i32, i32
  }
  func.func @transform_4(%arg0: i32) -> (i32, i32, i32) {
    %c0_i32 = arith.constant 0 : i32
    %c0_i32_0 = arith.constant 0 : i32
    %c0_i32_1 = arith.constant 0 : i32
    %c0_i32_2 = arith.constant 0 : i32
    return %c0_i32, %c0_i32_0, %c0_i32_1 : i32, i32, i32
  }
  func.func @transform_5(%arg0: i32) -> (i32, i32, i32) {
    %c0_i32 = arith.constant 0 : i32
    %c0_i32_0 = arith.constant 0 : i32
    %c0_i32_1 = arith.constant 0 : i32
    %c0_i32_2 = arith.constant 0 : i32
    return %c0_i32, %c0_i32_0, %c0_i32_1 : i32, i32, i32
  }
  func.func @transform_6(%arg0: i32) -> (i32, i32) {
    %c0_i32 = arith.constant 0 : i32
    %c0_i32_0 = arith.constant 0 : i32
    %c0_i32_1 = arith.constant 0 : i32
    return %c0_i32, %c0_i32_0 : i32, i32
  }
  func.func @transform_7(%arg0: i32) -> (i32, i32, i32) {
    %c0_i32 = arith.constant 0 : i32
    %c0_i32_0 = arith.constant 0 : i32
    %c0_i32_1 = arith.constant 0 : i32
    return %arg0, %c0_i32, %c0_i32_0 : i32, i32, i32
  }
  func.func @transform_8(%arg0: i32) -> (i32, i32, i32) {
    %c0_i32 = arith.constant 0 : i32
    %c0_i32_0 = arith.constant 0 : i32
    %c0_i32_1 = arith.constant 0 : i32
    return %arg0, %c0_i32, %c0_i32_0 : i32, i32, i32
  }
}

module attributes {stable_mosaic.version = 11 : i64} {
  func.func @_bn_relu_conv_kernel(%arg0: i32, %arg1: memref<1x16x128xbf16, #tpu.memory_space<vmem>>, %arg2: memref<1x1x128xf32, #tpu.memory_space<vmem>>, %arg3: memref<1x1x128xf32, #tpu.memory_space<vmem>>, %arg4: memref<640x128xbf16, #tpu.memory_space<vmem>>, %arg5: memref<1x16x128xbf16, #tpu.memory_space<vmem>>, %arg6: memref<1x2x128xf32, #tpu.memory_space<vmem>>) attributes {dimension_semantics = [#tpu.dimension_semantics<parallel>], iteration_bounds = array<i64: 2>, scalar_prefetch = 0 : i64, scratch_operands = 0 : i64, tpu.core_type = #tpu.core_type<tc>, window_params = [{transform_indices = @transform_0, window_bounds = array<i64: 1, 16, 128>}, {pipeline_mode = #tpu.pipeline_mode<synchronous>, transform_indices = @transform_1, window_bounds = array<i64: 1, 1, 128>}, {pipeline_mode = #tpu.pipeline_mode<synchronous>, transform_indices = @transform_2, window_bounds = array<i64: 1, 1, 128>}, {pipeline_mode = #tpu.pipeline_mode<synchronous>, transform_indices = @transform_3, window_bounds = array<i64: 640, 128>}, {transform_indices = @transform_4, window_bounds = array<i64: 1, 16, 128>}, {transform_indices = @transform_5, window_bounds = array<i64: 1, 2, 128>}]} {
    %c0 = arith.constant 0 : index
    %c0_0 = arith.constant 0 : index
    %c0_1 = arith.constant 0 : index
    %0 = vector.load %arg1[%c0, %c0_0, %c0_1] : memref<1x16x128xbf16, #tpu.memory_space<vmem>>, vector<1x16x128xbf16>
    %1 = arith.extf %0 : vector<1x16x128xbf16> to vector<1x16x128xf32>
    %c0_2 = arith.constant 0 : index
    %c0_3 = arith.constant 0 : index
    %c0_4 = arith.constant 0 : index
    %2 = vector.load %arg2[%c0_2, %c0_3, %c0_4] : memref<1x1x128xf32, #tpu.memory_space<vmem>>, vector<1x1x128xf32>
    %3 = vector.broadcast %2 : vector<1x1x128xf32> to vector<1x16x128xf32>
    %4 = arith.mulf %1, %3 : vector<1x16x128xf32>
    %c0_5 = arith.constant 0 : index
    %c0_6 = arith.constant 0 : index
    %c0_7 = arith.constant 0 : index
    %5 = vector.load %arg3[%c0_5, %c0_6, %c0_7] : memref<1x1x128xf32, #tpu.memory_space<vmem>>, vector<1x1x128xf32>
    %6 = vector.broadcast %5 : vector<1x1x128xf32> to vector<1x16x128xf32>
    %7 = arith.addf %4, %6 : vector<1x16x128xf32>
    %cst = arith.constant 0.000000e+00 : f32
    %8 = vector.broadcast %cst : f32 to vector<1x16x128xf32>
    %9 = arith.maximumf %7, %8 : vector<1x16x128xf32>
    %10 = arith.truncf %9 : vector<1x16x128xf32> to vector<1x16x128xbf16>
    %c0_8 = arith.constant 0 : index
    %c0_9 = arith.constant 0 : index
    %11 = vector.load %arg4[%c0_8, %c0_9] : memref<640x128xbf16, #tpu.memory_space<vmem>>, vector<640x128xbf16>
    %cst_10 = arith.constant 0.000000e+00 : bf16
    %12 = vector.broadcast %cst_10 : bf16 to vector<1x2x128xbf16>
    %cst_11 = arith.constant 0.000000e+00 : bf16
    %13 = vector.broadcast %cst_11 : bf16 to vector<1x2x128xbf16>
    %14 = tpu.concatenate %12, %10, %13 in 1 : vector<1x2x128xbf16>, vector<1x16x128xbf16>, vector<1x2x128xbf16> -> vector<1x20x128xbf16>
    %15 = vector.extract_strided_slice %14 {offsets = [0, 0, 0], sizes = [1, 16, 128], strides = [1, 1, 1]} : vector<1x20x128xbf16> to vector<1x16x128xbf16>
    %16 = vector.extract_strided_slice %14 {offsets = [0, 1, 0], sizes = [1, 16, 128], strides = [1, 1, 1]} : vector<1x20x128xbf16> to vector<1x16x128xbf16>
    %17 = vector.extract_strided_slice %14 {offsets = [0, 2, 0], sizes = [1, 16, 128], strides = [1, 1, 1]} : vector<1x20x128xbf16> to vector<1x16x128xbf16>
    %18 = vector.extract_strided_slice %14 {offsets = [0, 3, 0], sizes = [1, 16, 128], strides = [1, 1, 1]} : vector<1x20x128xbf16> to vector<1x16x128xbf16>
    %19 = vector.extract_strided_slice %14 {offsets = [0, 4, 0], sizes = [1, 16, 128], strides = [1, 1, 1]} : vector<1x20x128xbf16> to vector<1x16x128xbf16>
    %20 = tpu.concatenate %15, %16, %17, %18, %19 in 2 : vector<1x16x128xbf16>, vector<1x16x128xbf16>, vector<1x16x128xbf16>, vector<1x16x128xbf16>, vector<1x16x128xbf16> -> vector<1x16x640xbf16>
    %21 = vector.shape_cast %20 : vector<1x16x640xbf16> to vector<16x640xbf16>
    %cst_12 = arith.constant dense<0.000000e+00> : vector<16x128xf32>
    %22 = tpu.matmul %21, %11, %cst_12 {dimension_numbers = #tpu.dot_dimension_numbers<[1], [0], [0], [1], [0, 0, 1, 1], [], []>} : vector<16x640xbf16>, vector<640x128xbf16>, vector<16x128xf32> -> vector<16x128xf32>
    %23 = vector.shape_cast %22 : vector<16x128xf32> to vector<1x16x128xf32>
    %24 = arith.truncf %23 : vector<1x16x128xf32> to vector<1x16x128xbf16>
    %c0_13 = arith.constant 0 : index
    %c0_14 = arith.constant 0 : index
    %c0_15 = arith.constant 0 : index
    %25 = vector.load %arg5[%c0_13, %c0_14, %c0_15] : memref<1x16x128xbf16, #tpu.memory_space<vmem>>, vector<1x16x128xbf16>
    tpu.vector_store %arg5[%c0_13, %c0_14, %c0_15], %24 {strides = array<i32>} : memref<1x16x128xbf16, #tpu.memory_space<vmem>>, vector<1x16x128xbf16>,
    %c1_i32 = arith.constant 1 : i32
    %26 = arith.muli %arg0, %c1_i32 : i32
    %c2_i32 = arith.constant 2 : i32
    %27 = arith.subi %c2_i32, %26 : i32
    %c0_i32 = arith.constant 0 : i32
    %28 = arith.maxsi %27, %c0_i32 : i32
    %c1_i32_16 = arith.constant 1 : i32
    %29 = arith.minsi %28, %c1_i32_16 : i32
    %30 = tpu.iota {dimensions = array<i32: 0>} : vector<1x1x1xi32>
    %31 = vector.broadcast %29 : i32 to vector<1x1x1xi32>
    %32 = arith.cmpi slt, %30, %31 : vector<1x1x1xi32>
    %33 = arith.extui %32 : vector<1x1x1xi1> to vector<1x1x1xi32>
    %34 = arith.sitofp %33 : vector<1x1x1xi32> to vector<1x1x1xf32>
    %c16_i32 = arith.constant 16 : i32
    %35 = arith.muli %29, %c16_i32 : i32
    %36 = arith.sitofp %35 : i32 to f32
    %37 = vector.broadcast %34 : vector<1x1x1xf32> to vector<1x16x128xf32>
    %38 = arith.mulf %23, %37 : vector<1x16x128xf32>
    %cst_17 = arith.constant dense<0.000000e+00> : vector<128xf32>
    %39 = vector.multi_reduction <add>, %38, %cst_17 [0, 1] : vector<1x16x128xf32> to vector<128xf32>
    %40 = vector.shape_cast %39 : vector<128xf32> to vector<1x1x128xf32>
    %41 = vector.broadcast %36 : f32 to vector<1x1x128xf32>
    %42 = arith.divf %40, %41 : vector<1x1x128xf32>
    %43 = vector.broadcast %42 : vector<1x1x128xf32> to vector<1x16x128xf32>
    %44 = arith.subf %23, %43 : vector<1x16x128xf32>
    %45 = vector.broadcast %34 : vector<1x1x1xf32> to vector<1x16x128xf32>
    %46 = arith.mulf %44, %45 : vector<1x16x128xf32>
    %47 = arith.mulf %46, %46 : vector<1x16x128xf32>
    %cst_18 = arith.constant dense<0.000000e+00> : vector<128xf32>
    %48 = vector.multi_reduction <add>, %47, %cst_18 [0, 1] : vector<1x16x128xf32> to vector<128xf32>
    %49 = vector.shape_cast %48 : vector<128xf32> to vector<1x1x128xf32>
    %50 = tpu.concatenate %40, %49 in 1 : vector<1x1x128xf32>, vector<1x1x128xf32> -> vector<1x2x128xf32>
    %c0_19 = arith.constant 0 : index
    %c0_20 = arith.constant 0 : index
    %c0_21 = arith.constant 0 : index
    %51 = vector.load %arg6[%c0_19, %c0_20, %c0_21] : memref<1x2x128xf32, #tpu.memory_space<vmem>>, vector<1x2x128xf32>
    tpu.vector_store %arg6[%c0_19, %c0_20, %c0_21], %50 {strides = array<i32>} : memref<1x2x128xf32, #tpu.memory_space<vmem>>, vector<1x2x128xf32>,
    return
  }
  func.func @transform_0(%arg0: i32) -> (i32, i32, i32) {
    %c0_i32 = arith.constant 0 : i32
    %c0_i32_0 = arith.constant 0 : i32
    %c0_i32_1 = arith.constant 0 : i32
    return %arg0, %c0_i32, %c0_i32_0 : i32, i32, i32
  }
  func.func @transform_1(%arg0: i32) -> (i32, i32, i32) {
    %c0_i32 = arith.constant 0 : i32
    %c0_i32_0 = arith.constant 0 : i32
    %c0_i32_1 = arith.constant 0 : i32
    %c0_i32_2 = arith.constant 0 : i32
    return %c0_i32, %c0_i32_0, %c0_i32_1 : i32, i32, i32
  }
  func.func @transform_2(%arg0: i32) -> (i32, i32, i32) {
    %c0_i32 = arith.constant 0 : i32
    %c0_i32_0 = arith.constant 0 : i32
    %c0_i32_1 = arith.constant 0 : i32
    %c0_i32_2 = arith.constant 0 : i32
    return %c0_i32, %c0_i32_0, %c0_i32_1 : i32, i32, i32
  }
  func.func @transform_3(%arg0: i32) -> (i32, i32) {
    %c0_i32 = arith.constant 0 : i32
    %c0_i32_0 = arith.constant 0 : i32
    %c0_i32_1 = arith.constant 0 : i32
    return %c0_i32, %c0_i32_0 : i32, i32
  }
  func.func @transform_4(%arg0: i32) -> (i32, i32, i32) {
    %c0_i32 = arith.constant 0 : i32
    %c0_i32_0 = arith.constant 0 : i32
    %c0_i32_1 = arith.constant 0 : i32
    return %arg0, %c0_i32, %c0_i32_0 : i32, i32, i32
  }
  func.func @transform_5(%arg0: i32) -> (i32, i32, i32) {
    %c0_i32 = arith.constant 0 : i32
    %c0_i32_0 = arith.constant 0 : i32
    %c0_i32_1 = arith.constant 0 : i32
    return %arg0, %c0_i32, %c0_i32_0 : i32, i32, i32
  }
}

module attributes {stable_mosaic.version = 11 : i64} {
  func.func @_bn_relu_conv_kernel(%arg0: i32, %arg1: memref<1x16x128xbf16, #tpu.memory_space<vmem>>, %arg2: memref<1x1x128xf32, #tpu.memory_space<vmem>>, %arg3: memref<1x1x128xf32, #tpu.memory_space<vmem>>, %arg4: memref<384x128xbf16, #tpu.memory_space<vmem>>, %arg5: memref<1x16x128xbf16, #tpu.memory_space<vmem>>, %arg6: memref<1x2x128xf32, #tpu.memory_space<vmem>>) attributes {dimension_semantics = [#tpu.dimension_semantics<parallel>], iteration_bounds = array<i64: 2>, scalar_prefetch = 0 : i64, scratch_operands = 0 : i64, tpu.core_type = #tpu.core_type<tc>, window_params = [{transform_indices = @transform_0, window_bounds = array<i64: 1, 16, 128>}, {pipeline_mode = #tpu.pipeline_mode<synchronous>, transform_indices = @transform_1, window_bounds = array<i64: 1, 1, 128>}, {pipeline_mode = #tpu.pipeline_mode<synchronous>, transform_indices = @transform_2, window_bounds = array<i64: 1, 1, 128>}, {pipeline_mode = #tpu.pipeline_mode<synchronous>, transform_indices = @transform_3, window_bounds = array<i64: 384, 128>}, {transform_indices = @transform_4, window_bounds = array<i64: 1, 16, 128>}, {transform_indices = @transform_5, window_bounds = array<i64: 1, 2, 128>}]} {
    %c0 = arith.constant 0 : index
    %c0_0 = arith.constant 0 : index
    %c0_1 = arith.constant 0 : index
    %0 = vector.load %arg1[%c0, %c0_0, %c0_1] : memref<1x16x128xbf16, #tpu.memory_space<vmem>>, vector<1x16x128xbf16>
    %1 = arith.extf %0 : vector<1x16x128xbf16> to vector<1x16x128xf32>
    %c0_2 = arith.constant 0 : index
    %c0_3 = arith.constant 0 : index
    %c0_4 = arith.constant 0 : index
    %2 = vector.load %arg2[%c0_2, %c0_3, %c0_4] : memref<1x1x128xf32, #tpu.memory_space<vmem>>, vector<1x1x128xf32>
    %3 = vector.broadcast %2 : vector<1x1x128xf32> to vector<1x16x128xf32>
    %4 = arith.mulf %1, %3 : vector<1x16x128xf32>
    %c0_5 = arith.constant 0 : index
    %c0_6 = arith.constant 0 : index
    %c0_7 = arith.constant 0 : index
    %5 = vector.load %arg3[%c0_5, %c0_6, %c0_7] : memref<1x1x128xf32, #tpu.memory_space<vmem>>, vector<1x1x128xf32>
    %6 = vector.broadcast %5 : vector<1x1x128xf32> to vector<1x16x128xf32>
    %7 = arith.addf %4, %6 : vector<1x16x128xf32>
    %cst = arith.constant 0.000000e+00 : f32
    %8 = vector.broadcast %cst : f32 to vector<1x16x128xf32>
    %9 = arith.maximumf %7, %8 : vector<1x16x128xf32>
    %10 = arith.truncf %9 : vector<1x16x128xf32> to vector<1x16x128xbf16>
    %c0_8 = arith.constant 0 : index
    %c0_9 = arith.constant 0 : index
    %11 = vector.load %arg4[%c0_8, %c0_9] : memref<384x128xbf16, #tpu.memory_space<vmem>>, vector<384x128xbf16>
    %cst_10 = arith.constant 0.000000e+00 : bf16
    %12 = vector.broadcast %cst_10 : bf16 to vector<1x1x128xbf16>
    %cst_11 = arith.constant 0.000000e+00 : bf16
    %13 = vector.broadcast %cst_11 : bf16 to vector<1x1x128xbf16>
    %14 = tpu.concatenate %12, %10, %13 in 1 : vector<1x1x128xbf16>, vector<1x16x128xbf16>, vector<1x1x128xbf16> -> vector<1x18x128xbf16>
    %15 = vector.extract_strided_slice %14 {offsets = [0, 0, 0], sizes = [1, 16, 128], strides = [1, 1, 1]} : vector<1x18x128xbf16> to vector<1x16x128xbf16>
    %16 = vector.extract_strided_slice %14 {offsets = [0, 1, 0], sizes = [1, 16, 128], strides = [1, 1, 1]} : vector<1x18x128xbf16> to vector<1x16x128xbf16>
    %17 = vector.extract_strided_slice %14 {offsets = [0, 2, 0], sizes = [1, 16, 128], strides = [1, 1, 1]} : vector<1x18x128xbf16> to vector<1x16x128xbf16>
    %18 = tpu.concatenate %15, %16, %17 in 2 : vector<1x16x128xbf16>, vector<1x16x128xbf16>, vector<1x16x128xbf16> -> vector<1x16x384xbf16>
    %19 = vector.shape_cast %18 : vector<1x16x384xbf16> to vector<16x384xbf16>
    %cst_12 = arith.constant dense<0.000000e+00> : vector<16x128xf32>
    %20 = tpu.matmul %19, %11, %cst_12 {dimension_numbers = #tpu.dot_dimension_numbers<[1], [0], [0], [1], [0, 0, 1, 1], [], []>} : vector<16x384xbf16>, vector<384x128xbf16>, vector<16x128xf32> -> vector<16x128xf32>
    %21 = vector.shape_cast %20 : vector<16x128xf32> to vector<1x16x128xf32>
    %22 = arith.truncf %21 : vector<1x16x128xf32> to vector<1x16x128xbf16>
    %c0_13 = arith.constant 0 : index
    %c0_14 = arith.constant 0 : index
    %c0_15 = arith.constant 0 : index
    %23 = vector.load %arg5[%c0_13, %c0_14, %c0_15] : memref<1x16x128xbf16, #tpu.memory_space<vmem>>, vector<1x16x128xbf16>
    tpu.vector_store %arg5[%c0_13, %c0_14, %c0_15], %22 {strides = array<i32>} : memref<1x16x128xbf16, #tpu.memory_space<vmem>>, vector<1x16x128xbf16>,
    %c1_i32 = arith.constant 1 : i32
    %24 = arith.muli %arg0, %c1_i32 : i32
    %c2_i32 = arith.constant 2 : i32
    %25 = arith.subi %c2_i32, %24 : i32
    %c0_i32 = arith.constant 0 : i32
    %26 = arith.maxsi %25, %c0_i32 : i32
    %c1_i32_16 = arith.constant 1 : i32
    %27 = arith.minsi %26, %c1_i32_16 : i32
    %28 = tpu.iota {dimensions = array<i32: 0>} : vector<1x1x1xi32>
    %29 = vector.broadcast %27 : i32 to vector<1x1x1xi32>
    %30 = arith.cmpi slt, %28, %29 : vector<1x1x1xi32>
    %31 = arith.extui %30 : vector<1x1x1xi1> to vector<1x1x1xi32>
    %32 = arith.sitofp %31 : vector<1x1x1xi32> to vector<1x1x1xf32>
    %c16_i32 = arith.constant 16 : i32
    %33 = arith.muli %27, %c16_i32 : i32
    %34 = arith.sitofp %33 : i32 to f32
    %35 = vector.broadcast %32 : vector<1x1x1xf32> to vector<1x16x128xf32>
    %36 = arith.mulf %21, %35 : vector<1x16x128xf32>
    %cst_17 = arith.constant dense<0.000000e+00> : vector<128xf32>
    %37 = vector.multi_reduction <add>, %36, %cst_17 [0, 1] : vector<1x16x128xf32> to vector<128xf32>
    %38 = vector.shape_cast %37 : vector<128xf32> to vector<1x1x128xf32>
    %39 = vector.broadcast %34 : f32 to vector<1x1x128xf32>
    %40 = arith.divf %38, %39 : vector<1x1x128xf32>
    %41 = vector.broadcast %40 : vector<1x1x128xf32> to vector<1x16x128xf32>
    %42 = arith.subf %21, %41 : vector<1x16x128xf32>
    %43 = vector.broadcast %32 : vector<1x1x1xf32> to vector<1x16x128xf32>
    %44 = arith.mulf %42, %43 : vector<1x16x128xf32>
    %45 = arith.mulf %44, %44 : vector<1x16x128xf32>
    %cst_18 = arith.constant dense<0.000000e+00> : vector<128xf32>
    %46 = vector.multi_reduction <add>, %45, %cst_18 [0, 1] : vector<1x16x128xf32> to vector<128xf32>
    %47 = vector.shape_cast %46 : vector<128xf32> to vector<1x1x128xf32>
    %48 = tpu.concatenate %38, %47 in 1 : vector<1x1x128xf32>, vector<1x1x128xf32> -> vector<1x2x128xf32>
    %c0_19 = arith.constant 0 : index
    %c0_20 = arith.constant 0 : index
    %c0_21 = arith.constant 0 : index
    %49 = vector.load %arg6[%c0_19, %c0_20, %c0_21] : memref<1x2x128xf32, #tpu.memory_space<vmem>>, vector<1x2x128xf32>
    tpu.vector_store %arg6[%c0_19, %c0_20, %c0_21], %48 {strides = array<i32>} : memref<1x2x128xf32, #tpu.memory_space<vmem>>, vector<1x2x128xf32>,
    return
  }
  func.func @transform_0(%arg0: i32) -> (i32, i32, i32) {
    %c0_i32 = arith.constant 0 : i32
    %c0_i32_0 = arith.constant 0 : i32
    %c0_i32_1 = arith.constant 0 : i32
    return %arg0, %c0_i32, %c0_i32_0 : i32, i32, i32
  }
  func.func @transform_1(%arg0: i32) -> (i32, i32, i32) {
    %c0_i32 = arith.constant 0 : i32
    %c0_i32_0 = arith.constant 0 : i32
    %c0_i32_1 = arith.constant 0 : i32
    %c0_i32_2 = arith.constant 0 : i32
    return %c0_i32, %c0_i32_0, %c0_i32_1 : i32, i32, i32
  }
  func.func @transform_2(%arg0: i32) -> (i32, i32, i32) {
    %c0_i32 = arith.constant 0 : i32
    %c0_i32_0 = arith.constant 0 : i32
    %c0_i32_1 = arith.constant 0 : i32
    %c0_i32_2 = arith.constant 0 : i32
    return %c0_i32, %c0_i32_0, %c0_i32_1 : i32, i32, i32
  }
  func.func @transform_3(%arg0: i32) -> (i32, i32) {
    %c0_i32 = arith.constant 0 : i32
    %c0_i32_0 = arith.constant 0 : i32
    %c0_i32_1 = arith.constant 0 : i32
    return %c0_i32, %c0_i32_0 : i32, i32
  }
  func.func @transform_4(%arg0: i32) -> (i32, i32, i32) {
    %c0_i32 = arith.constant 0 : i32
    %c0_i32_0 = arith.constant 0 : i32
    %c0_i32_1 = arith.constant 0 : i32
    return %arg0, %c0_i32, %c0_i32_0 : i32, i32, i32
  }
  func.func @transform_5(%arg0: i32) -> (i32, i32, i32) {
    %c0_i32 = arith.constant 0 : i32
    %c0_i32_0 = arith.constant 0 : i32
    %c0_i32_1 = arith.constant 0 : i32
    return %arg0, %c0_i32, %c0_i32_0 : i32, i32, i32
  }
}

module attributes {stable_mosaic.version = 11 : i64} {
  func.func @_fuse_conv_in_kernel(%arg0: i32, %arg1: memref<1x16x128xbf16, #tpu.memory_space<vmem>>, %arg2: memref<1x16x128xbf16, #tpu.memory_space<vmem>>, %arg3: memref<1x1x128xf32, #tpu.memory_space<vmem>>, %arg4: memref<1x1x128xf32, #tpu.memory_space<vmem>>, %arg5: memref<1x1x128xf32, #tpu.memory_space<vmem>>, %arg6: memref<1x1x128xf32, #tpu.memory_space<vmem>>, %arg7: memref<1024x256xbf16, #tpu.memory_space<vmem>>, %arg8: memref<1x16x256xbf16, #tpu.memory_space<vmem>>, %arg9: memref<1x2x256xf32, #tpu.memory_space<vmem>>) attributes {dimension_semantics = [#tpu.dimension_semantics<parallel>], iteration_bounds = array<i64: 2>, scalar_prefetch = 0 : i64, scratch_operands = 0 : i64, tpu.core_type = #tpu.core_type<tc>, window_params = [{transform_indices = @transform_0, window_bounds = array<i64: 1, 16, 128>}, {transform_indices = @transform_1, window_bounds = array<i64: 1, 16, 128>}, {pipeline_mode = #tpu.pipeline_mode<synchronous>, transform_indices = @transform_2, window_bounds = array<i64: 1, 1, 128>}, {pipeline_mode = #tpu.pipeline_mode<synchronous>, transform_indices = @transform_3, window_bounds = array<i64: 1, 1, 128>}, {pipeline_mode = #tpu.pipeline_mode<synchronous>, transform_indices = @transform_4, window_bounds = array<i64: 1, 1, 128>}, {pipeline_mode = #tpu.pipeline_mode<synchronous>, transform_indices = @transform_5, window_bounds = array<i64: 1, 1, 128>}, {pipeline_mode = #tpu.pipeline_mode<synchronous>, transform_indices = @transform_6, window_bounds = array<i64: 1024, 256>}, {transform_indices = @transform_7, window_bounds = array<i64: 1, 16, 256>}, {transform_indices = @transform_8, window_bounds = array<i64: 1, 2, 256>}]} {
    %c0 = arith.constant 0 : index
    %c0_0 = arith.constant 0 : index
    %c0_1 = arith.constant 0 : index
    %0 = vector.load %arg2[%c0, %c0_0, %c0_1] : memref<1x16x128xbf16, #tpu.memory_space<vmem>>, vector<1x16x128xbf16>
    %c0_2 = arith.constant 0 : index
    %c0_3 = arith.constant 0 : index
    %c0_4 = arith.constant 0 : index
    %1 = vector.load %arg1[%c0_2, %c0_3, %c0_4] : memref<1x16x128xbf16, #tpu.memory_space<vmem>>, vector<1x16x128xbf16>
    %2 = arith.extf %1 : vector<1x16x128xbf16> to vector<1x16x128xf32>
    %c0_5 = arith.constant 0 : index
    %c0_6 = arith.constant 0 : index
    %c0_7 = arith.constant 0 : index
    %3 = vector.load %arg3[%c0_5, %c0_6, %c0_7] : memref<1x1x128xf32, #tpu.memory_space<vmem>>, vector<1x1x128xf32>
    %4 = vector.broadcast %3 : vector<1x1x128xf32> to vector<1x16x128xf32>
    %5 = arith.mulf %2, %4 : vector<1x16x128xf32>
    %c0_8 = arith.constant 0 : index
    %c0_9 = arith.constant 0 : index
    %c0_10 = arith.constant 0 : index
    %6 = vector.load %arg4[%c0_8, %c0_9, %c0_10] : memref<1x1x128xf32, #tpu.memory_space<vmem>>, vector<1x1x128xf32>
    %7 = vector.broadcast %6 : vector<1x1x128xf32> to vector<1x16x128xf32>
    %8 = arith.addf %5, %7 : vector<1x16x128xf32>
    %9 = arith.extf %0 : vector<1x16x128xbf16> to vector<1x16x128xf32>
    %c0_11 = arith.constant 0 : index
    %c0_12 = arith.constant 0 : index
    %c0_13 = arith.constant 0 : index
    %10 = vector.load %arg5[%c0_11, %c0_12, %c0_13] : memref<1x1x128xf32, #tpu.memory_space<vmem>>, vector<1x1x128xf32>
    %11 = vector.broadcast %10 : vector<1x1x128xf32> to vector<1x16x128xf32>
    %12 = arith.mulf %9, %11 : vector<1x16x128xf32>
    %13 = arith.addf %8, %12 : vector<1x16x128xf32>
    %c0_14 = arith.constant 0 : index
    %c0_15 = arith.constant 0 : index
    %c0_16 = arith.constant 0 : index
    %14 = vector.load %arg6[%c0_14, %c0_15, %c0_16] : memref<1x1x128xf32, #tpu.memory_space<vmem>>, vector<1x1x128xf32>
    %15 = vector.broadcast %14 : vector<1x1x128xf32> to vector<1x16x128xf32>
    %16 = arith.addf %13, %15 : vector<1x16x128xf32>
    %cst = arith.constant 0.000000e+00 : f32
    %17 = vector.broadcast %cst : f32 to vector<1x16x128xf32>
    %18 = arith.maximumf %16, %17 : vector<1x16x128xf32>
    %19 = arith.truncf %18 : vector<1x16x128xf32> to vector<1x16x128xbf16>
    %c0_17 = arith.constant 0 : index
    %c0_18 = arith.constant 0 : index
    %20 = vector.load %arg7[%c0_17, %c0_18] : memref<1024x256xbf16, #tpu.memory_space<vmem>>, vector<1024x256xbf16>
    %cst_19 = arith.constant 0.000000e+00 : bf16
    %21 = vector.broadcast %cst_19 : bf16 to vector<1x3x128xbf16>
    %cst_20 = arith.constant 0.000000e+00 : bf16
    %22 = vector.broadcast %cst_20 : bf16 to vector<1x4x128xbf16>
    %23 = tpu.concatenate %21, %19, %22 in 1 : vector<1x3x128xbf16>, vector<1x16x128xbf16>, vector<1x4x128xbf16> -> vector<1x23x128xbf16>
    %24 = vector.extract_strided_slice %23 {offsets = [0, 0, 0], sizes = [1, 16, 128], strides = [1, 1, 1]} : vector<1x23x128xbf16> to vector<1x16x128xbf16>
    %25 = vector.extract_strided_slice %23 {offsets = [0, 1, 0], sizes = [1, 16, 128], strides = [1, 1, 1]} : vector<1x23x128xbf16> to vector<1x16x128xbf16>
    %26 = vector.extract_strided_slice %23 {offsets = [0, 2, 0], sizes = [1, 16, 128], strides = [1, 1, 1]} : vector<1x23x128xbf16> to vector<1x16x128xbf16>
    %27 = vector.extract_strided_slice %23 {offsets = [0, 3, 0], sizes = [1, 16, 128], strides = [1, 1, 1]} : vector<1x23x128xbf16> to vector<1x16x128xbf16>
    %28 = vector.extract_strided_slice %23 {offsets = [0, 4, 0], sizes = [1, 16, 128], strides = [1, 1, 1]} : vector<1x23x128xbf16> to vector<1x16x128xbf16>
    %29 = vector.extract_strided_slice %23 {offsets = [0, 5, 0], sizes = [1, 16, 128], strides = [1, 1, 1]} : vector<1x23x128xbf16> to vector<1x16x128xbf16>
    %30 = vector.extract_strided_slice %23 {offsets = [0, 6, 0], sizes = [1, 16, 128], strides = [1, 1, 1]} : vector<1x23x128xbf16> to vector<1x16x128xbf16>
    %31 = vector.extract_strided_slice %23 {offsets = [0, 7, 0], sizes = [1, 16, 128], strides = [1, 1, 1]} : vector<1x23x128xbf16> to vector<1x16x128xbf16>
    %32 = tpu.concatenate %24, %25, %26, %27, %28, %29, %30, %31 in 2 : vector<1x16x128xbf16>, vector<1x16x128xbf16>, vector<1x16x128xbf16>, vector<1x16x128xbf16>, vector<1x16x128xbf16>, vector<1x16x128xbf16>, vector<1x16x128xbf16>, vector<1x16x128xbf16> -> vector<1x16x1024xbf16>
    %33 = vector.shape_cast %32 : vector<1x16x1024xbf16> to vector<16x1024xbf16>
    %cst_21 = arith.constant dense<0.000000e+00> : vector<16x256xf32>
    %34 = tpu.matmul %33, %20, %cst_21 {dimension_numbers = #tpu.dot_dimension_numbers<[1], [0], [0], [1], [0, 0, 1, 1], [], []>} : vector<16x1024xbf16>, vector<1024x256xbf16>, vector<16x256xf32> -> vector<16x256xf32>
    %35 = vector.shape_cast %34 : vector<16x256xf32> to vector<1x16x256xf32>
    %36 = arith.truncf %35 : vector<1x16x256xf32> to vector<1x16x256xbf16>
    %c0_22 = arith.constant 0 : index
    %c0_23 = arith.constant 0 : index
    %c0_24 = arith.constant 0 : index
    %37 = vector.load %arg8[%c0_22, %c0_23, %c0_24] : memref<1x16x256xbf16, #tpu.memory_space<vmem>>, vector<1x16x256xbf16>
    tpu.vector_store %arg8[%c0_22, %c0_23, %c0_24], %36 {strides = array<i32>} : memref<1x16x256xbf16, #tpu.memory_space<vmem>>, vector<1x16x256xbf16>,
    %c1_i32 = arith.constant 1 : i32
    %38 = arith.muli %arg0, %c1_i32 : i32
    %c2_i32 = arith.constant 2 : i32
    %39 = arith.subi %c2_i32, %38 : i32
    %c0_i32 = arith.constant 0 : i32
    %40 = arith.maxsi %39, %c0_i32 : i32
    %c1_i32_25 = arith.constant 1 : i32
    %41 = arith.minsi %40, %c1_i32_25 : i32
    %42 = tpu.iota {dimensions = array<i32: 0>} : vector<1x1x1xi32>
    %43 = vector.broadcast %41 : i32 to vector<1x1x1xi32>
    %44 = arith.cmpi slt, %42, %43 : vector<1x1x1xi32>
    %45 = arith.extui %44 : vector<1x1x1xi1> to vector<1x1x1xi32>
    %46 = arith.sitofp %45 : vector<1x1x1xi32> to vector<1x1x1xf32>
    %c16_i32 = arith.constant 16 : i32
    %47 = arith.muli %41, %c16_i32 : i32
    %48 = arith.sitofp %47 : i32 to f32
    %49 = vector.broadcast %46 : vector<1x1x1xf32> to vector<1x16x256xf32>
    %50 = arith.mulf %35, %49 : vector<1x16x256xf32>
    %cst_26 = arith.constant dense<0.000000e+00> : vector<256xf32>
    %51 = vector.multi_reduction <add>, %50, %cst_26 [0, 1] : vector<1x16x256xf32> to vector<256xf32>
    %52 = vector.shape_cast %51 : vector<256xf32> to vector<1x1x256xf32>
    %53 = vector.broadcast %48 : f32 to vector<1x1x256xf32>
    %54 = arith.divf %52, %53 : vector<1x1x256xf32>
    %55 = vector.broadcast %54 : vector<1x1x256xf32> to vector<1x16x256xf32>
    %56 = arith.subf %35, %55 : vector<1x16x256xf32>
    %57 = vector.broadcast %46 : vector<1x1x1xf32> to vector<1x16x256xf32>
    %58 = arith.mulf %56, %57 : vector<1x16x256xf32>
    %59 = arith.mulf %58, %58 : vector<1x16x256xf32>
    %cst_27 = arith.constant dense<0.000000e+00> : vector<256xf32>
    %60 = vector.multi_reduction <add>, %59, %cst_27 [0, 1] : vector<1x16x256xf32> to vector<256xf32>
    %61 = vector.shape_cast %60 : vector<256xf32> to vector<1x1x256xf32>
    %62 = tpu.concatenate %52, %61 in 1 : vector<1x1x256xf32>, vector<1x1x256xf32> -> vector<1x2x256xf32>
    %c0_28 = arith.constant 0 : index
    %c0_29 = arith.constant 0 : index
    %c0_30 = arith.constant 0 : index
    %63 = vector.load %arg9[%c0_28, %c0_29, %c0_30] : memref<1x2x256xf32, #tpu.memory_space<vmem>>, vector<1x2x256xf32>
    tpu.vector_store %arg9[%c0_28, %c0_29, %c0_30], %62 {strides = array<i32>} : memref<1x2x256xf32, #tpu.memory_space<vmem>>, vector<1x2x256xf32>,
    return
  }
  func.func @transform_0(%arg0: i32) -> (i32, i32, i32) {
    %c0_i32 = arith.constant 0 : i32
    %c0_i32_0 = arith.constant 0 : i32
    %c0_i32_1 = arith.constant 0 : i32
    return %arg0, %c0_i32, %c0_i32_0 : i32, i32, i32
  }
  func.func @transform_1(%arg0: i32) -> (i32, i32, i32) {
    %c0_i32 = arith.constant 0 : i32
    %c1_i32 = arith.constant 1 : i32
    %c0_i32_0 = arith.constant 0 : i32
    return %arg0, %c0_i32, %c1_i32 : i32, i32, i32
  }
  func.func @transform_2(%arg0: i32) -> (i32, i32, i32) {
    %c0_i32 = arith.constant 0 : i32
    %c0_i32_0 = arith.constant 0 : i32
    %c0_i32_1 = arith.constant 0 : i32
    %c0_i32_2 = arith.constant 0 : i32
    return %c0_i32, %c0_i32_0, %c0_i32_1 : i32, i32, i32
  }
  func.func @transform_3(%arg0: i32) -> (i32, i32, i32) {
    %c0_i32 = arith.constant 0 : i32
    %c0_i32_0 = arith.constant 0 : i32
    %c0_i32_1 = arith.constant 0 : i32
    %c0_i32_2 = arith.constant 0 : i32
    return %c0_i32, %c0_i32_0, %c0_i32_1 : i32, i32, i32
  }
  func.func @transform_4(%arg0: i32) -> (i32, i32, i32) {
    %c0_i32 = arith.constant 0 : i32
    %c0_i32_0 = arith.constant 0 : i32
    %c0_i32_1 = arith.constant 0 : i32
    %c0_i32_2 = arith.constant 0 : i32
    return %c0_i32, %c0_i32_0, %c0_i32_1 : i32, i32, i32
  }
  func.func @transform_5(%arg0: i32) -> (i32, i32, i32) {
    %c0_i32 = arith.constant 0 : i32
    %c0_i32_0 = arith.constant 0 : i32
    %c0_i32_1 = arith.constant 0 : i32
    %c0_i32_2 = arith.constant 0 : i32
    return %c0_i32, %c0_i32_0, %c0_i32_1 : i32, i32, i32
  }
  func.func @transform_6(%arg0: i32) -> (i32, i32) {
    %c0_i32 = arith.constant 0 : i32
    %c0_i32_0 = arith.constant 0 : i32
    %c0_i32_1 = arith.constant 0 : i32
    return %c0_i32, %c0_i32_0 : i32, i32
  }
  func.func @transform_7(%arg0: i32) -> (i32, i32, i32) {
    %c0_i32 = arith.constant 0 : i32
    %c0_i32_0 = arith.constant 0 : i32
    %c0_i32_1 = arith.constant 0 : i32
    return %arg0, %c0_i32, %c0_i32_0 : i32, i32, i32
  }
  func.func @transform_8(%arg0: i32) -> (i32, i32, i32) {
    %c0_i32 = arith.constant 0 : i32
    %c0_i32_0 = arith.constant 0 : i32
    %c0_i32_1 = arith.constant 0 : i32
    return %arg0, %c0_i32, %c0_i32_0 : i32, i32, i32
  }
}

module attributes {stable_mosaic.version = 11 : i64} {
  func.func @_head_kernel(%arg0: i32, %arg1: memref<1x16x128xbf16, #tpu.memory_space<vmem>>, %arg2: memref<1x16x128xbf16, #tpu.memory_space<vmem>>, %arg3: memref<1x1x128xf32, #tpu.memory_space<vmem>>, %arg4: memref<1x1x128xf32, #tpu.memory_space<vmem>>, %arg5: memref<1x1x128xf32, #tpu.memory_space<vmem>>, %arg6: memref<1x1x128xf32, #tpu.memory_space<vmem>>, %arg7: memref<16x4xf32, #tpu.memory_space<vmem>>, %arg8: memref<1x4xf32, #tpu.memory_space<vmem>>, %arg9: memref<1x1x4xf32, #tpu.memory_space<vmem>>) attributes {dimension_semantics = [#tpu.dimension_semantics<parallel>], iteration_bounds = array<i64: 2>, scalar_prefetch = 0 : i64, scratch_operands = 0 : i64, tpu.core_type = #tpu.core_type<tc>, window_params = [{transform_indices = @transform_0, window_bounds = array<i64: 1, 16, 128>}, {transform_indices = @transform_1, window_bounds = array<i64: 1, 16, 128>}, {pipeline_mode = #tpu.pipeline_mode<synchronous>, transform_indices = @transform_2, window_bounds = array<i64: 1, 1, 128>}, {pipeline_mode = #tpu.pipeline_mode<synchronous>, transform_indices = @transform_3, window_bounds = array<i64: 1, 1, 128>}, {pipeline_mode = #tpu.pipeline_mode<synchronous>, transform_indices = @transform_4, window_bounds = array<i64: 1, 1, 128>}, {pipeline_mode = #tpu.pipeline_mode<synchronous>, transform_indices = @transform_5, window_bounds = array<i64: 1, 1, 128>}, {pipeline_mode = #tpu.pipeline_mode<synchronous>, transform_indices = @transform_6, window_bounds = array<i64: 16, 4>}, {pipeline_mode = #tpu.pipeline_mode<synchronous>, transform_indices = @transform_7, window_bounds = array<i64: 1, 4>}, {transform_indices = @transform_8, window_bounds = array<i64: 1, 1, 4>}]} {
    %c0 = arith.constant 0 : index
    %c0_0 = arith.constant 0 : index
    %c0_1 = arith.constant 0 : index
    %0 = vector.load %arg2[%c0, %c0_0, %c0_1] : memref<1x16x128xbf16, #tpu.memory_space<vmem>>, vector<1x16x128xbf16>
    %c0_2 = arith.constant 0 : index
    %c0_3 = arith.constant 0 : index
    %c0_4 = arith.constant 0 : index
    %1 = vector.load %arg1[%c0_2, %c0_3, %c0_4] : memref<1x16x128xbf16, #tpu.memory_space<vmem>>, vector<1x16x128xbf16>
    %2 = arith.extf %1 : vector<1x16x128xbf16> to vector<1x16x128xf32>
    %c0_5 = arith.constant 0 : index
    %c0_6 = arith.constant 0 : index
    %c0_7 = arith.constant 0 : index
    %3 = vector.load %arg3[%c0_5, %c0_6, %c0_7] : memref<1x1x128xf32, #tpu.memory_space<vmem>>, vector<1x1x128xf32>
    %4 = vector.broadcast %3 : vector<1x1x128xf32> to vector<1x16x128xf32>
    %5 = arith.mulf %2, %4 : vector<1x16x128xf32>
    %c0_8 = arith.constant 0 : index
    %c0_9 = arith.constant 0 : index
    %c0_10 = arith.constant 0 : index
    %6 = vector.load %arg4[%c0_8, %c0_9, %c0_10] : memref<1x1x128xf32, #tpu.memory_space<vmem>>, vector<1x1x128xf32>
    %7 = vector.broadcast %6 : vector<1x1x128xf32> to vector<1x16x128xf32>
    %8 = arith.addf %5, %7 : vector<1x16x128xf32>
    %9 = arith.extf %0 : vector<1x16x128xbf16> to vector<1x16x128xf32>
    %c0_11 = arith.constant 0 : index
    %c0_12 = arith.constant 0 : index
    %c0_13 = arith.constant 0 : index
    %10 = vector.load %arg5[%c0_11, %c0_12, %c0_13] : memref<1x1x128xf32, #tpu.memory_space<vmem>>, vector<1x1x128xf32>
    %11 = vector.broadcast %10 : vector<1x1x128xf32> to vector<1x16x128xf32>
    %12 = arith.mulf %9, %11 : vector<1x16x128xf32>
    %13 = arith.addf %8, %12 : vector<1x16x128xf32>
    %c0_14 = arith.constant 0 : index
    %c0_15 = arith.constant 0 : index
    %c0_16 = arith.constant 0 : index
    %14 = vector.load %arg6[%c0_14, %c0_15, %c0_16] : memref<1x1x128xf32, #tpu.memory_space<vmem>>, vector<1x1x128xf32>
    %15 = vector.broadcast %14 : vector<1x1x128xf32> to vector<1x16x128xf32>
    %16 = arith.addf %13, %15 : vector<1x16x128xf32>
    %cst = arith.constant 0.000000e+00 : f32
    %17 = vector.broadcast %cst : f32 to vector<1x16x128xf32>
    %18 = arith.maximumf %16, %17 : vector<1x16x128xf32>
    %cst_17 = arith.constant dense<0.000000e+00> : vector<1x16xf32>
    %19 = vector.multi_reduction <add>, %18, %cst_17 [2] : vector<1x16x128xf32> to vector<1x16xf32>
    %cst_18 = arith.constant 1.280000e+02 : f32
    %20 = vector.broadcast %cst_18 : f32 to vector<1x16xf32>
    %21 = arith.divf %19, %20 : vector<1x16xf32>
    %c0_19 = arith.constant 0 : index
    %c0_20 = arith.constant 0 : index
    %22 = vector.load %arg7[%c0_19, %c0_20] : memref<16x4xf32, #tpu.memory_space<vmem>>, vector<16x4xf32>
    %cst_21 = arith.constant dense<0.000000e+00> : vector<1x4xf32>
    %23 = tpu.matmul %21, %22, %cst_21 {dimension_numbers = #tpu.dot_dimension_numbers<[1], [0], [0], [1], [0, 0, 1, 1], [], []>} : vector<1x16xf32>, vector<16x4xf32>, vector<1x4xf32> -> vector<1x4xf32>
    %c0_22 = arith.constant 0 : index
    %c0_23 = arith.constant 0 : index
    %24 = vector.load %arg8[%c0_22, %c0_23] : memref<1x4xf32, #tpu.memory_space<vmem>>, vector<1x4xf32>
    %25 = arith.addf %23, %24 : vector<1x4xf32>
    %cst_24 = arith.constant dense<0xFF800000> : vector<1xf32>
    %26 = vector.multi_reduction <maximumf>, %25, %cst_24 [1] : vector<1x4xf32> to vector<1xf32>
    %27 = vector.shape_cast %26 : vector<1xf32> to vector<1x1xf32>
    %28 = vector.broadcast %27 : vector<1x1xf32> to vector<1x4xf32>
    %29 = arith.subf %25, %28 : vector<1x4xf32>
    %30 = math.exp %29 : vector<1x4xf32>
    %cst_25 = arith.constant dense<0.000000e+00> : vector<1xf32>
    %31 = vector.multi_reduction <add>, %30, %cst_25 [1] : vector<1x4xf32> to vector<1xf32>
    %32 = vector.shape_cast %31 : vector<1xf32> to vector<1x1xf32>
    %33 = vector.broadcast %32 : vector<1x1xf32> to vector<1x4xf32>
    %34 = arith.divf %30, %33 : vector<1x4xf32>
    %35 = vector.shape_cast %34 : vector<1x4xf32> to vector<1x1x4xf32>
    %c0_26 = arith.constant 0 : index
    %c0_27 = arith.constant 0 : index
    %c0_28 = arith.constant 0 : index
    %36 = vector.load %arg9[%c0_26, %c0_27, %c0_28] : memref<1x1x4xf32, #tpu.memory_space<vmem>>, vector<1x1x4xf32>
    tpu.vector_store %arg9[%c0_26, %c0_27, %c0_28], %35 {strides = array<i32>} : memref<1x1x4xf32, #tpu.memory_space<vmem>>, vector<1x1x4xf32>,
    return
  }
  func.func @transform_0(%arg0: i32) -> (i32, i32, i32) {
    %c0_i32 = arith.constant 0 : i32
    %c0_i32_0 = arith.constant 0 : i32
    %c0_i32_1 = arith.constant 0 : i32
    return %arg0, %c0_i32, %c0_i32_0 : i32, i32, i32
  }
  func.func @transform_1(%arg0: i32) -> (i32, i32, i32) {
    %c0_i32 = arith.constant 0 : i32
    %c1_i32 = arith.constant 1 : i32
    %c0_i32_0 = arith.constant 0 : i32
    return %arg0, %c0_i32, %c1_i32 : i32, i32, i32
  }
  func.func @transform_2(%arg0: i32) -> (i32, i32, i32) {
    %c0_i32 = arith.constant 0 : i32
    %c0_i32_0 = arith.constant 0 : i32
    %c0_i32_1 = arith.constant 0 : i32
    %c0_i32_2 = arith.constant 0 : i32
    return %c0_i32, %c0_i32_0, %c0_i32_1 : i32, i32, i32
  }
  func.func @transform_3(%arg0: i32) -> (i32, i32, i32) {
    %c0_i32 = arith.constant 0 : i32
    %c0_i32_0 = arith.constant 0 : i32
    %c0_i32_1 = arith.constant 0 : i32
    %c0_i32_2 = arith.constant 0 : i32
    return %c0_i32, %c0_i32_0, %c0_i32_1 : i32, i32, i32
  }
  func.func @transform_4(%arg0: i32) -> (i32, i32, i32) {
    %c0_i32 = arith.constant 0 : i32
    %c0_i32_0 = arith.constant 0 : i32
    %c0_i32_1 = arith.constant 0 : i32
    %c0_i32_2 = arith.constant 0 : i32
    return %c0_i32, %c0_i32_0, %c0_i32_1 : i32, i32, i32
  }
  func.func @transform_5(%arg0: i32) -> (i32, i32, i32) {
    %c0_i32 = arith.constant 0 : i32
    %c0_i32_0 = arith.constant 0 : i32
    %c0_i32_1 = arith.constant 0 : i32
    %c0_i32_2 = arith.constant 0 : i32
    return %c0_i32, %c0_i32_0, %c0_i32_1 : i32, i32, i32
  }
  func.func @transform_6(%arg0: i32) -> (i32, i32) {
    %c0_i32 = arith.constant 0 : i32
    %c0_i32_0 = arith.constant 0 : i32
    %c0_i32_1 = arith.constant 0 : i32
    return %c0_i32, %c0_i32_0 : i32, i32
  }
  func.func @transform_7(%arg0: i32) -> (i32, i32) {
    %c0_i32 = arith.constant 0 : i32
    %c0_i32_0 = arith.constant 0 : i32
    %c0_i32_1 = arith.constant 0 : i32
    return %c0_i32, %c0_i32_0 : i32, i32
  }
  func.func @transform_8(%arg0: i32) -> (i32, i32, i32) {
    %c0_i32 = arith.constant 0 : i32
    %c0_i32_0 = arith.constant 0 : i32
    %c0_i32_1 = arith.constant 0 : i32
    return %arg0, %c0_i32, %c0_i32_0 : i32, i32, i32
  }
}

</mosaic_0001>

<bundles_post_ra>
// kernel: resnet_classifier.10
= control target key start
LH: loop header
LB: loop body
LE: loop exit
PB: predicated region body
PF: predicated region fallthrough
CT: control target
= control target key end

     0   :  { %s619_s12 = smov 0   ;;  %s684_s0 = inlined_call_operand.vmem [shape: bf16[2,16,8], index: 0, kind: input, shape index: {}]   ;;  %s685_s1 = inlined_call_operand.vmem [shape: bf16[64,128], index: 1, kind: input, shape index: {}]   ;;  %s686_s2 = inlined_call_operand.vmem [shape: bf16[2,16,128], index: 2, kind: output, shape index: {0}]   ;;  %s687_s3 = inlined_call_operand.vmem [shape: f32[2,2,128], index: 3, kind: output, shape index: {1}]  }
   0x1 LB: > { %s625_s13 = sadd.s32 4294967295, %s588_s12   ;;  %p507_p0 = scmp.ge.s32.totalorder %s588_s12, 1  ;;  %s588_s12 = sphi %s619_s12, %s14_s12  }
   0x2   : > { %p140_p1 = scmp.lt.s32.totalorder %s588_s12, 3 }
   0x4   : > { %p141_p2 = pnand %p507_p0, %p140_p1 }
   0x5   : > { %p168_p3 = scmp.lt.s32.totalorder (!%p141_p2), %s625_s13, 1  ;;  %s591_s27 = smov (!%p141_p2), 16  }
   0x6   : > { %144 = sbr.rel (%p141_p2) target bundleno = 392 (0x188), region = 28  ;;  %s592_s28 = smov (!%p141_p2), 32  }
   0x7   : > { %s593_s29 = smov (!%p141_p2), 8   ;;  %s594_s30 = smov (!%p141_p2), 24  }
   0x8   : > { %s596_s4 = smov (!%p141_p2), 40   ;;  %s597_s5 = smov (!%p141_p2), 48  }
   0x9   : > { %s598_s6 = smov (!%p141_p2), 56   ;;  %s378_s7 = ssub.s32 (!%p141_p2), 2, %s625_s13 }
   0xa   : > { %p379_p4 = scmp.gt.s32.totalorder (!%p141_p2), %s378_s7, 0  ;;  %p521_p5 = scmp.lt.s32.totalorder (!%p141_p2), %s378_s7, 1 }
   0xb   : > { %s631_s14 = scalar_select %p168_p3, %s625_s13, 1  ;;  %v590_v0 = vmov 0.0   ;;  %v576_v1 = vld [vmem:[%s685_s1 + $0x18] sm:$0xff]   ;;  %v577_v2 = vld [vmem:[%s685_s1 + $0x10] sm:$0xff]   ;;  %vm207_vm0 = vcmask 1041408   ;;  %v578_v8 = vld [vmem:[%s685_s1 + $0x8] sm:$0xff]  }
   0xc   : > { %546 = vmatprep.subr.bf16.mxu0 %v590_v0  ;;  %vm208_vm1 = vsmask.f32 1280  ;;  %vm229_vm3 = vcmask 1046528   ;;  %vm247_vm4 = vcmask 1045504   ;;  %vm212_vm5 = vsmask.f32 7424 }
   0xd   : > { %s530_s15 = sshll.u32 %s631_s14, 3  ;;  %547 = vmatpush3.bf16.msra.mxu0 %v576_v1  ;;  %vm209_vm2 = vmand %vm207_vm0, %vm208_vm1  ;;  %vm235_vm6 = vsmask.f32 6400  ;;  %vm263_vm7 = vcmask 1044480   ;;  %v579_v16 = vld [vmem:[%s685_s1] sm:$0xff]   ;;  %vm595_vm9 = vmmov 0  }
   0xe   : > { %s172_s20 = scalar_lea.vmem %s684_s0, %s530_s15  ;;  %548 = vmatprep.subr.bf16.mxu0 %v590_v0  ;;  %vm253_vm8 = vsmask.f32 5376  ;;  %554 = vmatprep.mubr.msk.bf16.mxu0 %vm595_vm9, %v590_v0  ;;  %vm269_vm10 = vsmask.f32 4352  ;;  %vm279_vm11 = vcmask 64512   ;;  %vm282_vm12 = vcmask 130048   ;;  %s177_s17 = scalar_lea.vmem %s686_s2, %s530_s15 }
   0xf   : > { %v575_v3 = vld [vmem:[%s172_s20] sm:$0xff]   ;;  %vm285_vm13 = vcmask 195584   ;;  %vm288_vm14 = vcmask 261120   ;;  %vm291_vm15 = vcmask 326656   ;;  %vm294_vm0 = vcmask 392192   ;;  %s380_s8 = scalar_select %p379_p4, %s378_s7, 0 }
  0x10   : > { %v199_v4 = vshrl.u32 %v575_v3, 16  ;;  %v202_v5 = vshll.u32 %v575_v3, 16  ;;  %vm297_vm1 = vcmask 457728   ;;  %s512_s13 = sshll.u32 %s631_s14, 1 }
  0x11   : > { %549 = vmatpush3.bf16.msra.mxu0 %v577_v2  ;;  %s689_s8 = smov (!%p521_p5, %s380_s8), 1  ;;  %s181_s19 = scalar_lea.vmem %s687_s3, %s512_s13 }
  0x12   : > { %v201_v6 = vrot.slane %v199_v4, 6  ;;  %v204_v7 = vrot.slane %v202_v5, 7  ;;  %550 = vmatprep.subr.bf16.mxu0 %v590_v0  ;;  %s527_s9 = sshll.u32 %s689_s8, 4  ;;  %v383_v2 = vstv %s689_s8 }
  0x13   : > { %s388_s10 = scvt.s32.f32 %s527_s9 }
  0x14   : > { %v205_v9 = vor.u32 %v204_v7, %v201_v6 }
  0x15   : > { %551 = vmatpush3.bf16.msra.mxu0 %v578_v8  ;;  %v398_v5 = vstv %s388_s10 }
  0x16   : > { %v651_v10 = vsel %vm209_vm2, 0, %v205_v9  ;;  %v211_v11 = vsel %vm209_vm2, %v205_v9, 0  ;;  %552 = vmatprep.subr.bf16.mxu0 %v590_v0  ;;  %vm324_vm2 = vcmask 523264   ;;  %580 = vrcp.f32 %v398_v5 }
  0x17   : > { %v230_v12 = vrot.slane %v651_v10, 1  ;;  %v231_v13 = vrot.slane %v211_v11, 1  ;;  %v248_v14 = vrot.slane %v651_v10, 2  ;;  %v249_v15 = vrot.slane %v211_v11, 2 }
  0x18   : > { %v214_v17 = vshrl.u32 %v651_v10, 16  ;;  %v216_v18 = vshll.u32 %v651_v10, 16  ;;  %v221_v19 = vshll.u32 %v211_v11, 16  ;;  %v239_v20 = vshrl.u32 %v211_v11, 16 }
  0x19   : > { %v232_v21 = vsel %vm229_vm3, %v230_v12, %v231_v13  ;;  %v250_v22 = vsel %vm247_vm4, %v248_v14, %v249_v15  ;;  %v264_v23 = vrot.slane %v651_v10, 3  ;;  %553 = vmatpush3.bf16.msra.mxu0 %v579_v16  ;;  %v265_v38 = vrot.slane %v211_v11, 3 }
  0x1a   : > { %233 = vrot.lane.b32.xlu0 %v232_v21, %s591_s27  ;;  %251 = vrot.lane.b32.xlu1 %v250_v22, %s592_s28  ;;  %v218_v24 = vrot.slane %v216_v18, 1  ;;  %v223_v25 = vrot.slane %v221_v19, 1  ;;  %v236_v26 = vrot.slane %v214_v17, 1  ;;  %v237_v27 = vrot.slane %v216_v18, 2 }
  0x1b   : > { %v241_v28 = vrot.slane %v239_v20, 1  ;;  %v242_v29 = vrot.slane %v221_v19, 2  ;;  %v254_v30 = vrot.slane %v214_v17, 2  ;;  %v255_v31 = vrot.slane %v216_v18, 3 }
  0x1c   : > { %v219_v32 = vor.u32 %v218_v24, %v214_v17  ;;  %v238_v33 = vor.u32 %v237_v27, %v236_v26  ;;  %v257_v34 = vrot.slane %v239_v20, 2  ;;  %v258_v35 = vrot.slane %v221_v19, 3 }
  0x1d   : > { %v243_v36 = vor.u32 %v242_v29, %v241_v28  ;;  %v256_v37 = vor.u32 %v255_v31, %v254_v30  ;;  %v270_v39 = vrot.slane %v214_v17, 3  ;;  %v271_v42 = vrot.slane %v216_v18, 4 }
  0x1e   : > { %v224_v40 = vsel %vm212_vm5, %v219_v32, %v223_v25  ;;  %v259_v41 = vor.u32 %v258_v35, %v257_v34  ;;  %v273_v43 = vrot.slane %v239_v20, 3  ;;  %v274_v45 = vrot.slane %v221_v19, 4 }
  0x1f   : > { %225 = vrot.lane.b32.xlu0 %v224_v40, %s593_s29  ;;  %v244_v44 = vsel %vm235_vm6, %v238_v33, %v243_v36  ;;  %v272_v47 = vor.u32 %v271_v42, %v270_v39  ;;  %v266_v48 = vsel %vm263_vm7, %v264_v23, %v265_v38  ;;  %vm384_vm3 = vcmp.gt.s32.totalorder %v383_v2, 0 }
  0x20   : > { %245 = vrot.lane.b32.xlu1 %v244_v44, %s594_s30  ;;  %v260_v46 = vsel %vm253_vm8, %v256_v37, %v259_v41  ;;  %v275_v49 = vor.u32 %v274_v45, %v273_v43  ;;  %v526_v4 = vsel %vm384_vm3, 1.0, %v590_v0  ;;  %vm414_vm4 = vcmask 1040384  }
  0x22   : > { %v276_v50 = vsel %vm269_vm10, %v272_v47, %v275_v49 }
  0x23   : > { %261 = vrot.lane.b32.xlu0 %v260_v46, %s596_s4  ;;  %v581_v17 = vpop.eup %580 }
  0x24   : > { %267 = vrot.lane.b32.xlu1 %v266_v48, %s597_s5 }
  0x27   : > { %277 = vrot.lane.b32.xlu0 %v276_v50, %s598_s6 }
  0x8c   : > { %v234_v51 = vpop.permute.xlu0 %233  ;;  %v252_v52 = vpop.permute.xlu1 %251 }
  0x91   : > { %v226_v53 = vpop.permute.xlu0 %225 }
  0x92   : > { %v281_v54 = vsel %vm279_vm11, %v651_v10, %v226_v53  ;;  %v246_v55 = vpop.permute.xlu1 %245 }
  0x93   : > { %v284_v56 = vsel %vm282_vm12, %v281_v54, %v234_v51 }
  0x94   : > { %v287_v57 = vsel %vm285_vm13, %v284_v56, %v246_v55 }
  0x95   : > { %v290_v58 = vsel %vm288_vm14, %v287_v57, %v252_v52  ;;  %v262_v59 = vpop.permute.xlu0 %261 }
  0x96   : > { %v293_v60 = vsel %vm291_vm15, %v290_v58, %v262_v59  ;;  %v268_v61 = vpop.permute.xlu1 %267 }
  0x97   : > { %v296_v62 = vsel %vm294_vm0, %v293_v60, %v268_v61 }
  0x99   : > { %v278_v63 = vpop.permute.xlu0 %277 }
  0x9a   : > { %v299_v1 = vsel %vm297_vm1, %v296_v62, %v278_v63 }
  0x9b   : > { %555 = vmatmul.mubr.msk.bf16.vlgmr.msra.gmra.mxu0 %vm324_vm2, %v299_v1 }
 0x15b   : > { %v361_v3 = vpop.f32.mrf.mxu0 }
 0x15c   : > { %v389_v8 = vmul.f32 %v526_v4, %v361_v3 }
 0x15d   : > { %v556_v6 = vpop.f32.mrf.mxu0 }
 0x15f   : > { %v364_v7 = vpop.f32.mrf.mxu0 }
 0x160   : > { %v539_v9 = vpack.c.bf16 %v364_v7, %v361_v3  ;;  %v390_v10 = vmul.f32 %v526_v4, %v364_v7 }
 0x161   : > { %v557_v11 = vpop.f32.mrf.mxu0 }
 0x162   : > { %540 = vst [vmem:[%s177_s17] sm:$0xff] %v539_v9   ;;  %v391_v12 = vadd.f32 %v390_v10, %v389_v8 }
 0x164   : > { %v392_v13 = vrot.slane %v391_v12, 4 }
 0x166   : > { %v393_v14 = vadd.f32 %v392_v13, %v391_v12 }
 0x168   : > { %v394_v15 = vrot.slane %v393_v14, 2 }
 0x16a   : > { %v395_v16 = vadd.f32 %v394_v15, %v393_v14 }
 0x16c   : > { %v396_v0 = vrot.slane %v395_v16, 1 }
 0x16e   : > { %v397_v18 = vadd.f32 %v396_v0, %v395_v16 }
 0x170   : > { %v400_v19 = vmul.f32 %v581_v17, %v397_v18 }
 0x172   : > { %v401_v20 = vsub.f32 %v361_v3, %v400_v19  ;;  %v402_v21 = vsub.f32 %v364_v7, %v400_v19 }
 0x174   : > { %v403_v22 = vmul.f32 %v526_v4, %v401_v20  ;;  %v404_v23 = vmul.f32 %v526_v4, %v402_v21 }
 0x176   : > { %v405_v24 = vmul.f32 %v403_v22, %v403_v22  ;;  %v406_v25 = vmul.f32 %v404_v23, %v404_v23 }
 0x178   : > { %v407_v26 = vadd.f32 %v406_v25, %v405_v24 }
 0x17a   : > { %v408_v27 = vrot.slane %v407_v26, 4 }
 0x17c   : > { %v409_v28 = vadd.f32 %v408_v27, %v407_v26 }
 0x17e   : > { %v410_v29 = vrot.slane %v409_v28, 2 }
 0x180   : > { %v411_v30 = vadd.f32 %v410_v29, %v409_v28 }
 0x182   : > { %v412_v31 = vrot.slane %v411_v30, 1 }
 0x184   : > { %v413_v32 = vadd.f32 %v412_v31, %v411_v30 }
 0x186   : > { %v415_v33 = vsel %vm414_vm4, %v397_v18, %v413_v32 }
 0x187   : > { %416 = vst [vmem:[%s181_s19] sm:$0x3] %v415_v33 }
 0x188 PF: > { %s14_s12 = sadd.s32 1, %s588_s12  }
 0x189   : > { %p11_p6 = scmp.ge.s32.totalorder %s14_s12, 4  }
 0x18b   :  { %13 = sbr.rel (!%p11_p6) target bundleno = 1 (0x1), region = 70 }

// kernel: resnet_classifier.12
= control target key start
LH: loop header
LB: loop body
LE: loop exit
PB: predicated region body
PF: predicated region fallthrough
CT: control target
= control target key end

     0   :  { %s694_s18 = smov 0   ;;  %s789_s0 = inlined_call_operand.vmem [shape: bf16[2,16,64], index: 0, kind: input, shape index: {}]   ;;  %s790_s1 = inlined_call_operand.vmem [shape: f32[1,1,64], index: 1, kind: input, shape index: {}]   ;;  %s791_s2 = inlined_call_operand.vmem [shape: f32[1,1,64], index: 2, kind: input, shape index: {}]   ;;  %s792_s3 = inlined_call_operand.vmem [shape: bf16[192,64], index: 3, kind: input, shape index: {}]   ;;  %s793_s4 = inlined_call_operand.vmem [shape: bf16[2,16,64], index: 4, kind: output, shape index: {0}]   ;;  %s794_s5 = inlined_call_operand.vmem [shape: f32[2,2,64], index: 5, kind: output, shape index: {1}]  }
   0x1 LB: > { %s700_s19 = sadd.s32 4294967295, %s659_s18   ;;  %p586_p0 = scmp.ge.s32.totalorder %s659_s18, 1  ;;  %s659_s18 = sphi %s694_s18, %s16_s18  }
   0x2   : > { %p190_p1 = scmp.lt.s32.totalorder %s659_s18, 3 }
   0x4   : > { %p191_p2 = pnand %p586_p0, %p190_p1 }
   0x5   : > { %p222_p3 = scmp.lt.s32.totalorder (!%p191_p2), %s700_s19, 1  ;;  %s662_s24 = smov (!%p191_p2), 64  }
   0x6   : > { %194 = sbr.rel (%p191_p2) target bundleno = 395 (0x18b), region = 36  ;;  %s452_s8 = ssub.s32 (!%p191_p2), 2, %s700_s19 }
   0x7   : > { %p453_p4 = scmp.gt.s32.totalorder (!%p191_p2), %s452_s8, 0  ;;  %p609_p5 = scmp.lt.s32.totalorder (!%p191_p2), %s452_s8, 1 }
   0xb   : > { %s706_s20 = scalar_select %p222_p3, %s700_s19, 1  ;;  %v661_v0 = vmov 0   ;;  %v639_v1 = vld [vmem:[%s792_s3 + $0x38] sm:$0xff]   ;;  %v640_v2 = vld [vmem:[%s792_s3 + $0x30] sm:$0xff]   ;;  %v592_v4 = vld [vmem:[%s790_s1] ss:$0 sm:$0xff] }
   0xc   : > { %400 = vmatprep.subr.bf16.mxu0 %v661_v0  ;;  %v593_v7 = vld [vmem:[%s791_s2] ss:$0 sm:$0xff]  ;;  %v641_v10 = vld [vmem:[%s792_s3 + $0x28] sm:$0xff]   ;;  %vm295_vm0 = vcmask 1040384   ;;  %vm296_vm1 = vsmask.f32 256 }
   0xd   : > { %s618_s23 = sshll.u32 %s706_s20, 3  ;;  %401 = vmatpush1.bf16.msra.mxu0 %v639_v1  ;;  %v642_v15 = vld [vmem:[%s792_s3 + $0x20] sm:$0xff]   ;;  %v643_v19 = vld [vmem:[%s792_s3 + $0x18] sm:$0xff]   ;;  %vm297_vm2 = vmand %vm295_vm0, %vm296_vm1  ;;  %vm317_vm3 = vcmask 1046528   ;;  %vm321_vm4 = vcmask 523264   ;;  %vm449_vm7 = vcmask 519168  }
   0xe   : > { %s226_s26 = scalar_lea.vmem %s789_s0, %s618_s23  ;;  %402 = vmatprep.subr.bf16.mxu0 %v661_v0  ;;  %v644_v23 = vld [vmem:[%s792_s3 + $0x10] sm:$0xff]   ;;  %v645_v30 = vld [vmem:[%s792_s3 + $0x8] sm:$0xff]   ;;  %vm300_vm5 = vsmask.f32 7424  ;;  %v646_v35 = vld [vmem:[%s792_s3] sm:$0xff]   ;;  %s231_s14 = scalar_lea.vmem %s793_s4, %s618_s23  ;;  %v663_v45 = vmov 0.0  }
   0xf   : > { %v625_v3 = vld [vmem:[%s226_s26] sm:$0xff]   ;;  %v647_v37 = vld [vmem:[%s792_s3 + $0x58] sm:$0xff]   ;;  %v648_v38 = vld [vmem:[%s792_s3 + $0x50] sm:$0xff]   ;;  %s454_s9 = scalar_select %p453_p4, %s452_s8, 0  ;;  %vm494_vm8 = vcmask 517120  }
  0x10   : > { %v626_v5 = vunpack.c.l.bf16 %v625_v3  ;;  %v627_v6 = vunpack.c.h.bf16 %v625_v3  ;;  %v649_v39 = vld [vmem:[%s792_s3 + $0x48] sm:$0xff]   ;;  %v650_v40 = vld [vmem:[%s792_s3 + $0x40] sm:$0xff]   ;;  %s591_s19 = sshll.u32 %s706_s20, 1 }
  0x11   : > { %403 = vmatpush1.bf16.msra.mxu0 %v640_v2  ;;  %s796_s9 = smov (!%p609_p5, %s454_s9), 1  ;;  %s235_s16 = scalar_lea.vmem %s794_s5, %s591_s19 }
  0x12   : > { %v248_v8 = vmul.f32 %v626_v5, %v592_v4  ;;  %v249_v9 = vmul.f32 %v627_v6, %v592_v4  ;;  %404 = vmatprep.subr.bf16.mxu0 %v661_v0  ;;  %v457_v43 = vstv %s796_s9  ;;  %s615_s10 = sshll.u32 %s796_s9, 4 }
  0x13   : > { %vm458_vm6 = vcmp.gt.s32.totalorder %v457_v43, 0  ;;  %s462_s11 = scvt.s32.f32 %s615_s10 }
  0x14   : > { %v257_v11 = vadd.f32 %v593_v7, %v248_v8  ;;  %v258_v12 = vadd.f32 %v593_v7, %v249_v9  ;;  %v614_v46 = vsel %vm458_vm6, 1.0, %v663_v45 }
  0x15   : > { %405 = vmatpush1.bf16.msra.mxu0 %v641_v10  ;;  %v474_v50 = vstv %s462_s11 }
  0x16   : > { %v259_v13 = vmax.f32 %v257_v11, 0.0  ;;  %v260_v14 = vmax.f32 %v258_v12, 0.0  ;;  %406 = vmatprep.subr.bf16.mxu0 %v661_v0  ;;  %651 = vrcp.f32 %v474_v50 }
  0x18   : > { %v261_v16 = vpack.c.bf16 %v260_v14, %v259_v13 }
  0x19   : > { %407 = vmatpush1.bf16.msra.mxu0 %v642_v15 }
  0x1a   : > { %v287_v17 = vshrl.u32 %v261_v16, 16  ;;  %v290_v18 = vshll.u32 %v261_v16, 16  ;;  %408 = vmatprep.subr.bf16.mxu0 %v661_v0 }
  0x1c   : > { %v289_v20 = vrot.slane %v287_v17, 7 }
  0x1d   : > { %409 = vmatpush1.bf16.msra.mxu0 %v643_v19 }
  0x1e   : > { %v292_v21 = vor.u32 %v290_v18, %v289_v20  ;;  %v299_v22 = vsel %vm297_vm2, %v289_v20, 0  ;;  %410 = vmatprep.subr.bf16.mxu0 %v661_v0 }
  0x1f   : > { %v309_v24 = vshll.u32 %v299_v22, 16  ;;  %v319_v25 = vrot.slane %v299_v22, 1 }
  0x20   : > { %v298_v26 = vsel %vm297_vm2, 0, %v292_v21 }
  0x21   : > { %v302_v27 = vshrl.u32 %v298_v26, 16  ;;  %v304_v28 = vshll.u32 %v298_v26, 16  ;;  %v318_v29 = vrot.slane %v298_v26, 1  ;;  %411 = vmatpush1.bf16.msra.mxu0 %v644_v23  ;;  %v311_v32 = vrot.slane %v309_v24, 1 }
  0x22   : > { %412 = vmatprep.subr.bf16.mxu0 %v661_v0 }
  0x23   : > { %v306_v31 = vrot.slane %v304_v28, 1  ;;  %v320_v33 = vsel %vm317_vm3, %v318_v29, %v319_v25  ;;  %v652_v63 = vpop.eup %651 }
  0x24   : > { %606 = vmatprep.mubr.msk.bf16.mxu0 %vm321_vm4, %v320_v33 }
  0x25   : > { %v307_v34 = vor.u32 %v306_v31, %v302_v27  ;;  %413 = vmatpush1.bf16.msra.mxu0 %v645_v30 }
  0x26   : > { %414 = vmatprep.subr.bf16.mxu0 %v661_v0 }
  0x27   : > { %v312_v36 = vsel %vm300_vm5, %v307_v34, %v311_v32 }
  0x28   : > { %313 = vrot.lane.b32.xlu0 %v312_v36, %s662_s24 }
  0x29   : > { %415 = vmatpush1.bf16.msra.mxu0 %v646_v35 }
  0x2a   : > { %424 = vmatprep.subr.bf16.mxu0 %v661_v0 }
  0x2d   : > { %425 = vmatpush2.bf16.msra.mxu0 %v647_v37 }
  0x2e   : > { %426 = vmatprep.subr.bf16.mxu0 %v661_v0 }
  0x31   : > { %427 = vmatpush2.bf16.msra.mxu0 %v648_v38 }
  0x32   : > { %428 = vmatprep.subr.bf16.mxu0 %v661_v0 }
  0x35   : > { %429 = vmatpush2.bf16.msra.mxu0 %v649_v39 }
  0x36   : > { %430 = vmatprep.subr.bf16.mxu0 %v661_v0 }
  0x39   : > { %431 = vmatpush2.bf16.msra.mxu0 %v650_v40 }
  0x9a   : > { %v314_v41 = vpop.permute.xlu0 %313 }
  0x9b   : > { %v323_v42 = vsel %vm321_vm4, %v298_v26, %v314_v41 }
  0x9c   : > { %433 = vmatmul.mubr.bf16.vlgmr.msra.gmra.mxu0 %v323_v42 }
 0x15c   : > { %v434_v44 = vpop.f32.mrf.mxu0 }
 0x15d   : > { %v620_v47 = vpack.c.bf16 %v434_v44, %v434_v44  ;;  %v463_v49 = vmul.f32 %v614_v46, %v434_v44 }
 0x15e   : > { %v436_v48 = vpop.f32.mrf.mxu0 }
 0x15f   : > { %450 = vst.msk [vmem:[%s231_s14] sm:$0xf] %vm449_vm7, %v620_v47  ;;  %v465_v55 = vsel %vm321_vm4, %v463_v49, 0.0 }
 0x160   : > { %v437_v51 = vpop.f32.mrf.mxu0 }
 0x161   : > { %v621_v52 = vpack.c.bf16 %v437_v51, %v437_v51  ;;  %v464_v53 = vmul.f32 %v614_v46, %v437_v51 }
 0x162   : > { %v439_v54 = vpop.f32.mrf.mxu0 }
 0x163   : > { %451 = vst.msk [vmem:[%s231_s14 + $0x4] sm:$0xf] %vm449_vm7, %v621_v52  ;;  %v466_v56 = vsel %vm321_vm4, %v464_v53, 0.0 }
 0x164   : > { %v467_v57 = vadd.f32 %v466_v56, %v465_v55 }
 0x166   : > { %v468_v58 = vrot.slane %v467_v57, 4 }
 0x168   : > { %v469_v59 = vadd.f32 %v468_v58, %v467_v57 }
 0x16a   : > { %v470_v60 = vrot.slane %v469_v59, 2 }
 0x16c   : > { %v471_v61 = vadd.f32 %v470_v60, %v469_v59 }
 0x16e   : > { %v472_v62 = vrot.slane %v471_v61, 1 }
 0x170   : > { %v473_v0 = vadd.f32 %v472_v62, %v471_v61 }
 0x172   : > { %v476_v1 = vmul.f32 %v652_v63, %v473_v0 }
 0x174   : > { %v477_v2 = vsub.f32 %v434_v44, %v476_v1  ;;  %v478_v3 = vsub.f32 %v437_v51, %v476_v1 }
 0x176   : > { %v479_v4 = vmul.f32 %v614_v46, %v477_v2  ;;  %v480_v5 = vmul.f32 %v614_v46, %v478_v3 }
 0x178   : > { %v481_v6 = vmul.f32 %v479_v4, %v479_v4  ;;  %v482_v7 = vmul.f32 %v480_v5, %v480_v5 }
 0x17a   : > { %v483_v8 = vsel %vm321_vm4, %v481_v6, 0.0  ;;  %v484_v9 = vsel %vm321_vm4, %v482_v7, 0.0 }
 0x17b   : > { %v485_v10 = vadd.f32 %v484_v9, %v483_v8 }
 0x17d   : > { %v486_v11 = vrot.slane %v485_v10, 4 }
 0x17f   : > { %v487_v12 = vadd.f32 %v486_v11, %v485_v10 }
 0x181   : > { %v488_v13 = vrot.slane %v487_v12, 2 }
 0x183   : > { %v489_v14 = vadd.f32 %v488_v13, %v487_v12 }
 0x185   : > { %v490_v15 = vrot.slane %v489_v14, 1 }
 0x187   : > { %v491_v16 = vadd.f32 %v490_v15, %v489_v14 }
 0x189   : > { %v493_v17 = vsel %vm295_vm0, %v473_v0, %v491_v16 }
 0x18a   : > { %495 = vst.msk [vmem:[%s235_s16] sm:$0x3] %vm494_vm8, %v493_v17 }
 0x18b PF: > { %s16_s18 = sadd.s32 1, %s659_s18  }
 0x18c   : > { %p13_p6 = scmp.ge.s32.totalorder %s16_s18, 4  }
 0x18e   :  { %15 = sbr.rel (!%p13_p6) target bundleno = 1 (0x1), region = 78 }

// kernel: resnet_classifier.11
= control target key start
LH: loop header
LB: loop body
LE: loop exit
PB: predicated region body
PF: predicated region fallthrough
CT: control target
= control target key end

     0   :  { %s864_s18 = smov 0   ;;  %s980_s0 = inlined_call_operand.vmem [shape: bf16[2,16,128], index: 0, kind: input, shape index: {}]   ;;  %s981_s1 = inlined_call_operand.vmem [shape: f32[1,1,64], index: 1, kind: input, shape index: {}]   ;;  %s982_s2 = inlined_call_operand.vmem [shape: f32[1,1,64], index: 2, kind: input, shape index: {}]   ;;  %s983_s3 = inlined_call_operand.vmem [shape: bf16[320,64], index: 3, kind: input, shape index: {}]   ;;  %s984_s4 = inlined_call_operand.vmem [shape: bf16[2,16,64], index: 4, kind: output, shape index: {0}]   ;;  %s985_s5 = inlined_call_operand.vmem [shape: f32[2,2,64], index: 5, kind: output, shape index: {1}]  }
   0x1 LB: > { %s870_s19 = sadd.s32 4294967295, %s829_s18   ;;  %p701_p0 = scmp.ge.s32.totalorder %s829_s18, 1  ;;  %s829_s18 = sphi %s864_s18, %s16_s18  }
   0x2   : > { %p190_p1 = scmp.lt.s32.totalorder %s829_s18, 3 }
   0x4   : > { %p191_p2 = pnand %p701_p0, %p190_p1 }
   0x5   : > { %p222_p3 = scmp.lt.s32.totalorder (!%p191_p2), %s870_s19, 1  ;;  %s833_s24 = smov (!%p191_p2), 64  }
   0x6   : > { %194 = sbr.rel (%p191_p2) target bundleno = 401 (0x191), region = 36  ;;  %s568_s28 = ssub.s32 (!%p191_p2), 2, %s870_s19 }
   0x7   : > { %p569_p4 = scmp.gt.s32.totalorder (!%p191_p2), %s568_s28, 0  ;;  %p732_p5 = scmp.lt.s32.totalorder (!%p191_p2), %s568_s28, 1 }
   0xb   : > { %v801_v0 = vld [vmem:[%s983_s3 + $0x78] sm:$0xff]   ;;  %s879_s22 = scalar_select %p222_p3, %s870_s19, 1  ;;  %v707_v2 = vld [vmem:[%s981_s1] ss:$0 sm:$0xff]  ;;  %v803_v3 = vld [vmem:[%s983_s3 + $0x70] sm:$0xff]   ;;  %v831_v7 = vmov 0.0  }
   0xc   : > { %v802_v1 = vld [vmem:[%s983_s3 + $0x38] sm:$0xff]   ;;  %751 = vmatprep.subr.bf16.mxu0 %v801_v0  ;;  %v804_v4 = vld [vmem:[%s983_s3 + $0x30] sm:$0xff]   ;;  %v805_v6 = vld [vmem:[%s983_s3 + $0x68] sm:$0xff]   ;;  %778 = vmatprep.subr.bf16.mxu1 %v831_v7  ;;  %vm304_vm0 = vcmask 1040384   ;;  %vm328_vm1 = vsmask.f32 6400 }
   0xd   : > { %s741_s25 = sshll.u32 %s879_s22, 3  ;;  %752 = vmatpush3.bf16.msra.mxu0 %v802_v1  ;;  %v708_v10 = vld [vmem:[%s982_s2] ss:$0 sm:$0xff]  ;;  %v806_v11 = vld [vmem:[%s983_s3 + $0x28] sm:$0xff]   ;;  %v809_v15 = vld [vmem:[%s983_s3 + $0x98] sm:$0xff]   ;;  %vm832_vm2 = vmmov 0  }
   0xe   : > { %s226_s7 = scalar_lea.vmem %s980_s0, %s741_s25  ;;  %753 = vmatprep.subr.bf16.mxu0 %v803_v3  ;;  %v807_v14 = vld [vmem:[%s983_s3 + $0x60] sm:$0xff]   ;;  %779 = vmatpush3.bf16.msra.mxu1 %v809_v15  ;;  %v810_v19 = vld [vmem:[%s983_s3 + $0x58] sm:$0xff]   ;;  %v812_v22 = vld [vmem:[%s983_s3 + $0x90] sm:$0xff]   ;;  %vm340_vm3 = vcmask 1045504   ;;  %vm309_vm4 = vsmask.f32 7424  ;;  %s231_s8 = scalar_lea.vmem %s984_s4, %s741_s25 }
   0xf   : > { %v748_v5 = vld [vmem:[%s226_s7] sm:$0xff]   ;;  %780 = vmatprep.subr.bf16.mxu1 %v831_v7  ;;  %v811_v24 = vld [vmem:[%s983_s3 + $0x18] sm:$0xff]   ;;  %v813_v25 = vld [vmem:[%s983_s3 + $0x50] sm:$0xff]   ;;  %786 = vmatprep.mubr.msk.bf16.mxu1 %vm832_vm2, %v831_v7  ;;  %vm344_vm5 = vcmask 523264   ;;  %vm324_vm6 = vcmask 1046528   ;;  %s987_s28 = smov (!%p569_p4, %s568_s28), 0 }
  0x10   : > { %v749_v8 = vunpack.c.l.bf16 %v748_v5  ;;  %v750_v9 = vunpack.c.h.bf16 %v748_v5  ;;  %v808_v18 = vld [vmem:[%s983_s3 + $0x20] sm:$0xff]   ;;  %v815_v27 = vld [vmem:[%s983_s3 + $0x88] sm:$0xff]   ;;  %v814_v30 = vld [vmem:[%s983_s3 + $0x10] sm:$0xff]   ;;  %s989_s28 = smov (!%p732_p5, %s987_s28), 1  ;;  %vm565_vm8 = vcmask 519168   ;;  %s706_s19 = sshll.u32 %s879_s22, 1 }
  0x11   : > { %754 = vmatpush3.bf16.msra.mxu0 %v804_v4  ;;  %v818_v31 = vld [vmem:[%s983_s3 + $0x80] sm:$0xff]   ;;  %v816_v36 = vld [vmem:[%s983_s3 + $0x48] sm:$0xff]   ;;  %s738_s29 = sshll.u32 %s989_s28, 4  ;;  %s235_s10 = scalar_lea.vmem %s985_s5, %s706_s19  ;;  %vm609_vm9 = vcmask 517120  }
  0x12   : > { %v248_v12 = vmul.f32 %v749_v8, %v707_v2  ;;  %v249_v13 = vmul.f32 %v750_v9, %v707_v2  ;;  %755 = vmatprep.subr.bf16.mxu0 %v805_v6  ;;  %781 = vmatpush3.bf16.msra.mxu1 %v812_v22  ;;  %v817_v45 = vld [vmem:[%s983_s3 + $0x8] sm:$0xff]   ;;  %v819_v49 = vld [vmem:[%s983_s3 + $0x40] sm:$0xff]   ;;  %v573_v2 = vstv %s989_s28  ;;  %s578_s30 = scvt.s32.f32 %s738_s29 }
  0x13   : > { %782 = vmatprep.subr.bf16.mxu1 %v831_v7  ;;  %v820_v53 = vld [vmem:[%s983_s3] sm:$0xff]   ;;  %vm574_vm7 = vcmp.gt.s32.totalorder %v573_v2, 0 }
  0x14   : > { %v257_v16 = vadd.f32 %v708_v10, %v248_v12  ;;  %v258_v17 = vadd.f32 %v708_v10, %v249_v13  ;;  %v737_v8 = vsel %vm574_vm7, 1.0, %v831_v7  ;;  %v590_v13 = vstv %s578_s30 }
  0x15   : > { %756 = vmatpush3.bf16.msra.mxu0 %v806_v11  ;;  %821 = vrcp.f32 %v590_v13 }
  0x16   : > { %v259_v20 = vmax.f32 %v257_v16, 0.0  ;;  %v260_v21 = vmax.f32 %v258_v17, 0.0  ;;  %757 = vmatprep.subr.bf16.mxu0 %v807_v14  ;;  %783 = vmatpush3.bf16.msra.mxu1 %v815_v27 }
  0x17   : > { %784 = vmatprep.subr.bf16.mxu1 %v831_v7 }
  0x18   : > { %v261_v23 = vpack.c.bf16 %v260_v21, %v259_v20 }
  0x19   : > { %758 = vmatpush3.bf16.msra.mxu0 %v808_v18 }
  0x1a   : > { %v303_v26 = vrot.slane %v261_v23, 7  ;;  %759 = vmatprep.subr.bf16.mxu0 %v810_v19  ;;  %785 = vmatpush3.bf16.msra.mxu1 %v818_v31 }
  0x1c   : > { %v307_v28 = vsel %vm304_vm0, 0, %v303_v26  ;;  %v308_v29 = vsel %vm304_vm0, %v303_v26, 0 }
  0x1d   : > { %v310_v32 = vshrl.u32 %v307_v28, 16  ;;  %v312_v33 = vshll.u32 %v307_v28, 16  ;;  %v316_v34 = vshll.u32 %v308_v29, 16  ;;  %v332_v35 = vshrl.u32 %v308_v29, 16  ;;  %760 = vmatpush3.bf16.msra.mxu0 %v811_v24 }
  0x1e   : > { %761 = vmatprep.subr.bf16.mxu0 %v813_v25  ;;  %v341_v46 = vrot.slane %v307_v28, 2  ;;  %v342_v47 = vrot.slane %v308_v29, 2  ;;  %v325_v54 = vrot.slane %v307_v28, 1  ;;  %v326_v55 = vrot.slane %v308_v29, 1 }
  0x1f   : > { %v329_v37 = vrot.slane %v310_v32, 1  ;;  %v330_v38 = vrot.slane %v312_v33, 2  ;;  %v334_v39 = vrot.slane %v332_v35, 1  ;;  %v335_v40 = vrot.slane %v316_v34, 2 }
  0x20   : > { %v314_v41 = vrot.slane %v312_v33, 1  ;;  %v318_v42 = vrot.slane %v316_v34, 1  ;;  %v343_v51 = vsel %vm340_vm3, %v341_v46, %v342_v47  ;;  %v327_v56 = vsel %vm324_vm6, %v325_v54, %v326_v55 }
  0x21   : > { %v331_v43 = vor.u32 %v330_v38, %v329_v37  ;;  %v336_v44 = vor.u32 %v335_v40, %v334_v39  ;;  %762 = vmatpush3.bf16.msra.mxu0 %v814_v30  ;;  %787 = vmatmul.mubr.msk.bf16.vlgmr.msra.gmra.mxu1 %vm344_vm5, %v343_v51 }
  0x22   : > { %v315_v48 = vor.u32 %v314_v41, %v310_v32  ;;  %763 = vmatprep.subr.bf16.mxu0 %v816_v36  ;;  %v822_v24 = vpop.eup %821 }
  0x23   : > { %v337_v50 = vsel %vm328_vm1, %v331_v43, %v336_v44 }
  0x24   : > { %338 = vrot.lane.b32.xlu0 %v337_v50, %s833_s24  ;;  %v319_v52 = vsel %vm309_vm4, %v315_v48, %v318_v42 }
  0x25   : > { %764 = vmatpush3.bf16.msra.mxu0 %v817_v45 }
  0x26   : > { %765 = vmatprep.subr.bf16.mxu0 %v819_v49 }
  0x28   : > { %320 = vrot.lane.b32.xlu0 %v319_v52, %s833_s24 }
  0x29   : > { %766 = vmatpush3.bf16.msra.mxu0 %v820_v53 }
  0x96   : > { %v339_v57 = vpop.permute.xlu0 %338 }
  0x97   : > { %v350_v58 = vsel %vm344_vm5, %v327_v56, %v339_v57 }
  0x98   : > { %507 = vmatprep.mubr.bf16.mxu0 %v350_v58 }
  0x9a   : > { %v321_v59 = vpop.permute.xlu0 %320 }
  0x9b   : > { %v346_v60 = vsel %vm344_vm5, %v307_v28, %v321_v59 }
  0x9c   : > { %508 = vmatmul.mubr.bf16.vlgmr.msra.gmra.mxu0 %v346_v60 }
  0xe1   : > { %v550_v61 = vpop.f32.mrf.mxu1 }
  0xe3   : > { %v788_v62 = vpop.f32.mrf.mxu1 }
  0xe5   : > { %v553_v63 = vpop.f32.mrf.mxu1 }
  0xe7   : > { %v789_v0 = vpop.f32.mrf.mxu1 }
 0x15c   : > { %v767_v1 = vpop.f32.mrf.mxu0 }
 0x15e   : > { %v768_v3 = vpop.f32.mrf.mxu0 }
 0x15f   : > { %v769_v4 = vadd.f32 %v768_v3, %v767_v1 }
 0x160   : > { %v770_v5 = vpop.f32.mrf.mxu0 }
 0x161   : > { %v551_v6 = vadd.f32 %v769_v4, %v550_v61 }
 0x162   : > { %v771_v9 = vpop.f32.mrf.mxu0 }
 0x163   : > { %v743_v10 = vpack.c.bf16 %v551_v6, %v551_v6  ;;  %v772_v11 = vadd.f32 %v771_v9, %v770_v5  ;;  %v579_v12 = vmul.f32 %v737_v8, %v551_v6 }
 0x165   : > { %566 = vst.msk [vmem:[%s231_s8] sm:$0xf] %vm565_vm8, %v743_v10  ;;  %v554_v14 = vadd.f32 %v772_v11, %v553_v63  ;;  %v581_v17 = vsel %vm344_vm5, %v579_v12, 0.0 }
 0x167   : > { %v744_v15 = vpack.c.bf16 %v554_v14, %v554_v14  ;;  %v580_v16 = vmul.f32 %v737_v8, %v554_v14 }
 0x169   : > { %567 = vst.msk [vmem:[%s231_s8 + $0x4] sm:$0xf] %vm565_vm8, %v744_v15  ;;  %v582_v18 = vsel %vm344_vm5, %v580_v16, 0.0 }
 0x16a   : > { %v583_v19 = vadd.f32 %v582_v18, %v581_v17 }
 0x16c   : > { %v584_v20 = vrot.slane %v583_v19, 4 }
 0x16e   : > { %v585_v21 = vadd.f32 %v584_v20, %v583_v19 }
 0x170   : > { %v586_v22 = vrot.slane %v585_v21, 2 }
 0x172   : > { %v587_v7 = vadd.f32 %v586_v22, %v585_v21 }
 0x174   : > { %v588_v23 = vrot.slane %v587_v7, 1 }
 0x176   : > { %v589_v25 = vadd.f32 %v588_v23, %v587_v7 }
 0x178   : > { %v592_v26 = vmul.f32 %v822_v24, %v589_v25 }
 0x17a   : > { %v593_v27 = vsub.f32 %v551_v6, %v592_v26  ;;  %v594_v28 = vsub.f32 %v554_v14, %v592_v26 }
 0x17c   : > { %v595_v29 = vmul.f32 %v737_v8, %v593_v27  ;;  %v596_v30 = vmul.f32 %v737_v8, %v594_v28 }
 0x17e   : > { %v597_v31 = vmul.f32 %v595_v29, %v595_v29  ;;  %v598_v32 = vmul.f32 %v596_v30, %v596_v30 }
 0x180   : > { %v599_v33 = vsel %vm344_vm5, %v597_v31, 0.0  ;;  %v600_v34 = vsel %vm344_vm5, %v598_v32, 0.0 }
 0x181   : > { %v601_v35 = vadd.f32 %v600_v34, %v599_v33 }
 0x183   : > { %v602_v36 = vrot.slane %v601_v35, 4 }
 0x185   : > { %v603_v37 = vadd.f32 %v602_v36, %v601_v35 }
 0x187   : > { %v604_v38 = vrot.slane %v603_v37, 2 }
 0x189   : > { %v605_v39 = vadd.f32 %v604_v38, %v603_v37 }
 0x18b   : > { %v606_v40 = vrot.slane %v605_v39, 1 }
 0x18d   : > { %v607_v41 = vadd.f32 %v606_v40, %v605_v39 }
 0x18f   : > { %v608_v42 = vsel %vm304_vm0, %v589_v25, %v607_v41 }
 0x190   : > { %610 = vst.msk [vmem:[%s235_s10] sm:$0x3] %vm609_vm9, %v608_v42 }
 0x191 PF: > { %s16_s18 = sadd.s32 1, %s829_s18  }
 0x192   : > { %p13_p6 = scmp.ge.s32.totalorder %s16_s18, 4  }
 0x194   :  { %15 = sbr.rel (!%p13_p6) target bundleno = 1 (0x1), region = 78 }

// kernel: resnet_classifier.13
= control target key start
LH: loop header
LB: loop body
LE: loop exit
PB: predicated region body
PF: predicated region fallthrough
CT: control target
= control target key end

     0   :  { %s1420_s27 = smov 0   ;;  %s1682_s0 = inlined_call_operand.vmem [shape: bf16[2,16,64], index: 0, kind: input, shape index: {}]   ;;  %s1683_s1 = inlined_call_operand.vmem [shape: bf16[2,16,128], index: 1, kind: input, shape index: {}]   ;;  %s1684_s2 = inlined_call_operand.vmem [shape: f32[1,1,64], index: 2, kind: input, shape index: {}]   ;;  %s1685_s3 = inlined_call_operand.vmem [shape: f32[1,1,64], index: 3, kind: input, shape index: {}]   ;;  %s1686_s4 = inlined_call_operand.vmem [shape: f32[1,1,64], index: 4, kind: input, shape index: {}]   ;;  %s1687_s5 = inlined_call_operand.vmem [shape: f32[1,1,64], index: 5, kind: input, shape index: {}]   ;;  %s1688_s6 = inlined_call_operand.vmem [shape: bf16[512,256], index: 6, kind: input, shape index: {}]   ;;  %s1689_s7 = inlined_call_operand.vmem [shape: bf16[2,16,256], index: 7, kind: output, shape index: {0}]   ;;  %s1690_s8 = inlined_call_operand.vmem [shape: f32[2,2,256], index: 8, kind: output, shape index: {1}]  }
   0x1 LB: > { %s1426_s28 = sadd.s32 4294967295, %s1371_s27   ;;  %p1152_p0 = scmp.ge.s32.totalorder %s1371_s27, 1  ;;  %s1371_s27 = sphi %s1420_s27, %s19_s27  }
   0x2   : > { %p275_p1 = scmp.lt.s32.totalorder %s1371_s27, 3 }
   0x4   : > { %p276_p2 = pnand %p1152_p0, %p275_p1 }
   0x5   : > { %s1373_s9 = smov (!%p276_p2), 64   ;;  %p319_p3 = scmp.lt.s32.totalorder (!%p276_p2), %s1426_s28, 1 }
   0x6   : > { %279 = sbr.rel (%p276_p2) target bundleno = 630 (0x276), region = 48 }
   0xb   : > { %v1163_v0 = vld [vmem:[%s1686_s4] ss:$0 sm:$0xff]  ;;  %s1436_s10 = scalar_select %p319_p3, %s1426_s28, 1  ;;  %v1267_v7 = vld [vmem:[%s1688_s6 + $0x74] ss:$8 sps:$4 sm:$0xff]   ;;  %vm472_vm0 = vcmask 1041408  }
   0xc   : > { %372 = vrot.lane.b32.xlu0 %v1163_v0, %s1373_s9  ;;  %v1269_v8 = vld [vmem:[%s1688_s6 + $0x174] ss:$8 sps:$4 sm:$0xff]   ;;  %v1271_v9 = vld [vmem:[%s1688_s6 + $0x70] ss:$8 sps:$4 sm:$0xff]   ;;  %v1273_v11 = vld [vmem:[%s1688_s6 + $0x64] ss:$8 sps:$4 sm:$0xff]   ;;  %874 = vmatprep.subr.bf16.mxu0 %v1267_v7 }
   0xd   : > { %s1241_s11 = sshll.u32 %s1436_s10, 3  ;;  %v1272_v10 = vld [vmem:[%s1688_s6 + $0x170] ss:$8 sps:$4 sm:$0xff]   ;;  %v1275_v12 = vld [vmem:[%s1688_s6 + $0x164] ss:$8 sps:$4 sm:$0xff]   ;;  %917 = vmatprep.subr.bf16.mxu1 %v1269_v8  ;;  %875 = vmatpush1.bf16.msra.mxu0 %v1271_v9  ;;  %vm524_vm7 = vcmask 1044480  }
   0xe   : > { %s328_s14 = scalar_lea.vmem %s1683_s1, %s1241_s11  ;;  %918 = vmatpush1.bf16.msra.mxu1 %v1272_v10  ;;  %v1277_v13 = vld [vmem:[%s1688_s6 + $0x60] ss:$8 sps:$4 sm:$0xff]   ;;  %876 = vmatprep.subr.bf16.mxu0 %v1273_v11  ;;  %v1279_v15 = vld [vmem:[%s1688_s6 + $0x54] ss:$8 sps:$4 sm:$0xff]   ;;  %v1283_v17 = vld [vmem:[%s1688_s6 + $0x50] ss:$8 sps:$4 sm:$0xff]   ;;  %s323_s18 = scalar_lea.vmem %s1682_s0, %s1241_s11 }
   0xf   : > { %v1250_v1 = vld [vmem:[%s328_s14] sm:$0xff]   ;;  %919 = vmatprep.subr.bf16.mxu1 %v1275_v12  ;;  %v1281_v16 = vld [vmem:[%s1688_s6 + $0x154] ss:$8 sps:$4 sm:$0xff]   ;;  %v1284_v18 = vld [vmem:[%s1688_s6 + $0x150] ss:$8 sps:$4 sm:$0xff]   ;;  %vm494_vm8 = vcmask 1046528  }
  0x10   : > { %v1251_v2 = vunpack.c.l.bf16 %v1250_v1  ;;  %v1252_v3 = vunpack.c.h.bf16 %v1250_v1  ;;  %v1278_v14 = vld [vmem:[%s1688_s6 + $0x160] ss:$8 sps:$4 sm:$0xff]   ;;  %v1285_v19 = vld [vmem:[%s1688_s6 + $0x44] ss:$8 sps:$4 sm:$0xff]   ;;  %v1291_v23 = vld [vmem:[%s1688_s6 + $0x34] ss:$8 sps:$4 sm:$0xff]  }
  0x11   : > { %877 = vmatpush1.bf16.msra.mxu0 %v1277_v13  ;;  %v1287_v20 = vld [vmem:[%s1688_s6 + $0x144] ss:$8 sps:$4 sm:$0xff]   ;;  %v1289_v21 = vld [vmem:[%s1688_s6 + $0x40] ss:$8 sps:$4 sm:$0xff]   ;;  %v1293_v24 = vld [vmem:[%s1688_s6 + $0x134] ss:$8 sps:$4 sm:$0xff]  }
  0x12   : > { %920 = vmatpush1.bf16.msra.mxu1 %v1278_v14  ;;  %878 = vmatprep.subr.bf16.mxu0 %v1279_v15  ;;  %v1290_v22 = vld [vmem:[%s1688_s6 + $0x140] ss:$8 sps:$4 sm:$0xff]   ;;  %v1295_v25 = vld [vmem:[%s1688_s6 + $0x30] ss:$8 sps:$4 sm:$0xff]   ;;  %v1297_v27 = vld [vmem:[%s1688_s6 + $0x24] ss:$8 sps:$4 sm:$0xff]  }
  0x13   : > { %921 = vmatprep.subr.bf16.mxu1 %v1281_v16  ;;  %v1296_v26 = vld [vmem:[%s1688_s6 + $0x130] ss:$8 sps:$4 sm:$0xff]   ;;  %v1299_v28 = vld [vmem:[%s1688_s6 + $0x124] ss:$8 sps:$4 sm:$0xff]   ;;  %v1301_v29 = vld [vmem:[%s1688_s6 + $0x20] ss:$8 sps:$4 sm:$0xff]  }
  0x14   : > { %v1302_v30 = vld [vmem:[%s1688_s6 + $0x120] ss:$8 sps:$4 sm:$0xff]   ;;  %v1303_v31 = vld [vmem:[%s1688_s6 + $0x14] ss:$8 sps:$4 sm:$0xff]   ;;  %v1307_v33 = vld [vmem:[%s1688_s6 + $0x10] ss:$8 sps:$4 sm:$0xff]  }
  0x15   : > { %879 = vmatpush1.bf16.msra.mxu0 %v1283_v17  ;;  %v1305_v32 = vld [vmem:[%s1688_s6 + $0x114] ss:$8 sps:$4 sm:$0xff]   ;;  %v1308_v34 = vld [vmem:[%s1688_s6 + $0x110] ss:$8 sps:$4 sm:$0xff]   ;;  %v1309_v35 = vld [vmem:[%s1688_s6 + $0x4] ss:$8 sps:$4 sm:$0xff]  }
  0x16   : > { %922 = vmatpush1.bf16.msra.mxu1 %v1284_v18  ;;  %880 = vmatprep.subr.bf16.mxu0 %v1285_v19  ;;  %v1311_v36 = vld [vmem:[%s1688_s6 + $0x104] ss:$8 sps:$4 sm:$0xff]   ;;  %v1313_v37 = vld [vmem:[%s1688_s6] ss:$8 sps:$4 sm:$0xff]   ;;  %v1315_v39 = vld [vmem:[%s1688_s6 + $0xf4] ss:$8 sps:$4 sm:$0xff]  }
  0x17   : > { %923 = vmatprep.subr.bf16.mxu1 %v1287_v20  ;;  %v1314_v38 = vld [vmem:[%s1688_s6 + $0x100] ss:$8 sps:$4 sm:$0xff]   ;;  %v1317_v40 = vld [vmem:[%s1688_s6 + $0x1f4] ss:$8 sps:$4 sm:$0xff]   ;;  %v1319_v41 = vld [vmem:[%s1688_s6 + $0xf0] ss:$8 sps:$4 sm:$0xff]  }
  0x18   : > { %v1320_v42 = vld [vmem:[%s1688_s6 + $0x1f0] ss:$8 sps:$4 sm:$0xff]   ;;  %v1321_v43 = vld [vmem:[%s1688_s6 + $0xe4] ss:$8 sps:$4 sm:$0xff]   ;;  %v1325_v45 = vld [vmem:[%s1688_s6 + $0xe0] ss:$8 sps:$4 sm:$0xff]  }
  0x19   : > { %881 = vmatpush1.bf16.msra.mxu0 %v1289_v21  ;;  %v1323_v44 = vld [vmem:[%s1688_s6 + $0x1e4] ss:$8 sps:$4 sm:$0xff]   ;;  %v1326_v46 = vld [vmem:[%s1688_s6 + $0x1e0] ss:$8 sps:$4 sm:$0xff]   ;;  %v1327_v47 = vld [vmem:[%s1688_s6 + $0xd4] ss:$8 sps:$4 sm:$0xff]  }
  0x1a   : > { %924 = vmatpush1.bf16.msra.mxu1 %v1290_v22  ;;  %882 = vmatprep.subr.bf16.mxu0 %v1291_v23  ;;  %v1329_v48 = vld [vmem:[%s1688_s6 + $0x1d4] ss:$8 sps:$4 sm:$0xff]   ;;  %v1331_v49 = vld [vmem:[%s1688_s6 + $0xd0] ss:$8 sps:$4 sm:$0xff]   ;;  %v1333_v51 = vld [vmem:[%s1688_s6 + $0xc4] ss:$8 sps:$4 sm:$0xff]  }
  0x1b   : > { %925 = vmatprep.subr.bf16.mxu1 %v1293_v24  ;;  %v1332_v50 = vld [vmem:[%s1688_s6 + $0x1d0] ss:$8 sps:$4 sm:$0xff]   ;;  %v1335_v52 = vld [vmem:[%s1688_s6 + $0x1c4] ss:$8 sps:$4 sm:$0xff]   ;;  %v1337_v53 = vld [vmem:[%s1688_s6 + $0xc0] ss:$8 sps:$4 sm:$0xff]  }
  0x1c   : > { %v1338_v54 = vld [vmem:[%s1688_s6 + $0x1c0] ss:$8 sps:$4 sm:$0xff]   ;;  %v1339_v55 = vld [vmem:[%s1688_s6 + $0xb4] ss:$8 sps:$4 sm:$0xff]   ;;  %v1343_v57 = vld [vmem:[%s1688_s6 + $0xb0] ss:$8 sps:$4 sm:$0xff]  }
  0x1d   : > { %883 = vmatpush1.bf16.msra.mxu0 %v1295_v25  ;;  %v1341_v56 = vld [vmem:[%s1688_s6 + $0x1b4] ss:$8 sps:$4 sm:$0xff]   ;;  %v1344_v58 = vld [vmem:[%s1688_s6 + $0x1b0] ss:$8 sps:$4 sm:$0xff]   ;;  %v1345_v59 = vld [vmem:[%s1688_s6 + $0xa4] ss:$8 sps:$4 sm:$0xff]  }
  0x1e   : > { %926 = vmatpush1.bf16.msra.mxu1 %v1296_v26  ;;  %884 = vmatprep.subr.bf16.mxu0 %v1297_v27  ;;  %v1347_v60 = vld [vmem:[%s1688_s6 + $0x1a4] ss:$8 sps:$4 sm:$0xff]   ;;  %v1349_v61 = vld [vmem:[%s1688_s6 + $0xa0] ss:$8 sps:$4 sm:$0xff]   ;;  %v1351_v63 = vld [vmem:[%s1688_s6 + $0x94] ss:$8 sps:$4 sm:$0xff]  }
  0x1f   : > { %927 = vmatprep.subr.bf16.mxu1 %v1299_v28  ;;  %v1350_v62 = vld [vmem:[%s1688_s6 + $0x1a0] ss:$8 sps:$4 sm:$0xff]   ;;  %v1353_v0 = vld [vmem:[%s1688_s6 + $0x194] ss:$8 sps:$4 sm:$0xff]   ;;  %v1355_v1 = vld [vmem:[%s1688_s6 + $0x90] ss:$8 sps:$4 sm:$0xff]  }
  0x20   : > { %v1162_v9 = vld [vmem:[%s1685_s3] ss:$0 sm:$0xff]  ;;  %vm473_vm1 = vsmask.f32 1280  ;;  %v1357_v24 = vld [vmem:[%s1688_s6 + $0x84] ss:$8 sps:$4 sm:$0xff]  }
  0x21   : > { %885 = vmatpush1.bf16.msra.mxu0 %v1301_v29  ;;  %v1164_v12 = vld [vmem:[%s1687_s5] ss:$0 sm:$0xff]  ;;  %vm474_vm2 = vmand %vm472_vm0, %vm473_vm1  ;;  %v1359_v27 = vld [vmem:[%s1688_s6 + $0x184] ss:$8 sps:$4 sm:$0xff]   ;;  %vm528_vm3 = vsmask.f32 4352 }
  0x22   : > { %928 = vmatpush1.bf16.msra.mxu1 %v1302_v30  ;;  %886 = vmatprep.subr.bf16.mxu0 %v1303_v31  ;;  %v1361_v28 = vld [vmem:[%s1688_s6 + $0x80] ss:$8 sps:$4 sm:$0xff]   ;;  %vm498_vm4 = vsmask.f32 6400  ;;  %vm514_vm5 = vsmask.f32 5376 }
  0x23   : > { %929 = vmatprep.subr.bf16.mxu1 %v1305_v32  ;;  %v1362_v29 = vld [vmem:[%s1688_s6 + $0x180] ss:$8 sps:$4 sm:$0xff]   ;;  %vm477_vm6 = vsmask.f32 7424  ;;  %vm538_vm9 = vcmask 523264   ;;  %vm510_vm10 = vcmask 1045504  }
  0x24   : > { %s1243_s17 = sshll.u32 %s1436_s10, 4  ;;  %s1244_s20 = sshll.u32 %s1436_s10, 2  ;;  %vm1033_vm12 = vcmask 1040384  }
  0x25   : > { %887 = vmatpush1.bf16.msra.mxu0 %v1307_v33  ;;  %s333_s19 = scalar_lea.vmem %s1689_s7, %s1243_s17  ;;  %s338_s23 = scalar_lea.vmem %s1690_s8, %s1244_s20 }
  0x26   : > { %930 = vmatpush1.bf16.msra.mxu1 %v1308_v34  ;;  %888 = vmatprep.subr.bf16.mxu0 %v1309_v35 }
  0x27   : > { %931 = vmatprep.subr.bf16.mxu1 %v1311_v36 }
  0x29   : > { %889 = vmatpush1.bf16.msra.mxu0 %v1313_v37 }
  0x2a   : > { %932 = vmatpush1.bf16.msra.mxu1 %v1314_v38  ;;  %890 = vmatprep.subr.bf16.mxu0 %v1315_v39 }
  0x2b   : > { %933 = vmatprep.subr.bf16.mxu1 %v1317_v40 }
  0x2d   : > { %891 = vmatpush2.bf16.msra.mxu0 %v1319_v41 }
  0x2e   : > { %934 = vmatpush2.bf16.msra.mxu1 %v1320_v42  ;;  %892 = vmatprep.subr.bf16.mxu0 %v1321_v43 }
  0x2f   : > { %935 = vmatprep.subr.bf16.mxu1 %v1323_v44 }
  0x31   : > { %893 = vmatpush2.bf16.msra.mxu0 %v1325_v45 }
  0x32   : > { %936 = vmatpush2.bf16.msra.mxu1 %v1326_v46  ;;  %894 = vmatprep.subr.bf16.mxu0 %v1327_v47 }
  0x33   : > { %937 = vmatprep.subr.bf16.mxu1 %v1329_v48 }
  0x35   : > { %895 = vmatpush2.bf16.msra.mxu0 %v1331_v49 }
  0x36   : > { %938 = vmatpush2.bf16.msra.mxu1 %v1332_v50  ;;  %896 = vmatprep.subr.bf16.mxu0 %v1333_v51 }
  0x37   : > { %939 = vmatprep.subr.bf16.mxu1 %v1335_v52 }
  0x39   : > { %897 = vmatpush2.bf16.msra.mxu0 %v1337_v53 }
  0x3a   : > { %940 = vmatpush2.bf16.msra.mxu1 %v1338_v54  ;;  %898 = vmatprep.subr.bf16.mxu0 %v1339_v55 }
  0x3b   : > { %941 = vmatprep.subr.bf16.mxu1 %v1341_v56 }
  0x3d   : > { %899 = vmatpush2.bf16.msra.mxu0 %v1343_v57 }
  0x3e   : > { %942 = vmatpush2.bf16.msra.mxu1 %v1344_v58  ;;  %900 = vmatprep.subr.bf16.mxu0 %v1345_v59 }
  0x3f   : > { %943 = vmatprep.subr.bf16.mxu1 %v1347_v60 }
  0x41   : > { %901 = vmatpush2.bf16.msra.mxu0 %v1349_v61 }
  0x42   : > { %944 = vmatpush2.bf16.msra.mxu1 %v1350_v62  ;;  %902 = vmatprep.subr.bf16.mxu0 %v1351_v63 }
  0x43   : > { %945 = vmatprep.subr.bf16.mxu1 %v1353_v0 }
  0x45   : > { %903 = vmatpush2.bf16.msra.mxu0 %v1355_v1 }
  0x46   : > { %904 = vmatprep.subr.bf16.mxu0 %v1357_v24 }
  0x49   : > { %905 = vmatpush2.bf16.msra.mxu0 %v1361_v28 }
  0x7e   : > { %v373_v4 = vpop.permute.xlu0 %372 }
  0x7f   : > { %v375_v5 = vmul.f32 %v1251_v2, %v373_v4  ;;  %v376_v6 = vmul.f32 %v1252_v3, %v373_v4  ;;  %v1356_v2 = vld [vmem:[%s1688_s6 + $0x190] ss:$8 sps:$4 sm:$0xff]   ;;  %v1254_v3 = vld [vmem:[%s323_s18] sm:$0xff]  }
  0x80   : > { %946 = vmatpush2.bf16.msra.mxu1 %v1356_v2  ;;  %v1256_v4 = vunpack.c.h.bf16 %v1254_v3 }
  0x81   : > { %381 = vrot.lane.b32.xlu1 %v376_v6, %s1373_s9  ;;  %379 = vrot.lane.b32.xlu0 %v375_v5, %s1373_s9  ;;  %v1255_v5 = vunpack.c.l.bf16 %v1254_v3  ;;  %v1161_v6 = vld [vmem:[%s1684_s2] ss:$0 sm:$0xff] }
  0x82   : > { %v354_v7 = vmul.f32 %v1256_v4, %v1161_v6  ;;  %947 = vmatprep.subr.bf16.mxu1 %v1359_v27 }
  0x83   : > { %v353_v8 = vmul.f32 %v1255_v5, %v1161_v6 }
  0x84   : > { %v363_v10 = vadd.f32 %v1162_v9, %v354_v7  ;;  %948 = vmatpush2.bf16.msra.mxu1 %v1362_v29 }
  0x85   : > { %v362_v11 = vadd.f32 %v1162_v9, %v353_v8 }
  0xf3   : > { %v382_v13 = vpop.permute.xlu1 %381  ;;  %v380_v14 = vpop.permute.xlu0 %379 }
  0xf4   : > { %v386_v15 = vadd.f32 %v382_v13, %v363_v10  ;;  %v385_v16 = vadd.f32 %v380_v14, %v362_v11 }
  0xf6   : > { %v395_v17 = vadd.f32 %v1164_v12, %v386_v15  ;;  %v394_v18 = vadd.f32 %v1164_v12, %v385_v16 }
  0xf8   : > { %v397_v19 = vmax.f32 %v395_v17, 0.0  ;;  %v396_v20 = vmax.f32 %v394_v18, 0.0 }
  0xfa   : > { %v398_v21 = vpack.c.bf16 %v397_v19, %v396_v20 }
  0xfc   : > { %v464_v22 = vshrl.u32 %v398_v21, 16  ;;  %v467_v23 = vshll.u32 %v398_v21, 16 }
  0xfe   : > { %v466_v25 = vrot.slane %v464_v22, 6  ;;  %v469_v26 = vrot.slane %v467_v23, 7  ;;  %v1374_v23 = vmov 0.0  }
 0x100   : > { %v470_v30 = vor.u32 %v469_v26, %v466_v25 }
 0x102   : > { %v1652_v31 = vsel %vm474_vm2, 0, %v470_v30  ;;  %v476_v32 = vsel %vm474_vm2, %v470_v30, 0 }
 0x103   : > { %v479_v33 = vshrl.u32 %v1652_v31, 16  ;;  %v481_v34 = vshll.u32 %v1652_v31, 16  ;;  %v486_v35 = vshll.u32 %v476_v32, 16  ;;  %v502_v36 = vshrl.u32 %v476_v32, 16 }
 0x104   : > { %v525_v62 = vrot.slane %v1652_v31, 3  ;;  %v526_v63 = vrot.slane %v476_v32, 3  ;;  %v495_v0 = vrot.slane %v1652_v31, 1  ;;  %v496_v1 = vrot.slane %v476_v32, 1 }
 0x105   : > { %v529_v37 = vrot.slane %v479_v33, 3  ;;  %v530_v38 = vrot.slane %v481_v34, 4  ;;  %v532_v39 = vrot.slane %v502_v36, 3  ;;  %v533_v40 = vrot.slane %v486_v35, 4 }
 0x106   : > { %v499_v41 = vrot.slane %v479_v33, 1  ;;  %v500_v42 = vrot.slane %v481_v34, 2  ;;  %v504_v43 = vrot.slane %v502_v36, 1  ;;  %v505_v44 = vrot.slane %v486_v35, 2 }
 0x107   : > { %v531_v45 = vor.u32 %v530_v38, %v529_v37  ;;  %v534_v46 = vor.u32 %v533_v40, %v532_v39  ;;  %v515_v47 = vrot.slane %v479_v33, 2  ;;  %v516_v48 = vrot.slane %v481_v34, 3 }
 0x108   : > { %v501_v49 = vor.u32 %v500_v42, %v499_v41  ;;  %v506_v50 = vor.u32 %v505_v44, %v504_v43  ;;  %v518_v51 = vrot.slane %v502_v36, 2  ;;  %v519_v52 = vrot.slane %v486_v35, 3 }
 0x109   : > { %v535_v53 = vsel %vm528_vm3, %v531_v45, %v534_v46  ;;  %v517_v54 = vor.u32 %v516_v48, %v515_v47  ;;  %v483_v55 = vrot.slane %v481_v34, 1  ;;  %v488_v59 = vrot.slane %v486_v35, 1 }
 0x10a   : > { %536 = vrot.lane.b32.xlu0 %v535_v53, %s1373_s9  ;;  %v507_v56 = vsel %vm498_vm4, %v501_v49, %v506_v50  ;;  %v520_v57 = vor.u32 %v519_v52, %v518_v51  ;;  %v527_v3 = vsel %vm524_vm7, %v525_v62, %v526_v63  ;;  %v511_v4 = vrot.slane %v1652_v31, 2 }
 0x10b   : > { %508 = vrot.lane.b32.xlu1 %v507_v56, %s1373_s9  ;;  %v484_v58 = vor.u32 %v483_v55, %v479_v33  ;;  %v512_v5 = vrot.slane %v476_v32, 2  ;;  %v497_v7 = vsel %vm494_vm8, %v495_v0, %v496_v1 }
 0x10c   : > { %v521_v60 = vsel %vm514_vm5, %v517_v54, %v520_v57 }
 0x10d   : > { %v489_v61 = vsel %vm477_vm6, %v484_v58, %v488_v59  ;;  %v513_v11 = vsel %vm510_vm10, %v511_v4, %v512_v5 }
 0x10e   : > { %522 = vrot.lane.b32.xlu0 %v521_v60, %s1373_s9 }
 0x10f   : > { %490 = vrot.lane.b32.xlu1 %v489_v61, %s1373_s9  ;;  %s974_s9 = ssub.s32 2, %s1426_s28 }
 0x110   : > { %p975_p4 = scmp.gt.s32.totalorder %s974_s9, 0  ;;  %p1231_p5 = scmp.lt.s32.totalorder %s974_s9, 1 }
 0x112   : > { %s1692_s9 = smov (!%p975_p4, %s974_s9), 0 }
 0x113   : > { %s1694_s9 = smov (!%p1231_p5, %s1692_s9), 1 }
 0x114   : > { %s1237_s15 = sshll.u32 %s1694_s9, 4  ;;  %v979_v15 = vstv %s1694_s9 }
 0x115   : > { %s984_s16 = scvt.s32.f32 %s1237_s15  ;;  %vm980_vm11 = vcmp.gt.s32.totalorder %v979_v15, 0 }
 0x116   : > { %v1236_v24 = vsel %vm980_vm11, 1.0, %v1374_v23 }
 0x117   : > { %v1003_v26 = vstv %s984_s16 }
 0x118   : > { %1363 = vrcp.f32 %v1003_v26 }
 0x125   : > { %v1364_v48 = vpop.eup %1363 }
 0x17c   : > { %v537_v2 = vpop.permute.xlu0 %536 }
 0x17d   : > { %v509_v6 = vpop.permute.xlu1 %508  ;;  %v552_v8 = vsel %vm538_vm9, %v527_v3, %v537_v2 }
 0x17e   : > { %v544_v9 = vsel %vm538_vm9, %v497_v7, %v509_v6  ;;  %949 = vmatprep.mubr.bf16.mxu1 %v552_v8 }
 0x17f   : > { %906 = vmatprep.mubr.bf16.mxu0 %v544_v9 }
 0x180   : > { %v523_v10 = vpop.permute.xlu0 %522 }
 0x181   : > { %v491_v12 = vpop.permute.xlu1 %490  ;;  %v548_v13 = vsel %vm538_vm9, %v513_v11, %v523_v10 }
 0x182   : > { %v540_v14 = vsel %vm538_vm9, %v1652_v31, %v491_v12  ;;  %950 = vmatmul.mubr.bf16.vlgmr.msra.gmra.mxu1 %v548_v13 }
 0x183   : > { %907 = vmatmul.mubr.bf16.vlgmr.msra.gmra.mxu0 %v540_v14 }
 0x242   : > { %v951_v16 = vpop.f32.mrf.mxu1 }
 0x243   : > { %v908_v17 = vpop.f32.mrf.mxu0 }
 0x244   : > { %v953_v18 = vpop.f32.mrf.mxu1  ;;  %v952_v20 = vadd.f32 %v951_v16, %v908_v17 }
 0x245   : > { %v910_v19 = vpop.f32.mrf.mxu0 }
 0x246   : > { %v954_v21 = vadd.f32 %v953_v18, %v910_v19  ;;  %v955_v22 = vpop.f32.mrf.mxu1  ;;  %v985_v31 = vmul.f32 %v1236_v24, %v952_v20 }
 0x247   : > { %v912_v25 = vpop.f32.mrf.mxu0 }
 0x248   : > { %v1245_v27 = vpack.c.bf16 %v954_v21, %v952_v20  ;;  %v956_v28 = vadd.f32 %v955_v22, %v912_v25  ;;  %v957_v29 = vpop.f32.mrf.mxu1  ;;  %v986_v34 = vmul.f32 %v1236_v24, %v954_v21 }
 0x249   : > { %v914_v30 = vpop.f32.mrf.mxu0 }
 0x24a   : > { %972 = vst [vmem:[%s333_s19] sm:$0xff] %v1245_v27  ;;  %v987_v32 = vmul.f32 %v1236_v24, %v956_v28  ;;  %v958_v33 = vadd.f32 %v957_v29, %v914_v30 }
 0x24c   : > { %v989_v35 = vadd.f32 %v987_v32, %v985_v31  ;;  %v1246_v36 = vpack.c.bf16 %v958_v33, %v956_v28  ;;  %v988_v37 = vmul.f32 %v1236_v24, %v958_v33 }
 0x24e   : > { %v990_v38 = vrot.slane %v989_v35, 4  ;;  %973 = vst [vmem:[%s333_s19 + $0x8] sm:$0xff] %v1246_v36  ;;  %v996_v39 = vadd.f32 %v988_v37, %v986_v34 }
 0x250   : > { %v991_v40 = vadd.f32 %v990_v38, %v989_v35  ;;  %v997_v41 = vrot.slane %v996_v39, 4 }
 0x252   : > { %v992_v42 = vrot.slane %v991_v40, 2  ;;  %v998_v43 = vadd.f32 %v997_v41, %v996_v39 }
 0x254   : > { %v993_v44 = vadd.f32 %v992_v42, %v991_v40  ;;  %v999_v45 = vrot.slane %v998_v43, 2 }
 0x256   : > { %v994_v46 = vrot.slane %v993_v44, 1  ;;  %v1000_v47 = vadd.f32 %v999_v45, %v998_v43 }
 0x258   : > { %v995_v49 = vadd.f32 %v994_v46, %v993_v44  ;;  %v1001_v50 = vrot.slane %v1000_v47, 1 }
 0x25a   : > { %v1005_v51 = vmul.f32 %v1364_v48, %v995_v49  ;;  %v1002_v52 = vadd.f32 %v1001_v50, %v1000_v47 }
 0x25c   : > { %v1007_v53 = vsub.f32 %v952_v20, %v1005_v51  ;;  %v1009_v54 = vsub.f32 %v956_v28, %v1005_v51  ;;  %v1006_v55 = vmul.f32 %v1364_v48, %v1002_v52 }
 0x25e   : > { %v1011_v56 = vmul.f32 %v1236_v24, %v1007_v53  ;;  %v1013_v57 = vmul.f32 %v1236_v24, %v1009_v54  ;;  %v1008_v58 = vsub.f32 %v954_v21, %v1006_v55  ;;  %v1010_v59 = vsub.f32 %v958_v33, %v1006_v55 }
 0x260   : > { %v1015_v60 = vmul.f32 %v1011_v56, %v1011_v56  ;;  %v1017_v61 = vmul.f32 %v1013_v57, %v1013_v57  ;;  %v1012_v62 = vmul.f32 %v1236_v24, %v1008_v58  ;;  %v1014_v63 = vmul.f32 %v1236_v24, %v1010_v59 }
 0x262   : > { %v1019_v0 = vadd.f32 %v1017_v61, %v1015_v60  ;;  %v1016_v1 = vmul.f32 %v1012_v62, %v1012_v62  ;;  %v1018_v2 = vmul.f32 %v1014_v63, %v1014_v63 }
 0x264   : > { %v1020_v3 = vrot.slane %v1019_v0, 4  ;;  %v1026_v4 = vadd.f32 %v1018_v2, %v1016_v1 }
 0x266   : > { %v1021_v5 = vadd.f32 %v1020_v3, %v1019_v0  ;;  %v1027_v6 = vrot.slane %v1026_v4, 4 }
 0x268   : > { %v1022_v7 = vrot.slane %v1021_v5, 2  ;;  %v1028_v8 = vadd.f32 %v1027_v6, %v1026_v4 }
 0x26a   : > { %v1023_v9 = vadd.f32 %v1022_v7, %v1021_v5  ;;  %v1029_v10 = vrot.slane %v1028_v8, 2 }
 0x26c   : > { %v1024_v11 = vrot.slane %v1023_v9, 1  ;;  %v1030_v12 = vadd.f32 %v1029_v10, %v1028_v8 }
 0x26e   : > { %v1025_v13 = vadd.f32 %v1024_v11, %v1023_v9  ;;  %v1031_v14 = vrot.slane %v1030_v12, 1 }
 0x270   : > { %v1032_v15 = vadd.f32 %v1031_v14, %v1030_v12  ;;  %v1034_v16 = vsel %vm1033_vm12, %v995_v49, %v1025_v13 }
 0x272   : > { %v1035_v17 = vsel %vm1033_vm12, %v1002_v52, %v1032_v15 }
 0x273   : > { %v1038_v18 = vcombine.low %v1034_v16, %v1035_v17 }
 0x275   : > { %1238 = vst.sshfl [vmem:[%s338_s23] sm:$0x33 pattern:$0x76325410] %v1038_v18 }
 0x276 PF: > { %s19_s27 = sadd.s32 1, %s1371_s27  }
 0x277   : > { %p16_p6 = scmp.ge.s32.totalorder %s19_s27, 4  }
 0x279   :  { %18 = sbr.rel (!%p16_p6) target bundleno = 1 (0x1), region = 93 }

// kernel: resnet_classifier.14
= control target key start
LH: loop header
LB: loop body
LE: loop exit
PB: predicated region body
PF: predicated region fallthrough
CT: control target
= control target key end

     0   :  { %s1215_s18 = smov 0   ;;  %s1217_s19 = smov 0   ;;  %s1407_s0 = inlined_call_operand.vmem [shape: bf16[2,16,256], index: 0, kind: input, shape index: {}]   ;;  %s1408_s1 = inlined_call_operand.vmem [shape: f32[1,1,128], index: 1, kind: input, shape index: {}]   ;;  %s1409_s2 = inlined_call_operand.vmem [shape: f32[1,1,128], index: 2, kind: input, shape index: {}]   ;;  %s1410_s3 = inlined_call_operand.vmem [shape: bf16[640,128], index: 3, kind: input, shape index: {}]   ;;  %s1411_s4 = inlined_call_operand.vmem [shape: bf16[2,16,128], index: 4, kind: output, shape index: {0}]   ;;  %s1412_s5 = inlined_call_operand.vmem [shape: f32[2,2,128], index: 5, kind: output, shape index: {1}]  }
   0x1   :  { %s1219_s20 = smov 0  }
   0x2 LB: > { %s1228_s21 = sadd.s32 4294967295, %s1181_s20   ;;  %s1230_s22 = sadd.s32 1, %s1181_s20   ;;  %s1181_s20 = sphi %s1219_s20, %s1415_s20   ;;  %s1177_s19 = sphi %s1217_s19, %s1414_s19   ;;  %s1173_s18 = sphi %s1215_s18, %s1413_s18  }
   0x3   : > { %s20_s23 = ssub.s32 %s1181_s20, %s1230_s22  ;;  %s23_s24 = sadd.s32 1, %s1177_s19 }
   0x4   : > { %p21_p0 = scmp.eq.s32.totalorder %s20_s23, 0  ;;  %p30_p1 = scmp.ne.s32.totalorder %s1177_s19, %s1173_s18 }
   0x5   : > { %p31_p2 = scmp.eq.s32.totalorder %s1181_s20, 0  ;;  %p939_p4 = scmp.ge.s32.totalorder %s1181_s20, 2 }
   0x6   : > { %s1237_s25 = scalar_select %p21_p0, %s1177_s19, %s23_s24  }
   0x7   : > { %p32_p3 = por %p31_p2, %p30_p1  ;;  %180 = sbr.rel (%p939_p4) target bundleno = 17 (0x11), region = 28 }
   0xc   : > { %183 = sbr.rel (!%p32_p3) target bundleno = 17 (0x11), region = 32  ;;  %s185_s26 = sand.u32 (%p32_p3), 1, %s1177_s19  }
   0xd   : > { %s1003_s27 = sshll.u32 (%p32_p3), %s1181_s20, 4  ;;  %s940_s28 = sshll.u32 (%p32_p3), %s185_s26, 3 }
   0xe   : > { %s190_s6 = scalar_lea.vmem (%p32_p3), %s1407_s0, %s1003_s27  ;;  %s187_s7 = scalar_lea.vmem (%p32_p3), [#allocation2], %s940_s28 }
   0xf   : > { %v207_v0 = vld [vmem:[%s190_s6] sm:$0xf] (%p32_p3)  ;;  %v209_v1 = vld [vmem:[%s190_s6 + $0x8] sm:$0xf] (%p32_p3) }
  0x10   : > { %208 = vst [vmem:[%s187_s7] sm:$0xf] (%p32_p3), %v207_v0  ;;  %210 = vst [vmem:[%s187_s7 + $0x4] sm:$0xf] (%p32_p3), %v209_v1 }
  0x11 PF: > { %p943_p5 = scmp.ge.s32.totalorder %s1181_s20, 1  ;;  %p237_p6 = scmp.lt.s32.totalorder %s1181_s20, 3 }
  0x13   : > { %p238_p7 = pnand %p943_p5, %p237_p6 }
  0x14   : > { %s244_s16 = sand.u32 (!%p238_p7), 1, %s1173_s18   ;;  %p275_p10 = scmp.lt.s32.totalorder (!%p238_p7), %s1228_s21, 1 }
  0x15   : > { %241 = sbr.rel (%p238_p7) target bundleno = 331 (0x14b), region = 73  ;;  %s944_s28 = sshll.u32 (!%p238_p7), %s244_s16, 3 }
  0x16   : > { %s246_s13 = scalar_lea.vmem (!%p238_p7), [#allocation2], %s944_s28 }
  0x1a   : > { %v1117_v2 = vld [vmem:[%s1410_s3 + $0x78] sm:$0xff]   ;;  %v1121_v6 = vld [vmem:[%s1410_s3 + $0x70] sm:$0xff]   ;;  %v1125_v10 = vld [vmem:[%s1410_s3 + $0x68] sm:$0xff]   ;;  %v1183_v38 = vmov 0.0   ;;  %vm392_vm0 = vcmask 1040384   ;;  %vm412_vm2 = vcmask 1046528  }
  0x1b   : > { %v1118_v3 = vld [vmem:[%s1410_s3 + $0xf8] sm:$0xff]   ;;  %1018 = vmatprep.subr.bf16.mxu0 %v1117_v2  ;;  %v1122_v7 = vld [vmem:[%s1410_s3 + $0xf0] sm:$0xff]   ;;  %v1126_v11 = vld [vmem:[%s1410_s3 + $0xe8] sm:$0xff]   ;;  %vm398_vm1 = vsmask.f32 7424  ;;  %vm1184_vm5 = vmmov 0  }
  0x1c   : > { %v1119_v4 = vld [vmem:[%s1410_s3 + $0x38] sm:$0xff]   ;;  %1040 = vmatprep.subr.bf16.mxu1 %v1118_v3  ;;  %v1123_v8 = vld [vmem:[%s1410_s3 + $0x30] sm:$0xff]   ;;  %v1127_v12 = vld [vmem:[%s1410_s3 + $0x28] sm:$0xff]   ;;  %vm417_vm3 = vsmask.f32 6400  ;;  %vm428_vm6 = vcmask 1045504  }
  0x1d   : > { %v1120_v5 = vld [vmem:[%s1410_s3 + $0xb8] sm:$0xff]   ;;  %1019 = vmatpush3.bf16.msra.mxu0 %v1119_v4  ;;  %v1124_v9 = vld [vmem:[%s1410_s3 + $0xb0] sm:$0xff]   ;;  %v1128_v13 = vld [vmem:[%s1410_s3 + $0xa8] sm:$0xff]  }
  0x1e   : > { %1041 = vmatpush3.bf16.msra.mxu1 %v1120_v5  ;;  %1020 = vmatprep.subr.bf16.mxu0 %v1121_v6  ;;  %v1129_v14 = vld [vmem:[%s1410_s3 + $0x60] sm:$0xff]   ;;  %v1133_v18 = vld [vmem:[%s1410_s3 + $0x58] sm:$0xff]   ;;  %v1137_v22 = vld [vmem:[%s1410_s3 + $0x50] sm:$0xff]  }
  0x1f   : > { %1042 = vmatprep.subr.bf16.mxu1 %v1122_v7  ;;  %v1130_v15 = vld [vmem:[%s1410_s3 + $0xe0] sm:$0xff]   ;;  %v1134_v19 = vld [vmem:[%s1410_s3 + $0xd8] sm:$0xff]   ;;  %v1138_v23 = vld [vmem:[%s1410_s3 + $0xd0] sm:$0xff]  }
  0x20   : > { %v1131_v16 = vld [vmem:[%s1410_s3 + $0x20] sm:$0xff]   ;;  %v1135_v20 = vld [vmem:[%s1410_s3 + $0x18] sm:$0xff]   ;;  %v1139_v24 = vld [vmem:[%s1410_s3 + $0x10] sm:$0xff]  }
  0x21   : > { %1021 = vmatpush3.bf16.msra.mxu0 %v1123_v8  ;;  %v1132_v17 = vld [vmem:[%s1410_s3 + $0xa0] sm:$0xff]   ;;  %v1136_v21 = vld [vmem:[%s1410_s3 + $0x98] sm:$0xff]   ;;  %v1140_v25 = vld [vmem:[%s1410_s3 + $0x90] sm:$0xff]  }
  0x22   : > { %1043 = vmatpush3.bf16.msra.mxu1 %v1124_v9  ;;  %1022 = vmatprep.subr.bf16.mxu0 %v1125_v10  ;;  %v1141_v26 = vld [vmem:[%s1410_s3 + $0x48] sm:$0xff]   ;;  %v1145_v30 = vld [vmem:[%s1410_s3 + $0x40] sm:$0xff]   ;;  %vm990_vm4 = vmneg %vm392_vm0 }
  0x23   : > { %1044 = vmatprep.subr.bf16.mxu1 %v1126_v11  ;;  %v1142_v27 = vld [vmem:[%s1410_s3 + $0xc8] sm:$0xff]   ;;  %v1146_v31 = vld [vmem:[%s1410_s3 + $0xc0] sm:$0xff]   ;;  %v1149_v1 = vld [vmem:[%s1410_s3 + $0x138] sm:$0xff]  }
  0x24   : > { %v1143_v28 = vld [vmem:[%s1410_s3 + $0x8] sm:$0xff]   ;;  %v1147_v32 = vld [vmem:[%s1410_s3] sm:$0xff]   ;;  %v1150_v5 = vld [vmem:[%s1410_s3 + $0x130] sm:$0xff]  }
  0x25   : > { %1023 = vmatpush3.bf16.msra.mxu0 %v1127_v12  ;;  %v1144_v29 = vld [vmem:[%s1410_s3 + $0x88] sm:$0xff]   ;;  %v1148_v33 = vld [vmem:[%s1410_s3 + $0x80] sm:$0xff]   ;;  %v1153_v8 = vld [vmem:[%s1410_s3 + $0x118] sm:$0xff]  }
  0x26   : > { %1045 = vmatpush3.bf16.msra.mxu1 %v1128_v13  ;;  %1024 = vmatprep.subr.bf16.mxu0 %v1129_v14  ;;  %v1010_v34 = vld [vmem:[%s246_s13] sm:$0xff]   ;;  %v1154_v9 = vld [vmem:[%s1410_s3 + $0x110] sm:$0xff]   ;;  %s806_s13 = ssub.s32 2, %s1228_s21  ;;  %s1419_s21 = smov (!%p275_p10, %s1228_s21), 1 }
  0x27   : > { %1046 = vmatprep.subr.bf16.mxu1 %v1130_v15  ;;  %v948_v35 = vld [vmem:[%s1408_s1] ss:$0 sm:$0xff]  ;;  %v1011_v36 = vunpack.c.l.bf16 %v1010_v34  ;;  %v1012_v37 = vunpack.c.h.bf16 %v1010_v34  ;;  %v1151_v6 = vld [vmem:[%s1410_s3 + $0x128] sm:$0xff]   ;;  %p807_p8 = scmp.gt.s32.totalorder %s806_s13, 0  ;;  %p994_p9 = scmp.lt.s32.totalorder %s806_s13, 1 }
  0x28   : > { %v949_v39 = vld [vmem:[%s1409_s2] ss:$0 sm:$0xff]  ;;  %v1155_v10 = vld [vmem:[%s1410_s3 + $0x108] sm:$0xff]   ;;  %s1004_s17 = sshll.u32 %s1419_s21, 3  ;;  %s947_s26 = sshll.u32 %s1419_s21, 1 }
  0x29   : > { %1025 = vmatpush3.bf16.msra.mxu0 %v1131_v16  ;;  %v296_v40 = vmul.f32 %v1011_v36, %v948_v35  ;;  %v297_v41 = vmul.f32 %v1012_v37, %v948_v35  ;;  %v1152_v7 = vld [vmem:[%s1410_s3 + $0x120] sm:$0xff]   ;;  %s808_s14 = scalar_select %p807_p8, %s806_s13, 0 }
  0x2a   : > { %1047 = vmatpush3.bf16.msra.mxu1 %v1132_v17  ;;  %1026 = vmatprep.subr.bf16.mxu0 %v1133_v18  ;;  %v1156_v11 = vld [vmem:[%s1410_s3 + $0x100] sm:$0xff]   ;;  %s279_s24 = scalar_lea.vmem %s1411_s4, %s1004_s17  ;;  %s283_s29 = scalar_lea.vmem %s1412_s5, %s947_s26 }
  0x2b   : > { %1048 = vmatprep.subr.bf16.mxu1 %v1134_v19  ;;  %v305_v42 = vadd.f32 %v949_v39, %v296_v40  ;;  %v306_v43 = vadd.f32 %v949_v39, %v297_v41  ;;  %s1417_s14 = smov (!%p994_p9, %s808_s14), 1 }
  0x2c   : > { %s1000_s15 = sshll.u32 %s1417_s14, 4 }
  0x2d   : > { %1027 = vmatpush3.bf16.msra.mxu0 %v1135_v20  ;;  %v307_v44 = vmax.f32 %v305_v42, 0.0  ;;  %v308_v45 = vmax.f32 %v306_v43, 0.0  ;;  %s816_s16 = scvt.s32.f32 %s1000_s15 }
  0x2e   : > { %1049 = vmatpush3.bf16.msra.mxu1 %v1136_v21  ;;  %1028 = vmatprep.subr.bf16.mxu0 %v1137_v22 }
  0x2f   : > { %1050 = vmatprep.subr.bf16.mxu1 %v1138_v23  ;;  %v309_v46 = vpack.c.bf16 %v308_v45, %v307_v44  ;;  %v826_v34 = vstv %s816_s16 }
  0x30   : > { %1157 = vrcp.f32 %v826_v34 }
  0x31   : > { %1029 = vmatpush3.bf16.msra.mxu0 %v1139_v24  ;;  %v391_v47 = vrot.slane %v309_v46, 7 }
  0x32   : > { %1051 = vmatpush3.bf16.msra.mxu1 %v1140_v25  ;;  %1030 = vmatprep.subr.bf16.mxu0 %v1141_v26  ;;  %v811_v25 = vstv %s1417_s14 }
  0x33   : > { %1052 = vmatprep.subr.bf16.mxu1 %v1142_v27  ;;  %v395_v48 = vsel %vm392_vm0, 0, %v391_v47  ;;  %v397_v49 = vsel %vm392_vm0, %v391_v47, 0  ;;  %vm812_vm7 = vcmp.gt.s32.totalorder %v811_v25, 0 }
  0x34   : > { %v399_v50 = vshrl.u32 %v395_v48, 16  ;;  %v401_v51 = vshll.u32 %v395_v48, 16  ;;  %v405_v52 = vshll.u32 %v397_v49, 16  ;;  %v421_v53 = vshrl.u32 %v397_v49, 16 }
  0x35   : > { %1031 = vmatpush3.bf16.msra.mxu0 %v1143_v28  ;;  %v413_v54 = vrot.slane %v395_v48, 1  ;;  %v414_v55 = vrot.slane %v397_v49, 1  ;;  %v429_v12 = vrot.slane %v395_v48, 2  ;;  %v430_v13 = vrot.slane %v397_v49, 2 }
  0x36   : > { %1053 = vmatpush3.bf16.msra.mxu1 %v1144_v29  ;;  %1032 = vmatprep.subr.bf16.mxu0 %v1145_v30  ;;  %v403_v56 = vrot.slane %v401_v51, 1  ;;  %v407_v57 = vrot.slane %v405_v52, 1  ;;  %v418_v58 = vrot.slane %v399_v50, 1  ;;  %v419_v59 = vrot.slane %v401_v51, 2 }
  0x37   : > { %1054 = vmatprep.subr.bf16.mxu1 %v1146_v31  ;;  %v423_v60 = vrot.slane %v421_v53, 1  ;;  %v424_v61 = vrot.slane %v405_v52, 2  ;;  %v415_v3 = vsel %vm412_vm2, %v413_v54, %v414_v55  ;;  %v431_v14 = vsel %vm428_vm6, %v429_v12, %v430_v13 }
  0x38   : > { %v404_v62 = vor.u32 %v403_v56, %v399_v50  ;;  %v420_v63 = vor.u32 %v419_v59, %v418_v58 }
  0x39   : > { %1033 = vmatpush3.bf16.msra.mxu0 %v1147_v32  ;;  %v425_v0 = vor.u32 %v424_v61, %v423_v60 }
  0x3a   : > { %1055 = vmatpush3.bf16.msra.mxu1 %v1148_v33  ;;  %1071 = vmatprep.subr.bf16.mxu0 %v1183_v38  ;;  %v408_v2 = vsel %vm398_vm1, %v404_v62, %v407_v57  ;;  %v999_v33 = vsel %vm812_vm7, 1.0, %v1183_v38 }
  0x3b   : > { %705 = vmatprep.mubr.bf16.mxu0 %v408_v2  ;;  %v426_v4 = vsel %vm417_vm3, %v420_v63, %v425_v0 }
  0x3c   : > { %746 = vmatprep.mubr.bf16.mxu1 %v426_v4  ;;  %991 = vmatmul.mubr.msk.bf16.vlgmr.msra.gmra.mxu0 %vm990_vm4, %v391_v47 }
  0x3d   : > { %747 = vmatmul.mubr.bf16.vlgmr.msra.gmra.mxu1 %v415_v3  ;;  %1072 = vmatpush3.bf16.msra.mxu0 %v1149_v1  ;;  %v1158_v47 = vpop.eup %1157 }
  0x3e   : > { %1073 = vmatprep.subr.bf16.mxu0 %v1183_v38  ;;  %1087 = vmatprep.mubr.msk.bf16.mxu0 %vm1184_vm5, %v1183_v38 }
  0x41   : > { %1074 = vmatpush3.bf16.msra.mxu0 %v1150_v5 }
  0x42   : > { %1075 = vmatprep.subr.bf16.mxu0 %v1183_v38 }
  0x45   : > { %1076 = vmatpush3.bf16.msra.mxu0 %v1151_v6 }
  0x46   : > { %1077 = vmatprep.subr.bf16.mxu0 %v1183_v38 }
  0x49   : > { %1078 = vmatpush3.bf16.msra.mxu0 %v1152_v7 }
  0x4a   : > { %1079 = vmatprep.subr.bf16.mxu0 %v1183_v38 }
  0x4d   : > { %1080 = vmatpush3.bf16.msra.mxu0 %v1153_v8 }
  0x4e   : > { %1081 = vmatprep.subr.bf16.mxu0 %v1183_v38 }
  0x51   : > { %1082 = vmatpush3.bf16.msra.mxu0 %v1154_v9 }
  0x52   : > { %1083 = vmatprep.subr.bf16.mxu0 %v1183_v38 }
  0x55   : > { %1084 = vmatpush3.bf16.msra.mxu0 %v1155_v10 }
  0x56   : > { %1085 = vmatprep.subr.bf16.mxu0 %v1183_v38 }
  0x59   : > { %1086 = vmatpush3.bf16.msra.mxu0 %v1156_v11 }
  0x5c   : > { %1088 = vmatmul.mubr.bf16.vlgmr.msra.gmra.mxu0 %v431_v14 }
  0xfc   : > { %v1034_v15 = vpop.f32.mrf.mxu0 }
  0xfd   : > { %v1056_v16 = vpop.f32.mrf.mxu1 }
  0xfe   : > { %v1035_v17 = vpop.f32.mrf.mxu0 }
  0xff   : > { %v1057_v18 = vpop.f32.mrf.mxu1  ;;  %v1036_v23 = vadd.f32 %v1035_v17, %v1034_v15 }
 0x100   : > { %v1037_v19 = vpop.f32.mrf.mxu0  ;;  %v1058_v24 = vadd.f32 %v1057_v18, %v1056_v16 }
 0x101   : > { %v1059_v20 = vpop.f32.mrf.mxu1 }
 0x102   : > { %v1038_v21 = vpop.f32.mrf.mxu0  ;;  %v749_v29 = vadd.f32 %v1058_v24, %v1036_v23 }
 0x103   : > { %v1060_v22 = vpop.f32.mrf.mxu1  ;;  %v1039_v26 = vadd.f32 %v1038_v21, %v1037_v19 }
 0x104   : > { %v1061_v27 = vadd.f32 %v1060_v22, %v1059_v20 }
 0x106   : > { %v752_v32 = vadd.f32 %v1061_v27, %v1039_v26 }
 0x11c   : > { %v789_v28 = vpop.f32.mrf.mxu0 }
 0x11d   : > { %v790_v31 = vadd.f32 %v789_v28, %v749_v29 }
 0x11e   : > { %v1089_v30 = vpop.f32.mrf.mxu0 }
 0x11f   : > { %v817_v39 = vmul.f32 %v999_v33, %v790_v31 }
 0x120   : > { %v792_v35 = vpop.f32.mrf.mxu0 }
 0x121   : > { %v793_v36 = vadd.f32 %v792_v35, %v752_v32 }
 0x122   : > { %v1090_v37 = vpop.f32.mrf.mxu0 }
 0x123   : > { %v1016_v40 = vpack.c.bf16 %v793_v36, %v790_v31  ;;  %v818_v41 = vmul.f32 %v999_v33, %v793_v36 }
 0x125   : > { %1017 = vst [vmem:[%s279_s24] sm:$0xff] %v1016_v40   ;;  %v819_v42 = vadd.f32 %v818_v41, %v817_v39 }
 0x127   : > { %v820_v43 = vrot.slane %v819_v42, 4 }
 0x129   : > { %v821_v44 = vadd.f32 %v820_v43, %v819_v42 }
 0x12b   : > { %v822_v45 = vrot.slane %v821_v44, 2 }
 0x12d   : > { %v823_v46 = vadd.f32 %v822_v45, %v821_v44 }
 0x12f   : > { %v824_v38 = vrot.slane %v823_v46, 1 }
 0x131   : > { %v825_v48 = vadd.f32 %v824_v38, %v823_v46 }
 0x133   : > { %v828_v49 = vmul.f32 %v1158_v47, %v825_v48 }
 0x135   : > { %v829_v50 = vsub.f32 %v790_v31, %v828_v49  ;;  %v830_v51 = vsub.f32 %v793_v36, %v828_v49 }
 0x137   : > { %v831_v52 = vmul.f32 %v999_v33, %v829_v50  ;;  %v832_v53 = vmul.f32 %v999_v33, %v830_v51 }
 0x139   : > { %v833_v54 = vmul.f32 %v831_v52, %v831_v52  ;;  %v834_v55 = vmul.f32 %v832_v53, %v832_v53 }
 0x13b   : > { %v835_v56 = vadd.f32 %v834_v55, %v833_v54 }
 0x13d   : > { %v836_v57 = vrot.slane %v835_v56, 4 }
 0x13f   : > { %v837_v58 = vadd.f32 %v836_v57, %v835_v56 }
 0x141   : > { %v838_v59 = vrot.slane %v837_v58, 2 }
 0x143   : > { %v839_v60 = vadd.f32 %v838_v59, %v837_v58 }
 0x145   : > { %v840_v61 = vrot.slane %v839_v60, 1 }
 0x147   : > { %v841_v62 = vadd.f32 %v840_v61, %v839_v60 }
 0x149   : > { %v842_v63 = vsel %vm392_vm0, %v825_v48, %v841_v62 }
 0x14a   : > { %843 = vst [vmem:[%s283_s29] sm:$0x3] %v842_v63 }
 0x14b PF: > { %p13_p11 = scmp.ge.s32.totalorder %s1230_s22, 4   ;;  %s1413_s18 = smov %s1177_s19 }
 0x14c   : > { %s1414_s19 = smov %s1237_s25  ;;  %s1415_s20 = smov %s1230_s22 }
 0x14d   :  { %15 = sbr.rel (!%p13_p11) target bundleno = 2 (0x2), region = 124 }

// kernel: resnet_classifier.15
= control target key start
LH: loop header
LB: loop body
LE: loop exit
PB: predicated region body
PF: predicated region fallthrough
CT: control target
= control target key end

     0   :  { %s895_s18 = smov 0   ;;  %s1018_s0 = inlined_call_operand.vmem [shape: bf16[2,16,128], index: 0, kind: input, shape index: {}]   ;;  %s1019_s1 = inlined_call_operand.vmem [shape: f32[1,1,128], index: 1, kind: input, shape index: {}]   ;;  %s1020_s2 = inlined_call_operand.vmem [shape: f32[1,1,128], index: 2, kind: input, shape index: {}]   ;;  %s1021_s3 = inlined_call_operand.vmem [shape: bf16[384,128], index: 3, kind: input, shape index: {}]   ;;  %s1022_s4 = inlined_call_operand.vmem [shape: bf16[2,16,128], index: 4, kind: output, shape index: {0}]   ;;  %s1023_s5 = inlined_call_operand.vmem [shape: f32[2,2,128], index: 5, kind: output, shape index: {1}]  }
   0x1 LB: > { %s901_s19 = sadd.s32 4294967295, %s861_s18   ;;  %p710_p0 = scmp.ge.s32.totalorder %s861_s18, 1  ;;  %s861_s18 = sphi %s895_s18, %s16_s18  }
   0x2   : > { %p190_p1 = scmp.lt.s32.totalorder %s861_s18, 3 }
   0x4   : > { %p191_p2 = pnand %p710_p0, %p190_p1 }
   0x5   : > { %p222_p3 = scmp.lt.s32.totalorder (!%p191_p2), %s901_s19, 1  ;;  %s581_s8 = ssub.s32 (!%p191_p2), 2, %s901_s19 }
   0x6   : > { %194 = sbr.rel (%p191_p2) target bundleno = 288 (0x120), region = 36  ;;  %p582_p4 = scmp.gt.s32.totalorder (!%p191_p2), %s581_s8, 0 }
   0x7   : > { %p744_p5 = scmp.lt.s32.totalorder (!%p191_p2), %s581_s8, 1 }
   0xb   : > { %v829_v0 = vld [vmem:[%s1021_s3 + $0x78] sm:$0xff]   ;;  %v863_v1 = vmov 0.0   ;;  %vm864_vm0 = vmmov 0   ;;  %v832_v4 = vld [vmem:[%s1021_s3 + $0x70] sm:$0xff]   ;;  %v835_v7 = vld [vmem:[%s1021_s3 + $0x68] sm:$0xff]   ;;  %s951_s23 = scalar_select %p222_p3, %s901_s19, 1 }
   0xc   : > { %799 = vmatprep.subr.bf16.mxu1 %v863_v1  ;;  %v830_v2 = vld [vmem:[%s1021_s3 + $0xb8] sm:$0xff]   ;;  %768 = vmatprep.subr.bf16.mxu0 %v829_v0  ;;  %v833_v5 = vld [vmem:[%s1021_s3 + $0xb0] sm:$0xff]   ;;  %v836_v8 = vld [vmem:[%s1021_s3 + $0xa8] sm:$0xff]   ;;  %vm319_vm1 = vcmask 1040384   ;;  %vm320_vm2 = vsmask.f32 256 }
   0xd   : > { %v831_v3 = vld [vmem:[%s1021_s3 + $0x38] sm:$0xff]   ;;  %815 = vmatprep.mubr.msk.bf16.mxu1 %vm864_vm0, %v863_v1  ;;  %800 = vmatpush3.bf16.msra.mxu1 %v830_v2  ;;  %v834_v6 = vld [vmem:[%s1021_s3 + $0x30] sm:$0xff]   ;;  %v837_v9 = vld [vmem:[%s1021_s3 + $0x28] sm:$0xff]   ;;  %s753_s30 = sshll.u32 %s951_s23, 3  ;;  %vm340_vm4 = vcmask 1046528  }
   0xe   : > { %769 = vmatpush3.bf16.msra.mxu0 %v831_v3  ;;  %801 = vmatprep.subr.bf16.mxu1 %v863_v1  ;;  %v838_v10 = vld [vmem:[%s1021_s3 + $0x60] sm:$0xff]   ;;  %v841_v13 = vld [vmem:[%s1021_s3 + $0x58] sm:$0xff]   ;;  %v844_v16 = vld [vmem:[%s1021_s3 + $0x50] sm:$0xff]   ;;  %s226_s14 = scalar_lea.vmem %s1018_s0, %s753_s30  ;;  %vm324_vm5 = vsmask.f32 7424  ;;  %s231_s13 = scalar_lea.vmem %s1022_s4, %s753_s30 }
   0xf   : > { %770 = vmatprep.subr.bf16.mxu0 %v832_v4  ;;  %v839_v11 = vld [vmem:[%s1021_s3 + $0xa0] sm:$0xff]   ;;  %v842_v14 = vld [vmem:[%s1021_s3 + $0x98] sm:$0xff]   ;;  %v845_v17 = vld [vmem:[%s1021_s3 + $0x90] sm:$0xff]   ;;  %s583_s9 = scalar_select %p582_p4, %s581_s8, 0 }
  0x10   : > { %v840_v12 = vld [vmem:[%s1021_s3 + $0x20] sm:$0xff]   ;;  %v843_v15 = vld [vmem:[%s1021_s3 + $0x18] sm:$0xff]   ;;  %v846_v18 = vld [vmem:[%s1021_s3 + $0x10] sm:$0xff]   ;;  %s715_s30 = sshll.u32 %s951_s23, 1 }
  0x11   : > { %802 = vmatpush3.bf16.msra.mxu1 %v833_v5  ;;  %v847_v19 = vld [vmem:[%s1021_s3 + $0x48] sm:$0xff]   ;;  %v760_v22 = vld [vmem:[%s226_s14] sm:$0xff]   ;;  %vm321_vm3 = vmand %vm319_vm1, %vm320_vm2  ;;  %s1025_s9 = smov (!%p744_p5, %s583_s9), 1  ;;  %s235_s16 = scalar_lea.vmem %s1023_s5, %s715_s30 }
  0x12   : > { %771 = vmatpush3.bf16.msra.mxu0 %v834_v6  ;;  %803 = vmatprep.subr.bf16.mxu1 %v863_v1  ;;  %v848_v20 = vld [vmem:[%s1021_s3 + $0x88] sm:$0xff]   ;;  %v716_v23 = vld [vmem:[%s1019_s1] ss:$0 sm:$0xff]  ;;  %v761_v25 = vunpack.c.l.bf16 %v760_v22  ;;  %v762_v26 = vunpack.c.h.bf16 %v760_v22  ;;  %s750_s10 = sshll.u32 %s1025_s9, 4  ;;  %v586_v59 = vstv %s1025_s9 }
  0x13   : > { %772 = vmatprep.subr.bf16.mxu0 %v835_v7  ;;  %v849_v21 = vld [vmem:[%s1021_s3 + $0x8] sm:$0xff]   ;;  %v850_v24 = vld [vmem:[%s1021_s3 + $0x40] sm:$0xff]   ;;  %s591_s11 = scvt.s32.f32 %s750_s10  ;;  %vm587_vm6 = vcmp.gt.s32.totalorder %v586_v59, 0 }
  0x14   : > { %v717_v27 = vld [vmem:[%s1020_s2] ss:$0 sm:$0xff]  ;;  %v248_v29 = vmul.f32 %v761_v25, %v716_v23  ;;  %v249_v30 = vmul.f32 %v762_v26, %v716_v23  ;;  %v749_v2 = vsel %vm587_vm6, 1.0, %v863_v1 }
  0x15   : > { %804 = vmatpush3.bf16.msra.mxu1 %v836_v8  ;;  %v851_v28 = vld [vmem:[%s1021_s3 + $0x80] sm:$0xff]   ;;  %v601_v3 = vstv %s591_s11 }
  0x16   : > { %773 = vmatpush3.bf16.msra.mxu0 %v837_v9  ;;  %805 = vmatprep.subr.bf16.mxu1 %v863_v1  ;;  %v852_v31 = vld [vmem:[%s1021_s3] sm:$0xff]   ;;  %v257_v32 = vadd.f32 %v717_v27, %v248_v29  ;;  %v258_v33 = vadd.f32 %v717_v27, %v249_v30  ;;  %853 = vrcp.f32 %v601_v3 }
  0x17   : > { %774 = vmatprep.subr.bf16.mxu0 %v838_v10 }
  0x18   : > { %v259_v34 = vmax.f32 %v257_v32, 0.0  ;;  %v260_v35 = vmax.f32 %v258_v33, 0.0 }
  0x19   : > { %806 = vmatpush3.bf16.msra.mxu1 %v839_v11 }
  0x1a   : > { %775 = vmatpush3.bf16.msra.mxu0 %v840_v12  ;;  %807 = vmatprep.subr.bf16.mxu1 %v863_v1  ;;  %v261_v36 = vpack.c.bf16 %v260_v35, %v259_v34 }
  0x1b   : > { %776 = vmatprep.subr.bf16.mxu0 %v841_v13 }
  0x1c   : > { %v311_v37 = vshrl.u32 %v261_v36, 16  ;;  %v314_v38 = vshll.u32 %v261_v36, 16 }
  0x1d   : > { %808 = vmatpush3.bf16.msra.mxu1 %v842_v14 }
  0x1e   : > { %777 = vmatpush3.bf16.msra.mxu0 %v843_v15  ;;  %809 = vmatprep.subr.bf16.mxu1 %v863_v1  ;;  %v313_v39 = vrot.slane %v311_v37, 7 }
  0x1f   : > { %778 = vmatprep.subr.bf16.mxu0 %v844_v16 }
  0x20   : > { %v316_v40 = vor.u32 %v314_v38, %v313_v39  ;;  %v323_v41 = vsel %vm321_vm3, %v313_v39, 0 }
  0x21   : > { %810 = vmatpush3.bf16.msra.mxu1 %v845_v17  ;;  %v333_v42 = vshll.u32 %v323_v41, 16  ;;  %v342_v43 = vrot.slane %v323_v41, 1 }
  0x22   : > { %779 = vmatpush3.bf16.msra.mxu0 %v846_v18  ;;  %811 = vmatprep.subr.bf16.mxu1 %v863_v1  ;;  %v322_v44 = vsel %vm321_vm3, 0, %v316_v40 }
  0x23   : > { %780 = vmatprep.subr.bf16.mxu0 %v847_v19  ;;  %v326_v45 = vshrl.u32 %v322_v44, 16  ;;  %v328_v46 = vshll.u32 %v322_v44, 16  ;;  %v341_v47 = vrot.slane %v322_v44, 1  ;;  %v335_v49 = vrot.slane %v333_v42, 1 }
  0x25   : > { %812 = vmatpush3.bf16.msra.mxu1 %v848_v20  ;;  %v330_v48 = vrot.slane %v328_v46, 1  ;;  %v343_v50 = vsel %vm340_vm4, %v341_v47, %v342_v43 }
  0x26   : > { %781 = vmatpush3.bf16.msra.mxu0 %v849_v21  ;;  %813 = vmatprep.subr.bf16.mxu1 %v863_v1  ;;  %v854_v1 = vpop.eup %853 }
  0x27   : > { %782 = vmatprep.subr.bf16.mxu0 %v850_v24  ;;  %v331_v51 = vor.u32 %v330_v48, %v326_v45 }
  0x29   : > { %814 = vmatpush3.bf16.msra.mxu1 %v851_v28  ;;  %v336_v52 = vsel %vm324_vm5, %v331_v51, %v335_v49 }
  0x2a   : > { %783 = vmatpush3.bf16.msra.mxu0 %v852_v31  ;;  %521 = vmatprep.mubr.bf16.mxu0 %v336_v52 }
  0x2c   : > { %816 = vmatmul.mubr.bf16.vlgmr.msra.gmra.mxu1 %v343_v50 }
  0x2d   : > { %522 = vmatmul.mubr.bf16.vlgmr.msra.gmra.mxu0 %v322_v44 }
  0xec   : > { %v564_v53 = vpop.f32.mrf.mxu1 }
  0xed   : > { %v784_v56 = vpop.f32.mrf.mxu0 }
  0xee   : > { %v817_v54 = vpop.f32.mrf.mxu1 }
  0xef   : > { %v785_v58 = vpop.f32.mrf.mxu0 }
  0xf0   : > { %v567_v55 = vpop.f32.mrf.mxu1  ;;  %v786_v60 = vadd.f32 %v785_v58, %v784_v56 }
  0xf1   : > { %v787_v61 = vpop.f32.mrf.mxu0 }
  0xf2   : > { %v818_v57 = vpop.f32.mrf.mxu1  ;;  %v565_v63 = vadd.f32 %v786_v60, %v564_v53 }
  0xf3   : > { %v788_v62 = vpop.f32.mrf.mxu0 }
  0xf4   : > { %v789_v0 = vadd.f32 %v788_v62, %v787_v61  ;;  %v592_v5 = vmul.f32 %v749_v2, %v565_v63 }
  0xf6   : > { %v568_v4 = vadd.f32 %v789_v0, %v567_v55 }
  0xf8   : > { %v766_v6 = vpack.c.bf16 %v568_v4, %v565_v63  ;;  %v593_v7 = vmul.f32 %v749_v2, %v568_v4 }
  0xfa   : > { %767 = vst [vmem:[%s231_s13] sm:$0xff] %v766_v6   ;;  %v594_v8 = vadd.f32 %v593_v7, %v592_v5 }
  0xfc   : > { %v595_v9 = vrot.slane %v594_v8, 4 }
  0xfe   : > { %v596_v10 = vadd.f32 %v595_v9, %v594_v8 }
 0x100   : > { %v597_v11 = vrot.slane %v596_v10, 2 }
 0x102   : > { %v598_v12 = vadd.f32 %v597_v11, %v596_v10 }
 0x104   : > { %v599_v13 = vrot.slane %v598_v12, 1 }
 0x106   : > { %v600_v14 = vadd.f32 %v599_v13, %v598_v12 }
 0x108   : > { %v603_v15 = vmul.f32 %v854_v1, %v600_v14 }
 0x10a   : > { %v604_v16 = vsub.f32 %v565_v63, %v603_v15  ;;  %v605_v17 = vsub.f32 %v568_v4, %v603_v15 }
 0x10c   : > { %v606_v18 = vmul.f32 %v749_v2, %v604_v16  ;;  %v607_v19 = vmul.f32 %v749_v2, %v605_v17 }
 0x10e   : > { %v608_v20 = vmul.f32 %v606_v18, %v606_v18  ;;  %v609_v21 = vmul.f32 %v607_v19, %v607_v19 }
 0x110   : > { %v610_v22 = vadd.f32 %v609_v21, %v608_v20 }
 0x112   : > { %v611_v23 = vrot.slane %v610_v22, 4 }
 0x114   : > { %v612_v24 = vadd.f32 %v611_v23, %v610_v22 }
 0x116   : > { %v613_v25 = vrot.slane %v612_v24, 2 }
 0x118   : > { %v614_v26 = vadd.f32 %v613_v25, %v612_v24 }
 0x11a   : > { %v615_v27 = vrot.slane %v614_v26, 1 }
 0x11c   : > { %v616_v28 = vadd.f32 %v615_v27, %v614_v26 }
 0x11e   : > { %v618_v29 = vsel %vm319_vm1, %v600_v14, %v616_v28 }
 0x11f   : > { %619 = vst [vmem:[%s235_s16] sm:$0x3] %v618_v29 }
 0x120 PF: > { %s16_s18 = sadd.s32 1, %s861_s18  }
 0x121   : > { %p13_p6 = scmp.ge.s32.totalorder %s16_s18, 4  }
 0x123   :  { %15 = sbr.rel (!%p13_p6) target bundleno = 1 (0x1), region = 78 }

// kernel: resnet_classifier.19
= control target key start
LH: loop header
LB: loop body
LE: loop exit
PB: predicated region body
PF: predicated region fallthrough
CT: control target
= control target key end

     0   :  { %13 = vsyncpa [#allocation4], 0  ;;  %s940_s0 = inlined_call_operand.vmem [shape: bf16[2,16,128], index: 0, kind: input, shape index: {}]   ;;  %s941_s1 = inlined_call_operand.vmem [shape: bf16[2,16,256], index: 1, kind: input, shape index: {}]   ;;  %s942_s2 = inlined_call_operand.vmem [shape: f32[1,1,128], index: 2, kind: input, shape index: {}]   ;;  %s943_s3 = inlined_call_operand.vmem [shape: f32[1,1,128], index: 3, kind: input, shape index: {}]   ;;  %s944_s4 = inlined_call_operand.vmem [shape: f32[1,1,128], index: 4, kind: input, shape index: {}]   ;;  %s945_s5 = inlined_call_operand.vmem [shape: f32[1,1,128], index: 5, kind: input, shape index: {}]   ;;  %s946_s6 = inlined_call_operand.vmem [shape: f32[16,4], index: 6, kind: input, shape index: {}]   ;;  %s947_s7 = inlined_call_operand.vmem [shape: f32[1,4], index: 7, kind: input, shape index: {}]   ;;  %s948_s8 = inlined_call_operand.hbm [shape: f32[2,1,4], index: 8, kind: output, shape index: {}]  }
   0x1   :  { %15 = vsyncpa [#allocation4 + $0x1], 0  ;;  %s814_s27 = smov 0   ;;  %s816_s28 = smov 0  }
   0x2   :  { %s818_s29 = smov 0   ;;  %s820_s30 = smov 0  }
   0x3 LB: > { %s835_s9 = sadd.s32 4294967295, %s764_s30   ;;  %s619_s10 = sadd.s32 4294967294, %s764_s30   ;;  %s764_s30 = sphi %s820_s30, %s956_s30   ;;  %s760_s29 = sphi %s818_s29, %s955_s29   ;;  %s756_s28 = sphi %s816_s28, %s954_s28   ;;  %s752_s27 = sphi %s814_s27, %s953_s27  }
   0x4   : > { %s839_s11 = sadd.s32 1, %s764_s30   ;;  %s54_s12 = sadd.s32 1, %s760_s29 }
   0x5   : > { %s51_s13 = ssub.s32 %s764_s30, %s839_s11  ;;  %p61_p0 = scmp.ne.s32.totalorder %s760_s29, %s756_s28 }
   0x6   : > { %p52_p1 = scmp.eq.s32.totalorder %s51_s13, 0  ;;  %p62_p2 = scmp.eq.s32.totalorder %s764_s30, 0 }
   0x7   : > { %p217_p3 = scmp.eq.s32.totalorder %s835_s9, 1  ;;  %p222_p4 = scmp.ne.s32.totalorder %s756_s28, %s752_s27 }
   0x8   : > { %s851_s14 = scalar_select %p52_p1, %s760_s29, %s54_s12  }
   0x9   : > { %p63_p5 = por %p62_p2, %p61_p0  ;;  %p853_p6 = por %p217_p3, %p61_p0 }
   0xa   : > { %p223_p7 = scmp.eq.s32.totalorder %s619_s10, 1  ;;  %p949_p9 = scmp.ge.s32.totalorder %s764_s30, 2 }
   0xc   : > { %p857_p8 = por %p223_p7, %p222_p4  ;;  %257 = sbr.rel (%p949_p9) target bundleno = 22 (0x16), region = 40 }
  0x11   : > { %268 = sbr.rel (!%p63_p5) target bundleno = 22 (0x16), region = 48  ;;  %s270_s17 = sand.u32 (%p63_p5), 1, %s760_s29  }
  0x12   : > { %s639_s18 = sshll.u32 (%p63_p5), %s764_s30, 4  ;;  %s622_s19 = sshll.u32 (%p63_p5), %s270_s17, 3 }
  0x13   : > { %s570_s22 = scalar_lea.vmem (%p63_p5), %s941_s1, %s639_s18  ;;  %s272_s23 = scalar_lea.vmem (%p63_p5), [#allocation2], %s622_s19 }
  0x14   : > { %v625_v0 = vld [vmem:[%s570_s22 + $0x4] sm:$0xf] (%p63_p5)  ;;  %v626_v1 = vld [vmem:[%s570_s22 + $0xc] sm:$0xf] (%p63_p5) }
  0x15   : > { %294 = vst [vmem:[%s272_s23] sm:$0xf] (%p63_p5), %v625_v0  ;;  %296 = vst [vmem:[%s272_s23 + $0x4] sm:$0xf] (%p63_p5), %v626_v1 }
  0x16 PF: > { %p627_p10 = scmp.ge.s32.totalorder %s764_s30, 1  ;;  %p323_p11 = scmp.lt.s32.totalorder %s764_s30, 3 }
  0x18   : > { %p324_p12 = pnand %p627_p10, %p323_p11 }
  0x19   : > { %s872_s24 = sand.u32 (!%p324_p12), 1, %s756_s28   ;;  %p367_p13 = scmp.lt.s32.totalorder (!%p324_p12), %s835_s9, 1 }
  0x1a   : > { %327 = sbr.rel (%p324_p12) target bundleno = 715 (0x2cb), region = 89  ;;  %s628_s25 = sshll.u32 (!%p324_p12), %s872_s24, 3 }
  0x1b   : > { %s332_s10 = scalar_lea.vmem (!%p324_p12), [#allocation2], %s628_s25  ;;  %s636_s21 = sshll.u32 (!%p324_p12), %s835_s9, 4 }
  0x1c   : > { %s366_s22 = scalar_lea.vmem (!%p324_p12), [#allocation3], %s872_s24  ;;  %s768_s17 = smov (!%p324_p12), [#allocation3]  }
  0x1d   : > { %s544_s23 = sshll.u32 (!%p324_p12), %s366_s22, 4  ;;  %s545_s23 = int_to_ptr.vmem [resolvable:$true] %s544_s23 }
  0x1e   : > { %s704_s13 = scalar_lea.vmem (!%p324_p12), %s545_s23, 16 }
  0x1f   : > { %s368_s26 = scalar_select %p367_p13, %s835_s9, 1  ;;  %v642_v2 = vld [vmem:[%s332_s10] sm:$0xff]   ;;  %v766_v24 = vmov 0.0   ;;  %vm767_vm0 = vmmov 0   ;;  %v432_v27 = vlaneseq  ;;  %vm443_vm1 = vcmask 130112  }
  0x20   : > { %v643_v3 = vunpack.c.l.bf16 %v642_v2  ;;  %v644_v4 = vunpack.c.h.bf16 %v642_v2  ;;  %v631_v6 = vld [vmem:[%s942_s2] ss:$0 sm:$0xff]  ;;  %652 = vmatprep.subr.mxu0 %v766_v24  ;;  %v428_v25 = vld [vmem:[%s946_s6 + $0x8] sm:$0xff]  ;;  %656 = vmatprep.mubr.msk.f32.mxu0 %vm767_vm0, %v766_v24  ;;  %vm445_vm2 = vcmask 130048   ;;  %vm518_vm3 = vcmask 24576   ;;  %s542_s10 = scalar_lea.hbm %s948_s8, %s636_s21  ;;  %p705_p0 = scmp.ne.s32.totalorder %s545_s23, %s704_s13 }
  0x21   : > { %s640_s12 = sshll.u32 %s368_s26, 3  ;;  %v633_v7 = vld [vmem:[%s944_s4] ss:$0 sm:$0xff]  ;;  %653 = vmatpush3.msra.mxu0 %v428_v25  ;;  %v433_v28 = vand.u32 127, %v432_v27  ;;  %v435_v29 = vshrl.u32 %v432_v27, 7 }
  0x22   : > { %s371_s18 = scalar_lea.vmem %s940_s0, %s640_s12  ;;  %v632_v10 = vld [vmem:[%s943_s3] ss:$0 sm:$0xff]  ;;  %v405_v12 = vmul.f32 %v643_v3, %v633_v7  ;;  %v406_v14 = vmul.f32 %v644_v4, %v633_v7  ;;  %654 = vmatprep.subr.mxu0 %v766_v24  ;;  %s532_s12 = scalar_lea.sflag [#allocation4], %s872_s24 }
  0x23   : > { %v646_v5 = vld [vmem:[%s371_s18] sm:$0xff]   ;;  %v438_v30 = vadd.s32 4294967288, %v433_v28  ;;  %v436_v32 = vsub.s32 %v433_v28, %v435_v29  ;;  %p706_p1 = pnand %p705_p0, %p853_p6  ;;  %s708_s18 = sshll.u32 %s768_s17, 4  ;;  %s709_s18 = int_to_ptr.vmem [resolvable:$false] %s708_s18 }
  0x24   : > { %v647_v8 = vunpack.c.l.bf16 %v646_v5  ;;  %v648_v9 = vunpack.c.h.bf16 %v646_v5  ;;  %v634_v17 = vld [vmem:[%s945_s5] ss:$0 sm:$0xff]  ;;  %s710_s9 = scalar_lea.vmem %s709_s18, 32  ;;  %p711_p3 = scmp.lt.s32.totalorder %s545_s23, %s709_s18 }
  0x25   : > { %v427_v26 = vld [vmem:[%s946_s6] sm:$0xff]  ;;  %v441_v34 = vsub.s32 %v438_v30, %v435_v29  ;;  %p707_p2 = pneg %p706_p1  ;;  %p712_p4 = scmp.lt.s32.totalorder %s710_s9, %s704_s13 }
  0x26   : > { %v385_v11 = vmul.f32 %v647_v8, %v631_v6  ;;  %v386_v13 = vmul.f32 %v648_v9, %v631_v6  ;;  %655 = vmatpush3.msra.mxu0 %v427_v26  ;;  %v429_v40 = vld [vmem:[%s947_s7] sm:$0x1] }
  0x27   : > { %p713_p5 = por %p712_p4, %p711_p3 }
  0x28   : > { %v394_v15 = vadd.f32 %v632_v10, %v385_v11  ;;  %v395_v16 = vadd.f32 %v632_v10, %v386_v13 }
  0x29   : > { %p714_p7 = pnand %p713_p5, %p707_p2 }
  0x2a   : > { %v407_v18 = vadd.f32 %v405_v12, %v394_v15  ;;  %v408_v19 = vadd.f32 %v406_v14, %v395_v16 }
  0x2c   : > { %v416_v20 = vadd.f32 %v634_v17, %v407_v18  ;;  %v417_v21 = vadd.f32 %v634_v17, %v408_v19 }
  0x2e   : > { %v418_v22 = vmax.f32 %v416_v20, 0.0  ;;  %v419_v23 = vmax.f32 %v417_v21, 0.0 }
  0x30   : > { %420 = vadd.xlane.f32.xlu0 %v418_v22 }
  0x34   : > { %422 = vadd.xlane.f32.xlu0 %v419_v23 }
  0xb9   : > { %v421_v31 = vpop.xlane.xlu0 %420 }
  0xba   : > { %v425_v33 = vmul.f32 0.0078125, %v421_v31 }
  0xbc   : > { %v437_v37 = vrot.slane %v425_v33, %v436_v32 }
  0xbd   : > { %v423_v35 = vpop.xlane.xlu0 %422 }
  0xbe   : > { %v426_v36 = vmul.f32 0.0078125, %v423_v35 }
  0xc0   : > { %v442_v38 = vrot.slane %v426_v36, %v441_v34 }
  0xc2   : > { %v444_v39 = vsel %vm443_vm1, %v442_v38, %v437_v37 }
  0xc3   : > { %657 = vmatmul.mubr.msk.f32.vlgmr.msra.gmra.mxu0 %vm445_vm2, %v444_v39 }
 0x183   : > { %v514_v41 = vpop.f32.mrf.mxu0 }
 0x184   : > { %v515_v42 = vadd.f32 %v514_v41, %v429_v40 }
 0x185   : > { %v658_v43 = vpop.f32.mrf.mxu0 }
 0x186   : > { %v519_v44 = vsel %vm518_vm3, %v515_v42, -inf }
 0x187   : > { %520 = vmax.xlane.f32.xlu1 %v519_v44 }
 0x210   : > { %v521_v45 = vpop.xlane.xlu1 %520 }
 0x211   : > { %v522_v46 = vsub.f32 %v515_v42, %v521_v45 }
 0x213   : > { %v523_v47 = vmul.f32 1.442695, %v522_v46 }
 0x215   : > { %700 = vpow2.f32 %v523_v47 }
 0x222   : > { %v701_v48 = vpop.eup %700 }
 0x223   : > { %v525_v49 = vsel %vm518_vm3, %v701_v48, 0.0 }
 0x224   : > { %526 = vadd.xlane.f32.xlu1 %v525_v49 }
 0x2ad   : > { %v527_v50 = vpop.xlane.xlu1 %526 }
 0x2ae   : > { %702 = vrcp.f32 %v527_v50 }
 0x2bb   : > { %v703_v51 = vpop.eup %702 }
 0x2bc   : > { %v529_v52 = vmul.f32 %v703_v51, %v701_v48 }
 0x2be   : > { %530 = vst.msk [vmem:[%s366_s22] sm:$0x1] %vm518_vm3, %v529_v52 }
 0x2bf   : > { %717 = shalt.err (!%p714_p7)
}
 0x2c0   : > { %s718_s19 = scalar_lea.hbm %s542_s10, 16  ;;  %s722_s21 = scalar_lea.hbm %s948_s8, 32 }
 0x2c1   : > { %p719_p10 = scmp.ne.s32.totalorder %s542_s10, %s718_s19  ;;  %p723_p13 = scmp.lt.s32.totalorder %s542_s10, %s948_s8 }
 0x2c2   : > { %p724_p0 = scmp.lt.s32.totalorder %s722_s21, %s718_s19 }
 0x2c3   : > { %p720_p11 = pnand %p719_p10, %p853_p6 }
 0x2c4   : > { %p725_p1 = por %p724_p0, %p723_p13 }
 0x2c5   : > { %p721_p12 = pneg %p720_p11 }
 0x2c7   : > { %p726_p9 = pnand %p725_p1, %p721_p12 }
 0x2c9   : > { %729 = shalt.err (!%p726_p9)
}
 0x2ca   : > { %659 = dma.vmem_to_hbm [thread:$0]  (%p853_p6), %s545_s23, 16, %s542_s10, %s532_s12  }
 0x2cb PF: > { %s556_s26 = sand.u32 1, %s752_s27   ;;  %p952_p2 = scmp.ge.s32.totalorder %s764_s30, 2 }
 0x2cc   : > { %s557_s13 = scalar_lea.sflag [#allocation4], %s556_s26 }
 0x2cd   : > { %p662_p3 = pnand %p952_p2, %p857_p8 }
 0x2cf   : > { %p663_p4 = pneg %p662_p3 }
 0x2d1   : > { %747 = dma.done.wait (%p663_p4), %s557_s13, 16  }
 0x2d2   : > { %749 = vsyncadd (%p663_p4), %s557_s13, 4294967280  ;;  %p18_p9 = scmp.ge.s32.totalorder %s839_s11, 4   ;;  %s953_s27 = smov %s756_s28 }
 0x2d3   : > { %s954_s28 = smov %s760_s29  ;;  %s955_s29 = smov %s851_s14 }
 0x2d4   : > { %s956_s30 = smov %s839_s11  ;;  %20 = sbr.rel (!%p18_p9) target bundleno = 3 (0x3), region = 136 }
 0x2d9   :  { %561 = vsyncpa [#allocation4], 1 }
 0x2da   :  { %563 = vsyncpa [#allocation4 + $0x1], 1 }

// kernel: resnet_classifier.16
= control target key start
LH: loop header
LB: loop body
LE: loop exit
PB: predicated region body
PF: predicated region fallthrough
CT: control target
= control target key end

     0   :  { %s2114_s27 = smov 0   ;;  %s2116_s28 = smov 0   ;;  %s2593_s0 = inlined_call_operand.vmem [shape: bf16[2,16,128], index: 0, kind: input, shape index: {}]   ;;  %s2594_s1 = inlined_call_operand.vmem [shape: bf16[2,16,256], index: 1, kind: input, shape index: {}]   ;;  %s2595_s2 = inlined_call_operand.vmem [shape: f32[1,1,128], index: 2, kind: input, shape index: {}]   ;;  %s2596_s3 = inlined_call_operand.vmem [shape: f32[1,1,128], index: 3, kind: input, shape index: {}]   ;;  %s2597_s4 = inlined_call_operand.vmem [shape: f32[1,1,128], index: 4, kind: input, shape index: {}]   ;;  %s2598_s5 = inlined_call_operand.vmem [shape: f32[1,1,128], index: 5, kind: input, shape index: {}]   ;;  %s2599_s6 = inlined_call_operand.vmem [shape: bf16[1024,256], index: 6, kind: input, shape index: {}]   ;;  %s2600_s7 = inlined_call_operand.vmem [shape: bf16[2,16,256], index: 7, kind: output, shape index: {0}]   ;;  %s2601_s8 = inlined_call_operand.vmem [shape: f32[2,2,256], index: 8, kind: output, shape index: {1}]  }
   0x1   :  { %s2118_s29 = smov 0  }
   0x2 LB: > { %s2127_s30 = sadd.s32 4294967295, %s2066_s29   ;;  %s2129_s9 = sadd.s32 1, %s2066_s29   ;;  %s2066_s29 = sphi %s2118_s29, %s2604_s29   ;;  %s2062_s28 = sphi %s2116_s28, %s2603_s28   ;;  %s2058_s27 = sphi %s2114_s27, %s2602_s27  }
   0x3   : > { %s49_s10 = ssub.s32 %s2066_s29, %s2129_s9  ;;  %s52_s11 = sadd.s32 1, %s2062_s28 }
   0x4   : > { %p50_p0 = scmp.eq.s32.totalorder %s49_s10, 0  ;;  %p59_p1 = scmp.ne.s32.totalorder %s2062_s28, %s2058_s27 }
   0x5   : > { %p60_p2 = scmp.eq.s32.totalorder %s2066_s29, 0  ;;  %p1651_p4 = scmp.ge.s32.totalorder %s2066_s29, 2 }
   0x6   : > { %s2136_s12 = scalar_select %p50_p0, %s2062_s28, %s52_s11  }
   0x7   : > { %p61_p3 = por %p60_p2, %p59_p1  ;;  %257 = sbr.rel (%p1651_p4) target bundleno = 17 (0x11), region = 36 }
   0xc   : > { %268 = sbr.rel (!%p61_p3) target bundleno = 17 (0x11), region = 44  ;;  %s270_s13 = sand.u32 (%p61_p3), 1, %s2062_s28  }
   0xd   : > { %s1809_s14 = sshll.u32 (%p61_p3), %s2066_s29, 4  ;;  %s1652_s15 = sshll.u32 (%p61_p3), %s270_s13, 3 }
   0xe   : > { %s1583_s18 = scalar_lea.vmem (%p61_p3), %s2594_s1, %s1809_s14  ;;  %s272_s19 = scalar_lea.vmem (%p61_p3), [#allocation2], %s1652_s15 }
   0xf   : > { %v1655_v0 = vld [vmem:[%s1583_s18 + $0x4] sm:$0xf] (%p61_p3)  ;;  %v1656_v1 = vld [vmem:[%s1583_s18 + $0xc] sm:$0xf] (%p61_p3) }
  0x10   : > { %294 = vst [vmem:[%s272_s19] sm:$0xf] (%p61_p3), %v1655_v0  ;;  %296 = vst [vmem:[%s272_s19 + $0x4] sm:$0xf] (%p61_p3), %v1656_v1 }
  0x11 PF: > { %p1657_p5 = scmp.ge.s32.totalorder %s2066_s29, 1  ;;  %p323_p6 = scmp.lt.s32.totalorder %s2066_s29, 3 }
  0x13   : > { %p324_p7 = pnand %p1657_p5, %p323_p6 }
  0x14   : > { %p373_p8 = scmp.lt.s32.totalorder (!%p324_p7), %s2127_s30, 1  ;;  %s330_s26 = sand.u32 (!%p324_p7), 1, %s2058_s27  }
  0x15   : > { %327 = sbr.rel (%p324_p7) target bundleno = 400 (0x190), region = 85  ;;  %s1658_s18 = sshll.u32 (!%p324_p7), %s330_s26, 3 }
  0x16   : > { %s332_s19 = scalar_lea.vmem (!%p324_p7), [#allocation2], %s1658_s18  ;;  %s1466_s20 = ssub.s32 (!%p324_p7), 2, %s2127_s30 }
  0x17   : > { %p1467_p9 = scmp.gt.s32.totalorder (!%p324_p7), %s1466_s20, 0  ;;  %p1799_p10 = scmp.lt.s32.totalorder (!%p324_p7), %s1466_s20, 1 }
  0x1a   : > { %v1850_v2 = vld [vmem:[%s2599_s6 + $0x74] ss:$8 sps:$4 sm:$0xff]   ;;  %v1854_v4 = vld [vmem:[%s2599_s6 + $0x70] ss:$8 sps:$4 sm:$0xff]   ;;  %v1856_v6 = vld [vmem:[%s2599_s6 + $0x64] ss:$8 sps:$4 sm:$0xff]  }
  0x1b   : > { %v1852_v3 = vld [vmem:[%s2599_s6 + $0x174] ss:$8 sps:$4 sm:$0xff]   ;;  %1280 = vmatprep.subr.bf16.mxu0 %v1850_v2  ;;  %v1855_v5 = vld [vmem:[%s2599_s6 + $0x170] ss:$8 sps:$4 sm:$0xff]   ;;  %v1858_v7 = vld [vmem:[%s2599_s6 + $0x164] ss:$8 sps:$4 sm:$0xff]  }
  0x1c   : > { %1323 = vmatprep.subr.bf16.mxu1 %v1852_v3  ;;  %1281 = vmatpush1.bf16.msra.mxu0 %v1854_v4  ;;  %v1860_v8 = vld [vmem:[%s2599_s6 + $0x60] ss:$8 sps:$4 sm:$0xff]   ;;  %v1862_v10 = vld [vmem:[%s2599_s6 + $0x54] ss:$8 sps:$4 sm:$0xff]   ;;  %v1866_v12 = vld [vmem:[%s2599_s6 + $0x50] ss:$8 sps:$4 sm:$0xff]  }
  0x1d   : > { %1324 = vmatpush1.bf16.msra.mxu1 %v1855_v5  ;;  %1282 = vmatprep.subr.bf16.mxu0 %v1856_v6  ;;  %v1861_v9 = vld [vmem:[%s2599_s6 + $0x160] ss:$8 sps:$4 sm:$0xff]   ;;  %v1864_v11 = vld [vmem:[%s2599_s6 + $0x154] ss:$8 sps:$4 sm:$0xff]   ;;  %v1867_v13 = vld [vmem:[%s2599_s6 + $0x150] ss:$8 sps:$4 sm:$0xff]  }
  0x1e   : > { %1325 = vmatprep.subr.bf16.mxu1 %v1858_v7  ;;  %v1868_v14 = vld [vmem:[%s2599_s6 + $0x44] ss:$8 sps:$4 sm:$0xff]   ;;  %v1872_v16 = vld [vmem:[%s2599_s6 + $0x40] ss:$8 sps:$4 sm:$0xff]   ;;  %v1874_v18 = vld [vmem:[%s2599_s6 + $0x34] ss:$8 sps:$4 sm:$0xff]  }
  0x1f   : > { %v1870_v15 = vld [vmem:[%s2599_s6 + $0x144] ss:$8 sps:$4 sm:$0xff]   ;;  %v1873_v17 = vld [vmem:[%s2599_s6 + $0x140] ss:$8 sps:$4 sm:$0xff]   ;;  %v1876_v19 = vld [vmem:[%s2599_s6 + $0x134] ss:$8 sps:$4 sm:$0xff]  }
  0x20   : > { %1283 = vmatpush1.bf16.msra.mxu0 %v1860_v8  ;;  %v1878_v20 = vld [vmem:[%s2599_s6 + $0x30] ss:$8 sps:$4 sm:$0xff]   ;;  %v1880_v22 = vld [vmem:[%s2599_s6 + $0x24] ss:$8 sps:$4 sm:$0xff]   ;;  %v1884_v24 = vld [vmem:[%s2599_s6 + $0x20] ss:$8 sps:$4 sm:$0xff]  }
  0x21   : > { %1326 = vmatpush1.bf16.msra.mxu1 %v1861_v9  ;;  %1284 = vmatprep.subr.bf16.mxu0 %v1862_v10  ;;  %v1879_v21 = vld [vmem:[%s2599_s6 + $0x130] ss:$8 sps:$4 sm:$0xff]   ;;  %v1882_v23 = vld [vmem:[%s2599_s6 + $0x124] ss:$8 sps:$4 sm:$0xff]   ;;  %v1885_v25 = vld [vmem:[%s2599_s6 + $0x120] ss:$8 sps:$4 sm:$0xff]  }
  0x22   : > { %1327 = vmatprep.subr.bf16.mxu1 %v1864_v11  ;;  %v1886_v26 = vld [vmem:[%s2599_s6 + $0x14] ss:$8 sps:$4 sm:$0xff]   ;;  %v1890_v28 = vld [vmem:[%s2599_s6 + $0x10] ss:$8 sps:$4 sm:$0xff]   ;;  %v1892_v30 = vld [vmem:[%s2599_s6 + $0x4] ss:$8 sps:$4 sm:$0xff]  }
  0x23   : > { %v1888_v27 = vld [vmem:[%s2599_s6 + $0x114] ss:$8 sps:$4 sm:$0xff]   ;;  %v1891_v29 = vld [vmem:[%s2599_s6 + $0x110] ss:$8 sps:$4 sm:$0xff]   ;;  %v1894_v31 = vld [vmem:[%s2599_s6 + $0x104] ss:$8 sps:$4 sm:$0xff]  }
  0x24   : > { %1285 = vmatpush1.bf16.msra.mxu0 %v1866_v12  ;;  %v1896_v32 = vld [vmem:[%s2599_s6] ss:$8 sps:$4 sm:$0xff]   ;;  %v1898_v34 = vld [vmem:[%s2599_s6 + $0xf4] ss:$8 sps:$4 sm:$0xff]   ;;  %v1902_v36 = vld [vmem:[%s2599_s6 + $0xf0] ss:$8 sps:$4 sm:$0xff]  }
  0x25   : > { %1328 = vmatpush1.bf16.msra.mxu1 %v1867_v13  ;;  %1286 = vmatprep.subr.bf16.mxu0 %v1868_v14  ;;  %v1897_v33 = vld [vmem:[%s2599_s6 + $0x100] ss:$8 sps:$4 sm:$0xff]   ;;  %v1900_v35 = vld [vmem:[%s2599_s6 + $0x1f4] ss:$8 sps:$4 sm:$0xff]   ;;  %v1903_v37 = vld [vmem:[%s2599_s6 + $0x1f0] ss:$8 sps:$4 sm:$0xff]  }
  0x26   : > { %1329 = vmatprep.subr.bf16.mxu1 %v1870_v15  ;;  %v1904_v38 = vld [vmem:[%s2599_s6 + $0xe4] ss:$8 sps:$4 sm:$0xff]   ;;  %s2259_s11 = scalar_select %p373_p8, %s2127_s30, 1  ;;  %v1908_v40 = vld [vmem:[%s2599_s6 + $0xe0] ss:$8 sps:$4 sm:$0xff]   ;;  %vm575_vm0 = vcmask 1041408  }
  0x27   : > { %v1906_v39 = vld [vmem:[%s2599_s6 + $0x1e4] ss:$8 sps:$4 sm:$0xff]   ;;  %v1909_v41 = vld [vmem:[%s2599_s6 + $0x1e0] ss:$8 sps:$4 sm:$0xff]   ;;  %v1910_v42 = vld [vmem:[%s2599_s6 + $0xd4] ss:$8 sps:$4 sm:$0xff]  }
  0x28   : > { %1287 = vmatpush1.bf16.msra.mxu0 %v1872_v16  ;;  %v1912_v43 = vld [vmem:[%s2599_s6 + $0x1d4] ss:$8 sps:$4 sm:$0xff]   ;;  %s1810_s21 = sshll.u32 %s2259_s11, 3  ;;  %v1914_v44 = vld [vmem:[%s2599_s6 + $0xd0] ss:$8 sps:$4 sm:$0xff]   ;;  %v1818_v49 = vld [vmem:[%s332_s19] sm:$0xff]  }
  0x29   : > { %1330 = vmatpush1.bf16.msra.mxu1 %v1873_v17  ;;  %1288 = vmatprep.subr.bf16.mxu0 %v1874_v18  ;;  %v1915_v45 = vld [vmem:[%s2599_s6 + $0x1d0] ss:$8 sps:$4 sm:$0xff]   ;;  %v1916_v46 = vld [vmem:[%s2599_s6 + $0xc4] ss:$8 sps:$4 sm:$0xff]   ;;  %s377_s14 = scalar_lea.vmem %s2593_s0, %s1810_s21  ;;  %v1920_v48 = vld [vmem:[%s2599_s6 + $0xc0] ss:$8 sps:$4 sm:$0xff]   ;;  %v1819_v51 = vunpack.c.l.bf16 %v1818_v49  ;;  %v1820_v52 = vunpack.c.h.bf16 %v1818_v49 }
  0x2a   : > { %1331 = vmatprep.subr.bf16.mxu1 %v1876_v19  ;;  %v1918_v47 = vld [vmem:[%s2599_s6 + $0x1c4] ss:$8 sps:$4 sm:$0xff]   ;;  %v1921_v50 = vld [vmem:[%s2599_s6 + $0x1c0] ss:$8 sps:$4 sm:$0xff]   ;;  %v1922_v55 = vld [vmem:[%s2599_s6 + $0xb4] ss:$8 sps:$4 sm:$0xff]  }
  0x2b   : > { %v1822_v53 = vld [vmem:[%s377_s14] sm:$0xff]   ;;  %v1924_v56 = vld [vmem:[%s2599_s6 + $0x1b4] ss:$8 sps:$4 sm:$0xff]   ;;  %v1926_v1 = vld [vmem:[%s2599_s6 + $0xb0] ss:$8 sps:$4 sm:$0xff]   ;;  %vm596_vm3 = vcmask 1046528  }
  0x2c   : > { %1289 = vmatpush1.bf16.msra.mxu0 %v1878_v20  ;;  %v1665_v54 = vld [vmem:[%s2595_s2] ss:$0 sm:$0xff]  ;;  %v1823_v57 = vunpack.c.l.bf16 %v1822_v53  ;;  %v1824_v58 = vunpack.c.h.bf16 %v1822_v53  ;;  %v1927_v2 = vld [vmem:[%s2599_s6 + $0x1b0] ss:$8 sps:$4 sm:$0xff]   ;;  %v1928_v3 = vld [vmem:[%s2599_s6 + $0xa4] ss:$8 sps:$4 sm:$0xff]  }
  0x2d   : > { %1332 = vmatpush1.bf16.msra.mxu1 %v1879_v21  ;;  %1290 = vmatprep.subr.bf16.mxu0 %v1880_v22  ;;  %v1667_v59 = vld [vmem:[%s2597_s4] ss:$0 sm:$0xff]  ;;  %v1930_v4 = vld [vmem:[%s2599_s6 + $0x1a4] ss:$8 sps:$4 sm:$0xff]   ;;  %v1934_v12 = vld [vmem:[%s2599_s6 + $0x94] ss:$8 sps:$4 sm:$0xff]  }
  0x2e   : > { %1333 = vmatprep.subr.bf16.mxu1 %v1882_v23  ;;  %v1666_v60 = vld [vmem:[%s2596_s3] ss:$0 sm:$0xff]  ;;  %v402_v61 = vmul.f32 %v1823_v57, %v1665_v54  ;;  %v403_v62 = vmul.f32 %v1824_v58, %v1665_v54  ;;  %v422_v63 = vmul.f32 %v1819_v51, %v1667_v59  ;;  %v423_v0 = vmul.f32 %v1820_v52, %v1667_v59  ;;  %v1936_v15 = vld [vmem:[%s2599_s6 + $0x194] ss:$8 sps:$4 sm:$0xff]   ;;  %v1938_v18 = vld [vmem:[%s2599_s6 + $0x90] ss:$8 sps:$4 sm:$0xff]  }
  0x2f   : > { %v1668_v7 = vld [vmem:[%s2598_s5] ss:$0 sm:$0xff]  ;;  %v1939_v19 = vld [vmem:[%s2599_s6 + $0x190] ss:$8 sps:$4 sm:$0xff]   ;;  %v1940_v20 = vld [vmem:[%s2599_s6 + $0x84] ss:$8 sps:$4 sm:$0xff]  }
  0x30   : > { %1291 = vmatpush1.bf16.msra.mxu0 %v1884_v24  ;;  %v411_v5 = vadd.f32 %v1666_v60, %v402_v61  ;;  %v412_v6 = vadd.f32 %v1666_v60, %v403_v62  ;;  %v1932_v10 = vld [vmem:[%s2599_s6 + $0xa0] ss:$8 sps:$4 sm:$0xff]   ;;  %v1942_v22 = vld [vmem:[%s2599_s6 + $0x184] ss:$8 sps:$4 sm:$0xff]   ;;  %vm576_vm1 = vsmask.f32 1280 }
  0x31   : > { %1334 = vmatpush1.bf16.msra.mxu1 %v1885_v25  ;;  %1292 = vmatprep.subr.bf16.mxu0 %v1886_v26  ;;  %v1933_v11 = vld [vmem:[%s2599_s6 + $0x1a0] ss:$8 sps:$4 sm:$0xff]   ;;  %vm577_vm2 = vmand %vm575_vm0, %vm576_vm1  ;;  %vm580_vm4 = vsmask.f32 7424  ;;  %vm601_vm5 = vsmask.f32 6400 }
  0x32   : > { %1335 = vmatprep.subr.bf16.mxu1 %v1888_v27  ;;  %v424_v8 = vadd.f32 %v422_v63, %v411_v5  ;;  %v425_v9 = vadd.f32 %v423_v0, %v412_v6  ;;  %v1944_v25 = vld [vmem:[%s2599_s6 + $0x80] ss:$8 sps:$4 sm:$0xff]   ;;  %vm612_vm6 = vcmask 1045504   ;;  %v1957_v59 = vld [vmem:[%s2599_s6 + $0x364] ss:$8 sps:$4 sm:$0xff]   ;;  %vm626_vm9 = vcmask 1044480  }
  0x33   : > { %v1945_v26 = vld [vmem:[%s2599_s6 + $0x180] ss:$8 sps:$4 sm:$0xff]   ;;  %vm617_vm7 = vsmask.f32 5376  ;;  %vm631_vm8 = vsmask.f32 4352 }
  0x34   : > { %1293 = vmatpush1.bf16.msra.mxu0 %v1890_v28  ;;  %v433_v13 = vadd.f32 %v1668_v7, %v424_v8  ;;  %v434_v14 = vadd.f32 %v1668_v7, %v425_v9  ;;  %v1960_v5 = vld [vmem:[%s2599_s6 + $0x254] ss:$8 sps:$4 sm:$0xff]   ;;  %s1468_s22 = scalar_select %p1467_p9, %s1466_s20, 0  ;;  %vm1525_vm11 = vcmask 1040384  }
  0x35   : > { %1336 = vmatpush1.bf16.msra.mxu1 %v1891_v29  ;;  %1294 = vmatprep.subr.bf16.mxu0 %v1892_v30  ;;  %v1948_v29 = vld [vmem:[%s2599_s6 + $0x274] ss:$8 sps:$4 sm:$0xff]   ;;  %s1811_s23 = sshll.u32 %s2259_s11, 4  ;;  %s1812_s18 = sshll.u32 %s2259_s11, 2 }
  0x36   : > { %1337 = vmatprep.subr.bf16.mxu1 %v1894_v31  ;;  %v435_v16 = vmax.f32 %v433_v13, 0.0  ;;  %v436_v17 = vmax.f32 %v434_v14, 0.0  ;;  %v1951_v30 = vld [vmem:[%s2599_s6 + $0x374] ss:$8 sps:$4 sm:$0xff]   ;;  %v1958_v14 = vld [vmem:[%s2599_s6 + $0x250] ss:$8 sps:$4 sm:$0xff]   ;;  %s382_s10 = scalar_lea.vmem %s2600_s7, %s1811_s23  ;;  %s387_s13 = scalar_lea.vmem %s2601_s8, %s1812_s18 }
  0x37   : > { %v1963_v9 = vld [vmem:[%s2599_s6 + $0x354] ss:$8 sps:$4 sm:$0xff]   ;;  %s2606_s22 = smov (!%p1799_p10, %s1468_s22), 1 }
  0x38   : > { %1295 = vmatpush1.bf16.msra.mxu0 %v1896_v32  ;;  %v437_v21 = vpack.c.bf16 %v436_v17, %v435_v16  ;;  %v1961_v16 = vld [vmem:[%s2599_s6 + $0x350] ss:$8 sps:$4 sm:$0xff]   ;;  %v1966_v17 = vld [vmem:[%s2599_s6 + $0x244] ss:$8 sps:$4 sm:$0xff]   ;;  %s1805_s21 = sshll.u32 %s2606_s22, 4 }
  0x39   : > { %1338 = vmatpush1.bf16.msra.mxu1 %v1897_v33  ;;  %1296 = vmatprep.subr.bf16.mxu0 %v1898_v34  ;;  %s1476_s30 = scvt.s32.f32 %s1805_s21 }
  0x3a   : > { %1339 = vmatprep.subr.bf16.mxu1 %v1900_v35  ;;  %v567_v23 = vshrl.u32 %v437_v21, 16  ;;  %v570_v24 = vshll.u32 %v437_v21, 16  ;;  %v1967_v21 = vld [vmem:[%s2599_s6 + $0x340] ss:$8 sps:$4 sm:$0xff]  }
  0x3c   : > { %1297 = vmatpush2.bf16.msra.mxu0 %v1902_v36  ;;  %v569_v27 = vrot.slane %v567_v23, 6  ;;  %v572_v28 = vrot.slane %v570_v24, 7  ;;  %v1975_v23 = vld [vmem:[%s2599_s6 + $0x334] ss:$8 sps:$4 sm:$0xff]   ;;  %v1970_v24 = vld [vmem:[%s2599_s6 + $0x230] ss:$8 sps:$4 sm:$0xff]  }
  0x3d   : > { %1340 = vmatpush2.bf16.msra.mxu1 %v1903_v37  ;;  %1298 = vmatprep.subr.bf16.mxu0 %v1904_v38 }
  0x3e   : > { %1341 = vmatprep.subr.bf16.mxu1 %v1906_v39  ;;  %v573_v31 = vor.u32 %v572_v28, %v569_v27  ;;  %v1981_v27 = vld [vmem:[%s2599_s6 + $0x324] ss:$8 sps:$4 sm:$0xff]   ;;  %v1976_v28 = vld [vmem:[%s2599_s6 + $0x220] ss:$8 sps:$4 sm:$0xff]  }
  0x40   : > { %1299 = vmatpush2.bf16.msra.mxu0 %v1908_v40  ;;  %v2361_v32 = vsel %vm577_vm2, 0, %v573_v31  ;;  %v2363_v33 = vsel %vm577_vm2, %v573_v31, 0  ;;  %v1987_v31 = vld [vmem:[%s2599_s6 + $0x314] ss:$8 sps:$4 sm:$0xff]  }
  0x41   : > { %1342 = vmatpush2.bf16.msra.mxu1 %v1909_v41  ;;  %1300 = vmatprep.subr.bf16.mxu0 %v1910_v42  ;;  %v582_v34 = vshrl.u32 %v2361_v32, 16  ;;  %v584_v35 = vshll.u32 %v2361_v32, 16  ;;  %v589_v36 = vshll.u32 %v2363_v33, 16  ;;  %v605_v37 = vshrl.u32 %v2363_v33, 16 }
  0x42   : > { %1343 = vmatprep.subr.bf16.mxu1 %v1912_v43  ;;  %v597_v38 = vrot.slane %v2361_v32, 1  ;;  %v598_v39 = vrot.slane %v2363_v33, 1  ;;  %v614_v8 = vrot.slane %v2363_v33, 2  ;;  %v628_v13 = vrot.slane %v2363_v33, 3  ;;  %v1985_v33 = vld [vmem:[%s2599_s6 + $0x310] ss:$8 sps:$4 sm:$0xff]  }
  0x43   : > { %v586_v40 = vrot.slane %v584_v35, 1  ;;  %v591_v41 = vrot.slane %v589_v36, 1  ;;  %v602_v42 = vrot.slane %v582_v34, 1  ;;  %v603_v43 = vrot.slane %v584_v35, 2 }
  0x44   : > { %1301 = vmatpush2.bf16.msra.mxu0 %v1914_v44  ;;  %v607_v44 = vrot.slane %v605_v37, 1  ;;  %v619_v51 = vrot.slane %v584_v35, 3  ;;  %v621_v52 = vrot.slane %v605_v37, 2  ;;  %v599_v54 = vsel %vm596_vm3, %v597_v38, %v598_v39  ;;  %v1996_v38 = vld [vmem:[%s2599_s6 + $0x2f4] ss:$8 sps:$4 sm:$0xff]  }
  0x45   : > { %1344 = vmatpush2.bf16.msra.mxu1 %v1915_v45  ;;  %1302 = vmatprep.subr.bf16.mxu0 %v1916_v46  ;;  %v608_v45 = vrot.slane %v589_v36, 2  ;;  %v587_v46 = vor.u32 %v586_v40, %v582_v34  ;;  %v622_v57 = vrot.slane %v589_v36, 3  ;;  %v632_v61 = vrot.slane %v582_v34, 3  ;;  %v1999_v39 = vld [vmem:[%s2599_s6 + $0x3f4] ss:$8 sps:$4 sm:$0xff]  }
  0x46   : > { %1345 = vmatprep.subr.bf16.mxu1 %v1918_v47  ;;  %v604_v47 = vor.u32 %v603_v43, %v602_v42  ;;  %v633_v63 = vrot.slane %v584_v35, 4  ;;  %v635_v0 = vrot.slane %v605_v37, 3  ;;  %v1993_v35 = vld [vmem:[%s2599_s6 + $0x304] ss:$8 sps:$4 sm:$0xff]   ;;  %v1991_v37 = vld [vmem:[%s2599_s6 + $0x300] ss:$8 sps:$4 sm:$0xff]  }
  0x47   : > { %v609_v49 = vor.u32 %v608_v45, %v607_v44  ;;  %v592_v53 = vsel %vm580_vm4, %v587_v46, %v591_v41  ;;  %v623_v62 = vor.u32 %v622_v57, %v621_v52  ;;  %v1994_v40 = vld [vmem:[%s2599_s6 + $0x2f0] ss:$8 sps:$4 sm:$0xff]   ;;  %v2002_v42 = vld [vmem:[%s2599_s6 + $0x2e4] ss:$8 sps:$4 sm:$0xff]   ;;  %v2000_v44 = vld [vmem:[%s2599_s6 + $0x2e0] ss:$8 sps:$4 sm:$0xff]  }
  0x48   : > { %1303 = vmatpush2.bf16.msra.mxu0 %v1920_v48  ;;  %v618_v48 = vrot.slane %v582_v34, 2  ;;  %1312 = vmatprep.mubr.bf16.mxu0 %v592_v53  ;;  %v634_v7 = vor.u32 %v633_v63, %v632_v61  ;;  %v1990_v34 = vld [vmem:[%s2599_s6 + $0x204] ss:$8 sps:$4 sm:$0xff]   ;;  %v1997_v41 = vld [vmem:[%s2599_s6 + $0x3f0] ss:$8 sps:$4 sm:$0xff]  }
  0x49   : > { %1346 = vmatpush2.bf16.msra.mxu1 %v1921_v50  ;;  %1304 = vmatprep.subr.bf16.mxu0 %v1922_v55  ;;  %v1946_v50 = vld [vmem:[%s2599_s6 + $0x270] ss:$8 sps:$4 sm:$0xff]   ;;  %v610_v58 = vsel %vm601_vm5, %v604_v47, %v609_v49  ;;  %v2005_v43 = vld [vmem:[%s2599_s6 + $0x3e4] ss:$8 sps:$4 sm:$0xff]   ;;  %v2003_v45 = vld [vmem:[%s2599_s6 + $0x3e0] ss:$8 sps:$4 sm:$0xff]  }
  0x4a   : > { %1347 = vmatprep.subr.bf16.mxu1 %v1924_v56  ;;  %v1949_v55 = vld [vmem:[%s2599_s6 + $0x370] ss:$8 sps:$4 sm:$0xff]   ;;  %v1954_v56 = vld [vmem:[%s2599_s6 + $0x264] ss:$8 sps:$4 sm:$0xff]   ;;  %v620_v60 = vor.u32 %v619_v51, %v618_v48  ;;  %1355 = vmatprep.mubr.bf16.mxu1 %v610_v58  ;;  %v2008_v46 = vld [vmem:[%s2599_s6 + $0x2d4] ss:$8 sps:$4 sm:$0xff]  }
  0x4b   : > { %v2011_v47 = vld [vmem:[%s2599_s6 + $0x3d4] ss:$8 sps:$4 sm:$0xff]   ;;  %v2006_v48 = vld [vmem:[%s2599_s6 + $0x2d0] ss:$8 sps:$4 sm:$0xff]   ;;  %v2017_v51 = vld [vmem:[%s2599_s6 + $0x3c4] ss:$8 sps:$4 sm:$0xff]  }
  0x4c   : > { %1305 = vmatpush2.bf16.msra.mxu0 %v1926_v1  ;;  %v1952_v1 = vld [vmem:[%s2599_s6 + $0x260] ss:$8 sps:$4 sm:$0xff]   ;;  %v624_v6 = vsel %vm617_vm7, %v620_v60, %v623_v62  ;;  %v2009_v49 = vld [vmem:[%s2599_s6 + $0x3d0] ss:$8 sps:$4 sm:$0xff]   ;;  %v2026_v58 = vld [vmem:[%s2599_s6 + $0x2a4] ss:$8 sps:$4 sm:$0xff]  }
  0x4d   : > { %1348 = vmatpush2.bf16.msra.mxu1 %v1927_v2  ;;  %1306 = vmatprep.subr.bf16.mxu0 %v1928_v3  ;;  %v636_v2 = vrot.slane %v589_v36, 4  ;;  %v613_v3 = vrot.slane %v2361_v32, 2  ;;  %v1988_v36 = vld [vmem:[%s2599_s6 + $0x200] ss:$8 sps:$4 sm:$0xff]   ;;  %v2021_v57 = vld [vmem:[%s2599_s6 + $0x3b0] ss:$8 sps:$4 sm:$0xff]  }
  0x4e   : > { %1349 = vmatprep.subr.bf16.mxu1 %v1930_v4  ;;  %v1955_v4 = vld [vmem:[%s2599_s6 + $0x360] ss:$8 sps:$4 sm:$0xff]   ;;  %v2032_v62 = vld [vmem:[%s2599_s6 + $0x294] ss:$8 sps:$4 sm:$0xff]  }
  0x4f   : > { %v2012_v52 = vld [vmem:[%s2599_s6 + $0x2c0] ss:$8 sps:$4 sm:$0xff]   ;;  %v2035_v63 = vld [vmem:[%s2599_s6 + $0x394] ss:$8 sps:$4 sm:$0xff]  }
  0x50   : > { %1307 = vmatpush2.bf16.msra.mxu0 %v1932_v10  ;;  %v637_v10 = vor.u32 %v636_v2, %v635_v0  ;;  %v2015_v53 = vld [vmem:[%s2599_s6 + $0x3c0] ss:$8 sps:$4 sm:$0xff]   ;;  %v2030_v0 = vld [vmem:[%s2599_s6 + $0x290] ss:$8 sps:$4 sm:$0xff]   ;;  %v2038_v2 = vld [vmem:[%s2599_s6 + $0x284] ss:$8 sps:$4 sm:$0xff]  }
  0x51   : > { %1350 = vmatpush2.bf16.msra.mxu1 %v1933_v11  ;;  %1308 = vmatprep.subr.bf16.mxu0 %v1934_v12  ;;  %v627_v11 = vrot.slane %v2361_v32, 3  ;;  %v2404_v12 = vsel %vm612_vm6, %v613_v3, %v614_v8  ;;  %v2024_v60 = vld [vmem:[%s2599_s6 + $0x2a0] ss:$8 sps:$4 sm:$0xff]   ;;  %v2041_v3 = vld [vmem:[%s2599_s6 + $0x384] ss:$8 sps:$4 sm:$0xff]  }
  0x52   : > { %1351 = vmatprep.subr.bf16.mxu1 %v1936_v15  ;;  %v638_v15 = vsel %vm631_vm8, %v634_v7, %v637_v10  ;;  %v2027_v61 = vld [vmem:[%s2599_s6 + $0x3a0] ss:$8 sps:$4 sm:$0xff]  }
  0x54   : > { %1309 = vmatpush2.bf16.msra.mxu0 %v1938_v18  ;;  %v2417_v18 = vsel %vm626_vm9, %v627_v11, %v628_v13 }
  0x55   : > { %1352 = vmatpush2.bf16.msra.mxu1 %v1939_v19  ;;  %1310 = vmatprep.subr.bf16.mxu0 %v1940_v20  ;;  %v1969_v19 = vld [vmem:[%s2599_s6 + $0x344] ss:$8 sps:$4 sm:$0xff]   ;;  %v1964_v20 = vld [vmem:[%s2599_s6 + $0x240] ss:$8 sps:$4 sm:$0xff]  }
  0x56   : > { %1353 = vmatprep.subr.bf16.mxu1 %v1942_v22  ;;  %v1972_v22 = vld [vmem:[%s2599_s6 + $0x234] ss:$8 sps:$4 sm:$0xff]  }
  0x58   : > { %1311 = vmatpush2.bf16.msra.mxu0 %v1944_v25  ;;  %v1973_v25 = vld [vmem:[%s2599_s6 + $0x330] ss:$8 sps:$4 sm:$0xff]  }
  0x59   : > { %1354 = vmatpush2.bf16.msra.mxu1 %v1945_v26  ;;  %1366 = vmatprep.subr.bf16.mxu0 %v1948_v29  ;;  %v1978_v26 = vld [vmem:[%s2599_s6 + $0x224] ss:$8 sps:$4 sm:$0xff]   ;;  %v1979_v29 = vld [vmem:[%s2599_s6 + $0x320] ss:$8 sps:$4 sm:$0xff]  }
  0x5a   : > { %1409 = vmatprep.subr.bf16.mxu1 %v1951_v30  ;;  %v1984_v30 = vld [vmem:[%s2599_s6 + $0x214] ss:$8 sps:$4 sm:$0xff]  }
  0x5b   : > { %1313 = vmatmul.mubr.bf16.vlgmr.msra.gmra.mxu0 %v2361_v32  ;;  %v1982_v32 = vld [vmem:[%s2599_s6 + $0x210] ss:$8 sps:$4 sm:$0xff]  }
  0x5c   : > { %1356 = vmatmul.mubr.bf16.vlgmr.msra.gmra.mxu1 %v599_v54  ;;  %1367 = vmatpush1.bf16.msra.mxu0 %v1946_v50  ;;  %v2014_v50 = vld [vmem:[%s2599_s6 + $0x2c4] ss:$8 sps:$4 sm:$0xff]   ;;  %v2020_v54 = vld [vmem:[%s2599_s6 + $0x2b4] ss:$8 sps:$4 sm:$0xff]  }
  0x5d   : > { %1410 = vmatpush1.bf16.msra.mxu1 %v1949_v55  ;;  %1368 = vmatprep.subr.bf16.mxu0 %v1954_v56  ;;  %v2023_v55 = vld [vmem:[%s2599_s6 + $0x3b4] ss:$8 sps:$4 sm:$0xff]   ;;  %v2018_v56 = vld [vmem:[%s2599_s6 + $0x2b0] ss:$8 sps:$4 sm:$0xff]  }
  0x5e   : > { %1411 = vmatprep.subr.bf16.mxu1 %v1957_v59  ;;  %1398 = vmatprep.mubr.bf16.mxu0 %v624_v6  ;;  %v2029_v59 = vld [vmem:[%s2599_s6 + $0x3a4] ss:$8 sps:$4 sm:$0xff]  }
  0x5f   : > { %1441 = vmatprep.mubr.bf16.mxu1 %v638_v15 }
  0x60   : > { %1369 = vmatpush1.bf16.msra.mxu0 %v1952_v1  ;;  %v2033_v1 = vld [vmem:[%s2599_s6 + $0x390] ss:$8 sps:$4 sm:$0xff]  }
  0x61   : > { %1412 = vmatpush1.bf16.msra.mxu1 %v1955_v4  ;;  %1370 = vmatprep.subr.bf16.mxu0 %v1960_v5  ;;  %v2036_v4 = vld [vmem:[%s2599_s6 + $0x280] ss:$8 sps:$4 sm:$0xff]  }
  0x62   : > { %1413 = vmatprep.subr.bf16.mxu1 %v1963_v9  ;;  %v2039_v5 = vld [vmem:[%s2599_s6 + $0x380] ss:$8 sps:$4 sm:$0xff]  }
  0x64   : > { %1371 = vmatpush1.bf16.msra.mxu0 %v1958_v14 }
  0x65   : > { %1414 = vmatpush1.bf16.msra.mxu1 %v1961_v16  ;;  %1372 = vmatprep.subr.bf16.mxu0 %v1966_v17 }
  0x66   : > { %1415 = vmatprep.subr.bf16.mxu1 %v1969_v19 }
  0x68   : > { %1373 = vmatpush1.bf16.msra.mxu0 %v1964_v20 }
  0x69   : > { %1416 = vmatpush1.bf16.msra.mxu1 %v1967_v21  ;;  %1374 = vmatprep.subr.bf16.mxu0 %v1972_v22 }
  0x6a   : > { %1417 = vmatprep.subr.bf16.mxu1 %v1975_v23 }
  0x6c   : > { %1375 = vmatpush1.bf16.msra.mxu0 %v1970_v24 }
  0x6d   : > { %1418 = vmatpush1.bf16.msra.mxu1 %v1973_v25  ;;  %1376 = vmatprep.subr.bf16.mxu0 %v1978_v26 }
  0x6e   : > { %1419 = vmatprep.subr.bf16.mxu1 %v1981_v27 }
  0x70   : > { %1377 = vmatpush1.bf16.msra.mxu0 %v1976_v28 }
  0x71   : > { %1420 = vmatpush1.bf16.msra.mxu1 %v1979_v29  ;;  %1378 = vmatprep.subr.bf16.mxu0 %v1984_v30  ;;  %v2068_v30 = vmov 0.0  }
  0x72   : > { %1421 = vmatprep.subr.bf16.mxu1 %v1987_v31 }
  0x74   : > { %1379 = vmatpush1.bf16.msra.mxu0 %v1982_v32  ;;  %v1495_v32 = vstv %s1476_s30 }
  0x75   : > { %1422 = vmatpush1.bf16.msra.mxu1 %v1985_v33  ;;  %1380 = vmatprep.subr.bf16.mxu0 %v1990_v34  ;;  %2042 = vrcp.f32 %v1495_v32 }
  0x76   : > { %1423 = vmatprep.subr.bf16.mxu1 %v1993_v35 }
  0x78   : > { %1381 = vmatpush1.bf16.msra.mxu0 %v1988_v36 }
  0x79   : > { %1424 = vmatpush1.bf16.msra.mxu1 %v1991_v37  ;;  %1382 = vmatprep.subr.bf16.mxu0 %v1996_v38 }
  0x7a   : > { %1425 = vmatprep.subr.bf16.mxu1 %v1999_v39 }
  0x7c   : > { %1383 = vmatpush2.bf16.msra.mxu0 %v1994_v40 }
  0x7d   : > { %1426 = vmatpush2.bf16.msra.mxu1 %v1997_v41  ;;  %1384 = vmatprep.subr.bf16.mxu0 %v2002_v42 }
  0x7e   : > { %1427 = vmatprep.subr.bf16.mxu1 %v2005_v43 }
  0x80   : > { %1385 = vmatpush2.bf16.msra.mxu0 %v2000_v44 }
  0x81   : > { %1428 = vmatpush2.bf16.msra.mxu1 %v2003_v45  ;;  %1386 = vmatprep.subr.bf16.mxu0 %v2008_v46 }
  0x82   : > { %1429 = vmatprep.subr.bf16.mxu1 %v2011_v47 }
  0x84   : > { %1387 = vmatpush2.bf16.msra.mxu0 %v2006_v48 }
  0x85   : > { %1430 = vmatpush2.bf16.msra.mxu1 %v2009_v49  ;;  %1388 = vmatprep.subr.bf16.mxu0 %v2014_v50 }
  0x86   : > { %1431 = vmatprep.subr.bf16.mxu1 %v2017_v51 }
  0x88   : > { %1389 = vmatpush2.bf16.msra.mxu0 %v2012_v52 }
  0x89   : > { %1432 = vmatpush2.bf16.msra.mxu1 %v2015_v53  ;;  %1390 = vmatprep.subr.bf16.mxu0 %v2020_v54 }
  0x8a   : > { %1433 = vmatprep.subr.bf16.mxu1 %v2023_v55  ;;  %v2043_v55 = vpop.eup %2042 }
  0x8c   : > { %1391 = vmatpush2.bf16.msra.mxu0 %v2018_v56 }
  0x8d   : > { %1434 = vmatpush2.bf16.msra.mxu1 %v2021_v57  ;;  %1392 = vmatprep.subr.bf16.mxu0 %v2026_v58 }
  0x8e   : > { %1435 = vmatprep.subr.bf16.mxu1 %v2029_v59 }
  0x90   : > { %1393 = vmatpush2.bf16.msra.mxu0 %v2024_v60 }
  0x91   : > { %1436 = vmatpush2.bf16.msra.mxu1 %v2027_v61  ;;  %1394 = vmatprep.subr.bf16.mxu0 %v2032_v62 }
  0x92   : > { %1437 = vmatprep.subr.bf16.mxu1 %v2035_v63 }
  0x94   : > { %1395 = vmatpush2.bf16.msra.mxu0 %v2030_v0 }
  0x95   : > { %1438 = vmatpush2.bf16.msra.mxu1 %v2033_v1  ;;  %1396 = vmatprep.subr.bf16.mxu0 %v2038_v2 }
  0x96   : > { %1439 = vmatprep.subr.bf16.mxu1 %v2041_v3 }
  0x98   : > { %1397 = vmatpush2.bf16.msra.mxu0 %v2036_v4 }
  0x99   : > { %1440 = vmatpush2.bf16.msra.mxu1 %v2039_v5 }
  0x9b   : > { %1399 = vmatmul.mubr.bf16.vlgmr.msra.gmra.mxu0 %v2404_v12  ;;  %v1471_v12 = vstv %s2606_s22 }
  0x9c   : > { %1442 = vmatmul.mubr.bf16.vlgmr.msra.gmra.mxu1 %v2417_v18  ;;  %vm1472_vm10 = vcmp.gt.s32.totalorder %v1471_v12, 0 }
  0x9d   : > { %v1804_v31 = vsel %vm1472_vm10, 1.0, %v2068_v30 }
 0x11b   : > { %v1314_v6 = vpop.f32.mrf.mxu0 }
 0x11c   : > { %v1357_v7 = vpop.f32.mrf.mxu1 }
 0x11d   : > { %v1316_v8 = vpop.f32.mrf.mxu0  ;;  %v1358_v14 = vadd.f32 %v1357_v7, %v1314_v6 }
 0x11e   : > { %v1359_v9 = vpop.f32.mrf.mxu1 }
 0x11f   : > { %v1318_v10 = vpop.f32.mrf.mxu0  ;;  %v1360_v17 = vadd.f32 %v1359_v9, %v1316_v8 }
 0x120   : > { %v1361_v11 = vpop.f32.mrf.mxu1 }
 0x121   : > { %v1320_v13 = vpop.f32.mrf.mxu0  ;;  %v1362_v21 = vadd.f32 %v1361_v11, %v1318_v10 }
 0x122   : > { %v1363_v15 = vpop.f32.mrf.mxu1 }
 0x123   : > { %v1364_v25 = vadd.f32 %v1363_v15, %v1320_v13 }
 0x15b   : > { %v1400_v16 = vpop.f32.mrf.mxu0 }
 0x15c   : > { %v1401_v18 = vadd.f32 %v1400_v16, %v1358_v14  ;;  %v1443_v19 = vpop.f32.mrf.mxu1 }
 0x15d   : > { %v1402_v20 = vpop.f32.mrf.mxu0 }
 0x15e   : > { %v1403_v22 = vadd.f32 %v1402_v20, %v1360_v17  ;;  %v1445_v23 = vpop.f32.mrf.mxu1  ;;  %v1444_v26 = vadd.f32 %v1443_v19, %v1401_v18 }
 0x15f   : > { %v1404_v24 = vpop.f32.mrf.mxu0 }
 0x160   : > { %v1446_v27 = vadd.f32 %v1445_v23, %v1403_v22  ;;  %v1405_v28 = vadd.f32 %v1404_v24, %v1362_v21  ;;  %v1447_v29 = vpop.f32.mrf.mxu1  ;;  %v1477_v38 = vmul.f32 %v1804_v31, %v1444_v26 }
 0x161   : > { %v1406_v33 = vpop.f32.mrf.mxu0 }
 0x162   : > { %v1813_v34 = vpack.c.bf16 %v1446_v27, %v1444_v26  ;;  %v1448_v35 = vadd.f32 %v1447_v29, %v1405_v28  ;;  %v1407_v36 = vadd.f32 %v1406_v33, %v1364_v25  ;;  %v1449_v37 = vpop.f32.mrf.mxu1  ;;  %v1478_v41 = vmul.f32 %v1804_v31, %v1446_v27 }
 0x164   : > { %1464 = vst [vmem:[%s382_s10] sm:$0xff] %v1813_v34  ;;  %v1479_v39 = vmul.f32 %v1804_v31, %v1448_v35  ;;  %v1450_v40 = vadd.f32 %v1449_v37, %v1407_v36 }
 0x166   : > { %v1481_v42 = vadd.f32 %v1479_v39, %v1477_v38  ;;  %v1814_v43 = vpack.c.bf16 %v1450_v40, %v1448_v35  ;;  %v1480_v44 = vmul.f32 %v1804_v31, %v1450_v40 }
 0x168   : > { %v1482_v45 = vrot.slane %v1481_v42, 4  ;;  %1465 = vst [vmem:[%s382_s10 + $0x8] sm:$0xff] %v1814_v43  ;;  %v1488_v46 = vadd.f32 %v1480_v44, %v1478_v41 }
 0x16a   : > { %v1483_v47 = vadd.f32 %v1482_v45, %v1481_v42  ;;  %v1489_v48 = vrot.slane %v1488_v46, 4 }
 0x16c   : > { %v1484_v49 = vrot.slane %v1483_v47, 2  ;;  %v1490_v50 = vadd.f32 %v1489_v48, %v1488_v46 }
 0x16e   : > { %v1485_v51 = vadd.f32 %v1484_v49, %v1483_v47  ;;  %v1491_v52 = vrot.slane %v1490_v50, 2 }
 0x170   : > { %v1486_v53 = vrot.slane %v1485_v51, 1  ;;  %v1492_v54 = vadd.f32 %v1491_v52, %v1490_v50 }
 0x172   : > { %v1487_v56 = vadd.f32 %v1486_v53, %v1485_v51  ;;  %v1493_v57 = vrot.slane %v1492_v54, 1 }
 0x174   : > { %v1497_v58 = vmul.f32 %v2043_v55, %v1487_v56  ;;  %v1494_v59 = vadd.f32 %v1493_v57, %v1492_v54 }
 0x176   : > { %v1499_v60 = vsub.f32 %v1444_v26, %v1497_v58  ;;  %v1501_v61 = vsub.f32 %v1448_v35, %v1497_v58  ;;  %v1498_v62 = vmul.f32 %v2043_v55, %v1494_v59 }
 0x178   : > { %v1503_v63 = vmul.f32 %v1804_v31, %v1499_v60  ;;  %v1505_v0 = vmul.f32 %v1804_v31, %v1501_v61  ;;  %v1500_v1 = vsub.f32 %v1446_v27, %v1498_v62  ;;  %v1502_v2 = vsub.f32 %v1450_v40, %v1498_v62 }
 0x17a   : > { %v1507_v3 = vmul.f32 %v1503_v63, %v1503_v63  ;;  %v1509_v4 = vmul.f32 %v1505_v0, %v1505_v0  ;;  %v1504_v5 = vmul.f32 %v1804_v31, %v1500_v1  ;;  %v1506_v6 = vmul.f32 %v1804_v31, %v1502_v2 }
 0x17c   : > { %v1511_v7 = vadd.f32 %v1509_v4, %v1507_v3  ;;  %v1508_v8 = vmul.f32 %v1504_v5, %v1504_v5  ;;  %v1510_v9 = vmul.f32 %v1506_v6, %v1506_v6 }
 0x17e   : > { %v1512_v10 = vrot.slane %v1511_v7, 4  ;;  %v1518_v11 = vadd.f32 %v1510_v9, %v1508_v8 }
 0x180   : > { %v1513_v13 = vadd.f32 %v1512_v10, %v1511_v7  ;;  %v1519_v14 = vrot.slane %v1518_v11, 4 }
 0x182   : > { %v1514_v15 = vrot.slane %v1513_v13, 2  ;;  %v1520_v16 = vadd.f32 %v1519_v14, %v1518_v11 }
 0x184   : > { %v1515_v12 = vadd.f32 %v1514_v15, %v1513_v13  ;;  %v1521_v17 = vrot.slane %v1520_v16, 2 }
 0x186   : > { %v1516_v18 = vrot.slane %v1515_v12, 1  ;;  %v1522_v19 = vadd.f32 %v1521_v17, %v1520_v16 }
 0x188   : > { %v1517_v20 = vadd.f32 %v1516_v18, %v1515_v12  ;;  %v1523_v21 = vrot.slane %v1522_v19, 1 }
 0x18a   : > { %v1524_v22 = vadd.f32 %v1523_v21, %v1522_v19  ;;  %v1526_v23 = vsel %vm1525_vm11, %v1487_v56, %v1517_v20 }
 0x18c   : > { %v1527_v24 = vsel %vm1525_vm11, %v1494_v59, %v1524_v22 }
 0x18d   : > { %v1530_v25 = vcombine.low %v1526_v23, %v1527_v24 }
 0x18f   : > { %1806 = vst.sshfl [vmem:[%s387_s13] sm:$0x33 pattern:$0x76325410] %v1530_v25 }
 0x190 PF: > { %p16_p11 = scmp.ge.s32.totalorder %s2129_s9, 4   ;;  %s2602_s27 = smov %s2062_s28 }
 0x191   : > { %s2603_s28 = smov %s2136_s12  ;;  %s2604_s29 = smov %s2129_s9 }
 0x192   :  { %18 = sbr.rel (!%p16_p11) target bundleno = 2 (0x2), region = 139 }

</bundles_post_ra>
